<compile_context>
chip_gen: v5e
topology: v5e:2x2
jax: 0.10.0
libtpu: 0.0.40
codegen_flags: <defaults>
</compile_context>

<pallas_src>
import math
import functools

import jax
import jax.numpy as jnp
from jax.experimental import pallas as pl
from jax.experimental.pallas import tpu as pltpu


# --------------------------------------------------------------------------- #
# Kernel
# --------------------------------------------------------------------------- #
def _lstm2_chunk_kernel(x_ref, w0_hbm, b0_ref, w1_hbm, b1_ref, o_ref,
                        w0_ref, w1_ref, h0_ref, c0_ref, h1_ref, c1_ref,
                        dma_sem):
    """Processes one (tb, T_CHUNK, H) slab of the sequence through both layers.

    Grid = (batch_tiles, seq_chunks).  (h, c) state for both layers is carried
    across time chunks in f32 VMEM scratch and reset at chunk == 0.
    """
    chunk = pl.program_id(1)
    T = x_ref.shape[1]                 # static time-chunk length
    H = h0_ref.shape[-1]               # hidden size
    Hg = b0_ref.shape[-1] // 4         # lane-aligned gate stride (>= H)

    # First chunk of each batch-tile sequence: stage the (single-buffered)
    # fused weights into VMEM and zero the carried LSTM state.  Conditioning
    # on the TIME index (not the batch index) keeps this correct when the
    # "parallel" batch axis is sharded across TensorCores — every core sees
    # chunk == 0 for each of its own batch tiles before any compute.
    @pl.when(chunk == 0)
    def _():
        cp0 = pltpu.make_async_copy(w0_hbm, w0_ref, dma_sem.at[0])
        cp1 = pltpu.make_async_copy(w1_hbm, w1_ref, dma_sem.at[1])
        cp0.start()
        cp1.start()
        h0_ref[...] = jnp.zeros_like(h0_ref)
        c0_ref[...] = jnp.zeros_like(c0_ref)
        h1_ref[...] = jnp.zeros_like(h1_ref)
        c1_ref[...] = jnp.zeros_like(c1_ref)
        cp0.wait()
        cp1.wait()

    # Hoist loop-invariant operands out of the time loop.
    w0 = w0_ref[...]                   # (2H, 4Hg), matmul dtype (bf16 default)
    w1 = w1_ref[...]
    b0 = b0_ref[...]                   # (1, 4Hg), f32
    b1 = b1_ref[...]
    mm_dtype = w0.dtype

    def cell(x_t, h_prev, c_prev, w, b):
        # One fused MXU dot per cell: [x_t | h_prev] @ [W_ih ; W_hh] + b,
        # f32 accumulation.  PyTorch gate order i | f | g | o; gate g occupies
        # lanes [g*Hg, g*Hg + H) so every slice starts on a 128-lane boundary.
        xh = jnp.concatenate([x_t, h_prev.astype(mm_dtype)], axis=-1)
        gates = jnp.dot(xh, w, preferred_element_type=jnp.float32) + b
        i_g = jax.nn.sigmoid(gates[:, 0 * Hg:0 * Hg + H])
        f_g = jax.nn.sigmoid(gates[:, 1 * Hg:1 * Hg + H])
        g_g = jnp.tanh(gates[:, 2 * Hg:2 * Hg + H])
        o_g = jax.nn.sigmoid(gates[:, 3 * Hg:3 * Hg + H])
        # Recurrent state and elementwise math stay f32 on all generations.
        c_new = f_g * c_prev + i_g * g_g
        h_new = o_g * jnp.tanh(c_new)
        return h_new, c_new

    # Keep carried state in registers for the whole chunk; touch scratch only
    # at the chunk edges.
    h0, c0 = h0_ref[...], c0_ref[...]
    h1, c1 = h1_ref[...], c1_ref[...]

    # Fully unrolled time loop (T is a small static chunk size): all x loads
    # and output stores use static indices -> plain strided VMEM accesses.
    for t in range(T):
        x_t = x_ref[:, t, :].astype(mm_dtype)               # (tb, H)
        h0, c0 = cell(x_t, h0, c0, w0, b0)                   # layer 0
        h1, c1 = cell(h0.astype(mm_dtype), h1, c1, w1, b1)   # layer 1
        o_ref[:, t, :] = h1.astype(o_ref.dtype)

    h0_ref[...] = h0
    c0_ref[...] = c0
    h1_ref[...] = h1
    c1_ref[...] = c1


# --------------------------------------------------------------------------- #
# Wrapper
# --------------------------------------------------------------------------- #
def _round_up(n, m):
    return (n + m - 1) // m * m


def _pick_time_chunk(seq_len, target=32):
    """Largest time chunk <= target that divides seq_len and keeps the block's
    second-minor dim a multiple of 8 (or equal to the full sequence)."""
    if seq_len <= target:
        return seq_len
    for d in range(target, 7, -1):
        if seq_len % d == 0 and d % 8 == 0:
            return d
    return seq_len  # fall back: whole sequence as one chunk


def prepare_params(params, matmul_dtype=jnp.bfloat16):
    """Fuse W_ih / W_hh into one (2H, 4*Hg) matrix per layer (gate stride Hg
    padded to a 128-lane multiple) and cast MXU operands to `matmul_dtype`.
    Biases (b_ih + b_hh, pre-summed) stay f32."""
    prepared = []
    for (w_ih, w_hh, b) in params:
        H = w_ih.shape[0]
        Hg = _round_up(H, 128)
        w = jnp.concatenate([w_ih, w_hh], axis=0)            # (2H, 4H), i|f|g|o
        if Hg != H:
            w = jnp.pad(w.reshape(2 * H, 4, H), ((0, 0), (0, 0), (0, Hg - H)))
            b = jnp.pad(b.reshape(4, H), ((0, 0), (0, Hg - H)))
        prepared.append((w.reshape(2 * H, 4 * Hg).astype(matmul_dtype),
                         b.reshape(1, 4 * Hg).astype(jnp.float32)))
    return tuple(prepared)


@functools.partial(jax.jit, static_argnames=("batch_tile", "time_chunk"))
def temporal_context_analyzer(x, prepared_params, *, batch_tile=None,
                              time_chunk=None):
    """2-layer LSTM forward (batch_first). x: [B, S, H] -> [B, S, H]."""
    (w0, b0), (w1, b1) = prepared_params
    B, S, H = x.shape
    Hg = b0.shape[-1] // 4
    assert w0.shape == (2 * H, 4 * Hg) and w1.shape == (2 * H, 4 * Hg)

    # Batch tiling: choose batch_tile so B // batch_tile >= 2 on v7x to use
    # both TensorCores; on v5e/v6e keep the full batch per tile (default).
    tb = B if batch_tile is None else batch_tile
    assert B % tb == 0, "batch must be divisible by batch_tile"
    nb = B // tb

    tc = _pick_time_chunk(S) if time_chunk is None else time_chunk
    assert S % tc == 0, "seq_len must be divisible by time_chunk"
    assert tc % 8 == 0 or tc == S, "time_chunk must be a multiple of 8 (or == S)"
    nc = S // tc

    # Generation-aware VMEM budget from the actual resident footprint:
    #   x/out blocks are double-buffered by the pipeline; weights are staged
    #   once (single-buffered) into scratch; biases are tiny blocked inputs.
    io_block = tb * tc * H * x.dtype.itemsize
    w_bytes = 2 * (2 * H) * (4 * Hg) * w0.dtype.itemsize
    b_bytes = 2 * 2 * (4 * Hg) * 4
    state_bytes = 4 * tb * H * 4
    need = 2 * 2 * io_block + w_bytes + b_bytes + state_bytes
    try:
        vmem_cap = pltpu.get_tpu_info().vmem_capacity_bytes
    except Exception:
        vmem_cap = 64 << 20            # conservative: v7x per-TensorCore VMEM
    vmem_limit = int(min(max(2 * need, 32 << 20), int(vmem_cap * 0.9)))

    const = lambda b, c: (0, 0)
    io_spec = pl.BlockSpec((tb, tc, H), lambda b, c: (b, c, 0))

    return pl.pallas_call(
        _lstm2_chunk_kernel,
        out_shape=jax.ShapeDtypeStruct((B, S, H), x.dtype),
        grid_spec=pltpu.PrefetchScalarGridSpec(
            num_scalar_prefetch=0,
            # Time MUST remain the innermost axis: it carries (h, c) state.
            grid=(nb, nc),
            in_specs=[
                io_spec,                                   # x chunk (batch-first)
                pl.BlockSpec(memory_space=pl.ANY),         # W layer 0 (staged)
                pl.BlockSpec((1, 4 * Hg), const),          # bias layer 0
                pl.BlockSpec(memory_space=pl.ANY),         # W layer 1 (staged)
                pl.BlockSpec((1, 4 * Hg), const),          # bias layer 1
            ],
            out_specs=io_spec,
            scratch_shapes=[
                pltpu.VMEM((2 * H, 4 * Hg), w0.dtype),     # staged weights L0
                pltpu.VMEM((2 * H, 4 * Hg), w1.dtype),     # staged weights L1
                pltpu.VMEM((tb, H), jnp.float32),          # h, layer 0
                pltpu.VMEM((tb, H), jnp.float32),          # c, layer 0
                pltpu.VMEM((tb, H), jnp.float32),          # h, layer 1
                pltpu.VMEM((tb, H), jnp.float32),          # c, layer 1
                pltpu.SemaphoreType.DMA((2,)),             # weight-staging DMAs
            ],
        ),
        compiler_params=pltpu.CompilerParams(
            # Batch tiles are independent ("parallel"); the time axis carries
            # recurrent state and must stay sequential ("arbitrary").
            dimension_semantics=("parallel", "arbitrary"),
            vmem_limit_bytes=vmem_limit,
        ),
    )(x, w0, b0, w1, b1)


# --------------------------------------------------------------------------- #
# Parameter init + pure-JAX reference (torch.nn.LSTM semantics)
# --------------------------------------------------------------------------- #
def init_params(key, hidden_dim, dtype=jnp.float32):
    """Mimics torch.nn.LSTM default init: U[-1/sqrt(H), 1/sqrt(H)] everywhere.
    Weights are stored transposed vs torch ((in, 4H)); b_ih + b_hh pre-summed."""
    H = hidden_dim
    bound = 1.0 / math.sqrt(H)
    layers = []
    for lk in jax.random.split(key, 2):
        k1, k2, k3, k4 = jax.random.split(lk, 4)
        w_ih = jax.random.uniform(k1, (H, 4 * H), dtype, -bound, bound)
        w_hh = jax.random.uniform(k2, (H, 4 * H), dtype, -bound, bound)
        b_ih = jax.random.uniform(k3, (4 * H,), dtype, -bound, bound)
        b_hh = jax.random.uniform(k4, (4 * H,), dtype, -bound, bound)
        layers.append((w_ih, w_hh, b_ih + b_hh))
    return tuple(layers)


def lstm2_reference(x, params):
    """Pure-JAX 2-layer LSTM reference (same math / gate order as torch)."""
    def one_layer(x_seq, layer):
        w_ih, w_hh, b = layer
        B = x_seq.shape[0]
        H = w_hh.shape[0]

        def step(carry, x_t):
            h, c = carry
            gates = (jnp.dot(x_t, w_ih, precision=jax.lax.Precision.HIGHEST)
                     + jnp.dot(h, w_hh, precision=jax.lax.Precision.HIGHEST)
                     + b)
            i_g = jax.nn.sigmoid(gates[:, 0 * H:1 * H])
            f_g = jax.nn.sigmoid(gates[:, 1 * H:2 * H])
            g_g = jnp.tanh(gates[:, 2 * H:3 * H])
            o_g = jax.nn.sigmoid(gates[:, 3 * H:4 * H])
            c = f_g * c + i_g * g_g
            h = o_g * jnp.tanh(c)
            return (h, c), h

        init = (jnp.zeros((B, H), jnp.float32), jnp.zeros((B, H), jnp.float32))
        _, hs = jax.lax.scan(step, init, jnp.swapaxes(x_seq, 0, 1))
        return jnp.swapaxes(hs, 0, 1)

    y = one_layer(x.astype(jnp.float32), params[0])
    y = one_layer(y, params[1])
    return y.astype(x.dtype)


# --------------------------------------------------------------------------- #
# Demo / self-check
# --------------------------------------------------------------------------- #
if __name__ == "__main__":
    key = jax.random.PRNGKey(0)
    kx1, kx2, kp = jax.random.split(key, 3)

    B, S, H = 2, 8, 32                      # batch=2, seq=8, hidden_dim=32
    x = jax.random.normal(kx1, (B, S, H), dtype=jnp.float32)
    params = init_params(kp, H)
    ref = lstm2_reference(x, params)

    # 1) f32-operand path: near-exact check of gate order / recurrence.
    out_f32 = jax.block_until_ready(
        temporal_context_analyzer(x, prepare_params(params, jnp.float32)))
    assert out_f32.shape == (B, S, H)
    assert jnp.allclose(out_f32, ref, atol=1e-2, rtol=1e-2), \
        "f32 path mismatch vs reference"

    # 2) bf16-operand path (performance default): bf16 MXU inputs with f32
    #    accumulation/state -> small expected deviation from the f32 reference.
    out_bf16 = jax.block_until_ready(
        temporal_context_analyzer(x, prepare_params(params)))
    assert out_bf16.shape == (B, S, H)
    assert jnp.allclose(out_bf16, ref, atol=5e-2, rtol=5e-2), \
        "bf16 path mismatch vs reference"

    # 3) Multi-tile / multi-chunk config: exercises (h, c) carry across time
    #    chunks and per-batch-tile state reset (grid = (2, 2)).
    x2 = jax.random.normal(kx2, (2, 16, H), dtype=jnp.float32)
    ref2 = lstm2_reference(x2, params)
    out2 = jax.block_until_ready(
        temporal_context_analyzer(x2, prepare_params(params),
                                  batch_tile=1, time_chunk=8))
    assert out2.shape == (2, 16, H)
    assert jnp.allclose(out2, ref2, atol=5e-2, rtol=5e-2), \
        "chunked/tiled path mismatch vs reference"

    print("KERNEL_OK")
</pallas_src>

<mosaic_0001>
module attributes {stable_mosaic.version = 11 : i64} {
  func.func @_lstm2_chunk_kernel(%arg0: i32, %arg1: i32, %arg2: memref<2x8x32xf32, #tpu.memory_space<vmem>>, %arg3: memref<64x512xf32, #tpu.memory_space<any>>, %arg4: memref<1x512xf32, #tpu.memory_space<vmem>>, %arg5: memref<64x512xf32, #tpu.memory_space<any>>, %arg6: memref<1x512xf32, #tpu.memory_space<vmem>>, %arg7: memref<2x8x32xf32, #tpu.memory_space<vmem>>, %arg8: memref<64x512xf32, #tpu.memory_space<vmem>>, %arg9: memref<64x512xf32, #tpu.memory_space<vmem>>, %arg10: memref<2x32xf32, #tpu.memory_space<vmem>>, %arg11: memref<2x32xf32, #tpu.memory_space<vmem>>, %arg12: memref<2x32xf32, #tpu.memory_space<vmem>>, %arg13: memref<2x32xf32, #tpu.memory_space<vmem>>, %arg14: memref<2x!tpu.dma_semaphore, #tpu.memory_space<semaphore_mem>>) attributes {dimension_semantics = [#tpu.dimension_semantics<parallel>, #tpu.dimension_semantics<arbitrary>], iteration_bounds = array<i64: 1, 1>, scalar_prefetch = 0 : i64, scratch_operands = 7 : i64, tpu.core_type = #tpu.core_type<tc>, window_params = [{transform_indices = @transform_0, window_bounds = array<i64: 2, 8, 32>}, {}, {pipeline_mode = #tpu.pipeline_mode<synchronous>, transform_indices = @transform_2, window_bounds = array<i64: 1, 512>}, {}, {pipeline_mode = #tpu.pipeline_mode<synchronous>, transform_indices = @transform_4, window_bounds = array<i64: 1, 512>}, {transform_indices = @transform_5, window_bounds = array<i64: 2, 8, 32>}]} {
    %c0_i32 = arith.constant 0 : i32
    %0 = arith.cmpi eq, %arg1, %c0_i32 : i32
    %1 = arith.extui %0 : i1 to i32
    %c0_i32_0 = arith.constant 0 : i32
    %2 = arith.cmpi ne, %1, %c0_i32_0 : i32
    scf.if %2 {
      %c0_i32_128 = arith.constant 0 : i32
      %519 = tpu.memref_slice %arg14[%c0_i32_128] : memref<2x!tpu.dma_semaphore, #tpu.memory_space<semaphore_mem>> -> memref<1x!tpu.dma_semaphore, #tpu.memory_space<semaphore_mem>>
      %520 = tpu.memref_squeeze %519 : memref<1x!tpu.dma_semaphore, #tpu.memory_space<semaphore_mem>> -> memref<!tpu.dma_semaphore, #tpu.memory_space<semaphore_mem>>
      tpu.enqueue_dma source(%arg3 : memref<64x512xf32, #tpu.memory_space<any>>) target(%arg8 : memref<64x512xf32, #tpu.memory_space<vmem>>) target_semaphore(%520 : memref<!tpu.dma_semaphore, #tpu.memory_space<semaphore_mem>>)
      %c1_i32 = arith.constant 1 : i32
      %521 = tpu.memref_slice %arg14[%c1_i32] : memref<2x!tpu.dma_semaphore, #tpu.memory_space<semaphore_mem>> -> memref<1x!tpu.dma_semaphore, #tpu.memory_space<semaphore_mem>>
      %522 = tpu.memref_squeeze %521 : memref<1x!tpu.dma_semaphore, #tpu.memory_space<semaphore_mem>> -> memref<!tpu.dma_semaphore, #tpu.memory_space<semaphore_mem>>
      tpu.enqueue_dma source(%arg5 : memref<64x512xf32, #tpu.memory_space<any>>) target(%arg9 : memref<64x512xf32, #tpu.memory_space<vmem>>) target_semaphore(%522 : memref<!tpu.dma_semaphore, #tpu.memory_space<semaphore_mem>>)
      %cst_129 = arith.constant 0.000000e+00 : f32
      %523 = vector.broadcast %cst_129 : f32 to vector<2x32xf32>
      %c0_130 = arith.constant 0 : index
      %c0_131 = arith.constant 0 : index
      %524 = vector.load %arg10[%c0_130, %c0_131] : memref<2x32xf32, #tpu.memory_space<vmem>>, vector<2x32xf32>
      tpu.vector_store %arg10[%c0_130, %c0_131], %523 {strides = array<i32>} : memref<2x32xf32, #tpu.memory_space<vmem>>, vector<2x32xf32>,
      %cst_132 = arith.constant 0.000000e+00 : f32
      %525 = vector.broadcast %cst_132 : f32 to vector<2x32xf32>
      %c0_133 = arith.constant 0 : index
      %c0_134 = arith.constant 0 : index
      %526 = vector.load %arg11[%c0_133, %c0_134] : memref<2x32xf32, #tpu.memory_space<vmem>>, vector<2x32xf32>
      tpu.vector_store %arg11[%c0_133, %c0_134], %525 {strides = array<i32>} : memref<2x32xf32, #tpu.memory_space<vmem>>, vector<2x32xf32>,
      %cst_135 = arith.constant 0.000000e+00 : f32
      %527 = vector.broadcast %cst_135 : f32 to vector<2x32xf32>
      %c0_136 = arith.constant 0 : index
      %c0_137 = arith.constant 0 : index
      %528 = vector.load %arg12[%c0_136, %c0_137] : memref<2x32xf32, #tpu.memory_space<vmem>>, vector<2x32xf32>
      tpu.vector_store %arg12[%c0_136, %c0_137], %527 {strides = array<i32>} : memref<2x32xf32, #tpu.memory_space<vmem>>, vector<2x32xf32>,
      %cst_138 = arith.constant 0.000000e+00 : f32
      %529 = vector.broadcast %cst_138 : f32 to vector<2x32xf32>
      %c0_139 = arith.constant 0 : index
      %c0_140 = arith.constant 0 : index
      %530 = vector.load %arg13[%c0_139, %c0_140] : memref<2x32xf32, #tpu.memory_space<vmem>>, vector<2x32xf32>
      tpu.vector_store %arg13[%c0_139, %c0_140], %529 {strides = array<i32>} : memref<2x32xf32, #tpu.memory_space<vmem>>, vector<2x32xf32>,
      %c0_i32_141 = arith.constant 0 : i32
      %531 = tpu.memref_slice %arg14[%c0_i32_141] : memref<2x!tpu.dma_semaphore, #tpu.memory_space<semaphore_mem>> -> memref<1x!tpu.dma_semaphore, #tpu.memory_space<semaphore_mem>>
      %532 = tpu.memref_squeeze %531 : memref<1x!tpu.dma_semaphore, #tpu.memory_space<semaphore_mem>> -> memref<!tpu.dma_semaphore, #tpu.memory_space<semaphore_mem>>
      tpu.wait_dma2 semaphore(%532 : memref<!tpu.dma_semaphore, #tpu.memory_space<semaphore_mem>>) src(%arg3 : memref<64x512xf32, #tpu.memory_space<any>>) dst(%arg8 : memref<64x512xf32, #tpu.memory_space<vmem>>)
      %c1_i32_142 = arith.constant 1 : i32
      %533 = tpu.memref_slice %arg14[%c1_i32_142] : memref<2x!tpu.dma_semaphore, #tpu.memory_space<semaphore_mem>> -> memref<1x!tpu.dma_semaphore, #tpu.memory_space<semaphore_mem>>
      %534 = tpu.memref_squeeze %533 : memref<1x!tpu.dma_semaphore, #tpu.memory_space<semaphore_mem>> -> memref<!tpu.dma_semaphore, #tpu.memory_space<semaphore_mem>>
      tpu.wait_dma2 semaphore(%534 : memref<!tpu.dma_semaphore, #tpu.memory_space<semaphore_mem>>) src(%arg5 : memref<64x512xf32, #tpu.memory_space<any>>) dst(%arg9 : memref<64x512xf32, #tpu.memory_space<vmem>>)
    } else {
    }
    %c0 = arith.constant 0 : index
    %c0_1 = arith.constant 0 : index
    %3 = vector.load %arg8[%c0, %c0_1] : memref<64x512xf32, #tpu.memory_space<vmem>>, vector<64x512xf32>
    %c0_2 = arith.constant 0 : index
    %c0_3 = arith.constant 0 : index
    %4 = vector.load %arg9[%c0_2, %c0_3] : memref<64x512xf32, #tpu.memory_space<vmem>>, vector<64x512xf32>
    %c0_4 = arith.constant 0 : index
    %c0_5 = arith.constant 0 : index
    %5 = vector.load %arg4[%c0_4, %c0_5] : memref<1x512xf32, #tpu.memory_space<vmem>>, vector<1x512xf32>
    %c0_6 = arith.constant 0 : index
    %c0_7 = arith.constant 0 : index
    %6 = vector.load %arg6[%c0_6, %c0_7] : memref<1x512xf32, #tpu.memory_space<vmem>>, vector<1x512xf32>
    %c0_8 = arith.constant 0 : index
    %c0_9 = arith.constant 0 : index
    %7 = vector.load %arg10[%c0_8, %c0_9] : memref<2x32xf32, #tpu.memory_space<vmem>>, vector<2x32xf32>
    %c0_10 = arith.constant 0 : index
    %c0_11 = arith.constant 0 : index
    %8 = vector.load %arg11[%c0_10, %c0_11] : memref<2x32xf32, #tpu.memory_space<vmem>>, vector<2x32xf32>
    %c0_12 = arith.constant 0 : index
    %c0_13 = arith.constant 0 : index
    %9 = vector.load %arg12[%c0_12, %c0_13] : memref<2x32xf32, #tpu.memory_space<vmem>>, vector<2x32xf32>
    %c0_14 = arith.constant 0 : index
    %c0_15 = arith.constant 0 : index
    %10 = vector.load %arg13[%c0_14, %c0_15] : memref<2x32xf32, #tpu.memory_space<vmem>>, vector<2x32xf32>
    %c0_16 = arith.constant 0 : index
    %c0_17 = arith.constant 0 : index
    %c0_18 = arith.constant 0 : index
    %11 = vector.load %arg2[%c0_16, %c0_17, %c0_18] : memref<2x8x32xf32, #tpu.memory_space<vmem>>, vector<2x1x32xf32>
    %12 = vector.shape_cast %11 : vector<2x1x32xf32> to vector<2x32xf32>
    %13 = tpu.concatenate %12, %7 in 1 : vector<2x32xf32>, vector<2x32xf32> -> vector<2x64xf32>
    %cst = arith.constant dense<0.000000e+00> : vector<2x512xf32>
    %14 = tpu.matmul %13, %3, %cst {dimension_numbers = #tpu.dot_dimension_numbers<[1], [0], [0], [1], [0, 0, 1, 1], [], []>} : vector<2x64xf32>, vector<64x512xf32>, vector<2x512xf32> -> vector<2x512xf32>
    %15 = vector.broadcast %5 : vector<1x512xf32> to vector<2x512xf32>
    %16 = arith.addf %14, %15 : vector<2x512xf32>
    %17 = vector.extract_strided_slice %16 {offsets = [0, 0], sizes = [2, 32], strides = [1, 1]} : vector<2x512xf32> to vector<2x32xf32>
    %18 = arith.negf %17 : vector<2x32xf32>
    %19 = math.exp %18 : vector<2x32xf32>
    %cst_19 = arith.constant 1.000000e+00 : f32
    %20 = vector.broadcast %cst_19 : f32 to vector<2x32xf32>
    %21 = arith.addf %20, %19 : vector<2x32xf32>
    %22 = arith.divf %20, %21 : vector<2x32xf32>
    %23 = vector.extract_strided_slice %16 {offsets = [0, 128], sizes = [2, 32], strides = [1, 1]} : vector<2x512xf32> to vector<2x32xf32>
    %24 = arith.negf %23 : vector<2x32xf32>
    %25 = math.exp %24 : vector<2x32xf32>
    %cst_20 = arith.constant 1.000000e+00 : f32
    %26 = vector.broadcast %cst_20 : f32 to vector<2x32xf32>
    %27 = arith.addf %26, %25 : vector<2x32xf32>
    %28 = arith.divf %26, %27 : vector<2x32xf32>
    %29 = vector.extract_strided_slice %16 {offsets = [0, 256], sizes = [2, 32], strides = [1, 1]} : vector<2x512xf32> to vector<2x32xf32>
    %30 = math.tanh %29 : vector<2x32xf32>
    %31 = vector.extract_strided_slice %16 {offsets = [0, 384], sizes = [2, 32], strides = [1, 1]} : vector<2x512xf32> to vector<2x32xf32>
    %32 = arith.negf %31 : vector<2x32xf32>
    %33 = math.exp %32 : vector<2x32xf32>
    %cst_21 = arith.constant 1.000000e+00 : f32
    %34 = vector.broadcast %cst_21 : f32 to vector<2x32xf32>
    %35 = arith.addf %34, %33 : vector<2x32xf32>
    %36 = arith.divf %34, %35 : vector<2x32xf32>
    %37 = arith.mulf %28, %8 : vector<2x32xf32>
    %38 = arith.mulf %22, %30 : vector<2x32xf32>
    %39 = arith.addf %37, %38 : vector<2x32xf32>
    %40 = math.tanh %39 : vector<2x32xf32>
    %41 = arith.mulf %36, %40 : vector<2x32xf32>
    %42 = tpu.concatenate %41, %9 in 1 : vector<2x32xf32>, vector<2x32xf32> -> vector<2x64xf32>
    %cst_22 = arith.constant dense<0.000000e+00> : vector<2x512xf32>
    %43 = tpu.matmul %42, %4, %cst_22 {dimension_numbers = #tpu.dot_dimension_numbers<[1], [0], [0], [1], [0, 0, 1, 1], [], []>} : vector<2x64xf32>, vector<64x512xf32>, vector<2x512xf32> -> vector<2x512xf32>
    %44 = vector.broadcast %6 : vector<1x512xf32> to vector<2x512xf32>
    %45 = arith.addf %43, %44 : vector<2x512xf32>
    %46 = vector.extract_strided_slice %45 {offsets = [0, 0], sizes = [2, 32], strides = [1, 1]} : vector<2x512xf32> to vector<2x32xf32>
    %47 = arith.negf %46 : vector<2x32xf32>
    %48 = math.exp %47 : vector<2x32xf32>
    %cst_23 = arith.constant 1.000000e+00 : f32
    %49 = vector.broadcast %cst_23 : f32 to vector<2x32xf32>
    %50 = arith.addf %49, %48 : vector<2x32xf32>
    %51 = arith.divf %49, %50 : vector<2x32xf32>
    %52 = vector.extract_strided_slice %45 {offsets = [0, 128], sizes = [2, 32], strides = [1, 1]} : vector<2x512xf32> to vector<2x32xf32>
    %53 = arith.negf %52 : vector<2x32xf32>
    %54 = math.exp %53 : vector<2x32xf32>
    %cst_24 = arith.constant 1.000000e+00 : f32
    %55 = vector.broadcast %cst_24 : f32 to vector<2x32xf32>
    %56 = arith.addf %55, %54 : vector<2x32xf32>
    %57 = arith.divf %55, %56 : vector<2x32xf32>
    %58 = vector.extract_strided_slice %45 {offsets = [0, 256], sizes = [2, 32], strides = [1, 1]} : vector<2x512xf32> to vector<2x32xf32>
    %59 = math.tanh %58 : vector<2x32xf32>
    %60 = vector.extract_strided_slice %45 {offsets = [0, 384], sizes = [2, 32], strides = [1, 1]} : vector<2x512xf32> to vector<2x32xf32>
    %61 = arith.negf %60 : vector<2x32xf32>
    %62 = math.exp %61 : vector<2x32xf32>
    %cst_25 = arith.constant 1.000000e+00 : f32
    %63 = vector.broadcast %cst_25 : f32 to vector<2x32xf32>
    %64 = arith.addf %63, %62 : vector<2x32xf32>
    %65 = arith.divf %63, %64 : vector<2x32xf32>
    %66 = arith.mulf %57, %10 : vector<2x32xf32>
    %67 = arith.mulf %51, %59 : vector<2x32xf32>
    %68 = arith.addf %66, %67 : vector<2x32xf32>
    %69 = math.tanh %68 : vector<2x32xf32>
    %70 = arith.mulf %65, %69 : vector<2x32xf32>
    %c0_26 = arith.constant 0 : index
    %c0_27 = arith.constant 0 : index
    %c0_28 = arith.constant 0 : index
    %71 = vector.load %arg7[%c0_26, %c0_27, %c0_28] : memref<2x8x32xf32, #tpu.memory_space<vmem>>, vector<2x1x32xf32>
    %72 = vector.shape_cast %71 : vector<2x1x32xf32> to vector<2x32xf32>
    %73 = vector.shape_cast %70 : vector<2x32xf32> to vector<2x1x32xf32>
    tpu.vector_store %arg7[%c0_26, %c0_27, %c0_28], %73 {strides = array<i32>} : memref<2x8x32xf32, #tpu.memory_space<vmem>>, vector<2x1x32xf32>,
    %c0_29 = arith.constant 0 : index
    %c1 = arith.constant 1 : index
    %c0_30 = arith.constant 0 : index
    %74 = vector.load %arg2[%c0_29, %c1, %c0_30] : memref<2x8x32xf32, #tpu.memory_space<vmem>>, vector<2x1x32xf32>
    %75 = vector.shape_cast %74 : vector<2x1x32xf32> to vector<2x32xf32>
    %76 = tpu.concatenate %75, %41 in 1 : vector<2x32xf32>, vector<2x32xf32> -> vector<2x64xf32>
    %cst_31 = arith.constant dense<0.000000e+00> : vector<2x512xf32>
    %77 = tpu.matmul %76, %3, %cst_31 {dimension_numbers = #tpu.dot_dimension_numbers<[1], [0], [0], [1], [0, 0, 1, 1], [], []>} : vector<2x64xf32>, vector<64x512xf32>, vector<2x512xf32> -> vector<2x512xf32>
    %78 = vector.broadcast %5 : vector<1x512xf32> to vector<2x512xf32>
    %79 = arith.addf %77, %78 : vector<2x512xf32>
    %80 = vector.extract_strided_slice %79 {offsets = [0, 0], sizes = [2, 32], strides = [1, 1]} : vector<2x512xf32> to vector<2x32xf32>
    %81 = arith.negf %80 : vector<2x32xf32>
    %82 = math.exp %81 : vector<2x32xf32>
    %cst_32 = arith.constant 1.000000e+00 : f32
    %83 = vector.broadcast %cst_32 : f32 to vector<2x32xf32>
    %84 = arith.addf %83, %82 : vector<2x32xf32>
    %85 = arith.divf %83, %84 : vector<2x32xf32>
    %86 = vector.extract_strided_slice %79 {offsets = [0, 128], sizes = [2, 32], strides = [1, 1]} : vector<2x512xf32> to vector<2x32xf32>
    %87 = arith.negf %86 : vector<2x32xf32>
    %88 = math.exp %87 : vector<2x32xf32>
    %cst_33 = arith.constant 1.000000e+00 : f32
    %89 = vector.broadcast %cst_33 : f32 to vector<2x32xf32>
    %90 = arith.addf %89, %88 : vector<2x32xf32>
    %91 = arith.divf %89, %90 : vector<2x32xf32>
    %92 = vector.extract_strided_slice %79 {offsets = [0, 256], sizes = [2, 32], strides = [1, 1]} : vector<2x512xf32> to vector<2x32xf32>
    %93 = math.tanh %92 : vector<2x32xf32>
    %94 = vector.extract_strided_slice %79 {offsets = [0, 384], sizes = [2, 32], strides = [1, 1]} : vector<2x512xf32> to vector<2x32xf32>
    %95 = arith.negf %94 : vector<2x32xf32>
    %96 = math.exp %95 : vector<2x32xf32>
    %cst_34 = arith.constant 1.000000e+00 : f32
    %97 = vector.broadcast %cst_34 : f32 to vector<2x32xf32>
    %98 = arith.addf %97, %96 : vector<2x32xf32>
    %99 = arith.divf %97, %98 : vector<2x32xf32>
    %100 = arith.mulf %91, %39 : vector<2x32xf32>
    %101 = arith.mulf %85, %93 : vector<2x32xf32>
    %102 = arith.addf %100, %101 : vector<2x32xf32>
    %103 = math.tanh %102 : vector<2x32xf32>
    %104 = arith.mulf %99, %103 : vector<2x32xf32>
    %105 = tpu.concatenate %104, %70 in 1 : vector<2x32xf32>, vector<2x32xf32> -> vector<2x64xf32>
    %cst_35 = arith.constant dense<0.000000e+00> : vector<2x512xf32>
    %106 = tpu.matmul %105, %4, %cst_35 {dimension_numbers = #tpu.dot_dimension_numbers<[1], [0], [0], [1], [0, 0, 1, 1], [], []>} : vector<2x64xf32>, vector<64x512xf32>, vector<2x512xf32> -> vector<2x512xf32>
    %107 = vector.broadcast %6 : vector<1x512xf32> to vector<2x512xf32>
    %108 = arith.addf %106, %107 : vector<2x512xf32>
    %109 = vector.extract_strided_slice %108 {offsets = [0, 0], sizes = [2, 32], strides = [1, 1]} : vector<2x512xf32> to vector<2x32xf32>
    %110 = arith.negf %109 : vector<2x32xf32>
    %111 = math.exp %110 : vector<2x32xf32>
    %cst_36 = arith.constant 1.000000e+00 : f32
    %112 = vector.broadcast %cst_36 : f32 to vector<2x32xf32>
    %113 = arith.addf %112, %111 : vector<2x32xf32>
    %114 = arith.divf %112, %113 : vector<2x32xf32>
    %115 = vector.extract_strided_slice %108 {offsets = [0, 128], sizes = [2, 32], strides = [1, 1]} : vector<2x512xf32> to vector<2x32xf32>
    %116 = arith.negf %115 : vector<2x32xf32>
    %117 = math.exp %116 : vector<2x32xf32>
    %cst_37 = arith.constant 1.000000e+00 : f32
    %118 = vector.broadcast %cst_37 : f32 to vector<2x32xf32>
    %119 = arith.addf %118, %117 : vector<2x32xf32>
    %120 = arith.divf %118, %119 : vector<2x32xf32>
    %121 = vector.extract_strided_slice %108 {offsets = [0, 256], sizes = [2, 32], strides = [1, 1]} : vector<2x512xf32> to vector<2x32xf32>
    %122 = math.tanh %121 : vector<2x32xf32>
    %123 = vector.extract_strided_slice %108 {offsets = [0, 384], sizes = [2, 32], strides = [1, 1]} : vector<2x512xf32> to vector<2x32xf32>
    %124 = arith.negf %123 : vector<2x32xf32>
    %125 = math.exp %124 : vector<2x32xf32>
    %cst_38 = arith.constant 1.000000e+00 : f32
    %126 = vector.broadcast %cst_38 : f32 to vector<2x32xf32>
    %127 = arith.addf %126, %125 : vector<2x32xf32>
    %128 = arith.divf %126, %127 : vector<2x32xf32>
    %129 = arith.mulf %120, %68 : vector<2x32xf32>
    %130 = arith.mulf %114, %122 : vector<2x32xf32>
    %131 = arith.addf %129, %130 : vector<2x32xf32>
    %132 = math.tanh %131 : vector<2x32xf32>
    %133 = arith.mulf %128, %132 : vector<2x32xf32>
    %c0_39 = arith.constant 0 : index
    %c1_40 = arith.constant 1 : index
    %c0_41 = arith.constant 0 : index
    %134 = vector.load %arg7[%c0_39, %c1_40, %c0_41] : memref<2x8x32xf32, #tpu.memory_space<vmem>>, vector<2x1x32xf32>
    %135 = vector.shape_cast %134 : vector<2x1x32xf32> to vector<2x32xf32>
    %136 = vector.shape_cast %133 : vector<2x32xf32> to vector<2x1x32xf32>
    tpu.vector_store %arg7[%c0_39, %c1_40, %c0_41], %136 {strides = array<i32>} : memref<2x8x32xf32, #tpu.memory_space<vmem>>, vector<2x1x32xf32>,
    %c0_42 = arith.constant 0 : index
    %c2 = arith.constant 2 : index
    %c0_43 = arith.constant 0 : index
    %137 = vector.load %arg2[%c0_42, %c2, %c0_43] : memref<2x8x32xf32, #tpu.memory_space<vmem>>, vector<2x1x32xf32>
    %138 = vector.shape_cast %137 : vector<2x1x32xf32> to vector<2x32xf32>
    %139 = tpu.concatenate %138, %104 in 1 : vector<2x32xf32>, vector<2x32xf32> -> vector<2x64xf32>
    %cst_44 = arith.constant dense<0.000000e+00> : vector<2x512xf32>
    %140 = tpu.matmul %139, %3, %cst_44 {dimension_numbers = #tpu.dot_dimension_numbers<[1], [0], [0], [1], [0, 0, 1, 1], [], []>} : vector<2x64xf32>, vector<64x512xf32>, vector<2x512xf32> -> vector<2x512xf32>
    %141 = vector.broadcast %5 : vector<1x512xf32> to vector<2x512xf32>
    %142 = arith.addf %140, %141 : vector<2x512xf32>
    %143 = vector.extract_strided_slice %142 {offsets = [0, 0], sizes = [2, 32], strides = [1, 1]} : vector<2x512xf32> to vector<2x32xf32>
    %144 = arith.negf %143 : vector<2x32xf32>
    %145 = math.exp %144 : vector<2x32xf32>
    %cst_45 = arith.constant 1.000000e+00 : f32
    %146 = vector.broadcast %cst_45 : f32 to vector<2x32xf32>
    %147 = arith.addf %146, %145 : vector<2x32xf32>
    %148 = arith.divf %146, %147 : vector<2x32xf32>
    %149 = vector.extract_strided_slice %142 {offsets = [0, 128], sizes = [2, 32], strides = [1, 1]} : vector<2x512xf32> to vector<2x32xf32>
    %150 = arith.negf %149 : vector<2x32xf32>
    %151 = math.exp %150 : vector<2x32xf32>
    %cst_46 = arith.constant 1.000000e+00 : f32
    %152 = vector.broadcast %cst_46 : f32 to vector<2x32xf32>
    %153 = arith.addf %152, %151 : vector<2x32xf32>
    %154 = arith.divf %152, %153 : vector<2x32xf32>
    %155 = vector.extract_strided_slice %142 {offsets = [0, 256], sizes = [2, 32], strides = [1, 1]} : vector<2x512xf32> to vector<2x32xf32>
    %156 = math.tanh %155 : vector<2x32xf32>
    %157 = vector.extract_strided_slice %142 {offsets = [0, 384], sizes = [2, 32], strides = [1, 1]} : vector<2x512xf32> to vector<2x32xf32>
    %158 = arith.negf %157 : vector<2x32xf32>
    %159 = math.exp %158 : vector<2x32xf32>
    %cst_47 = arith.constant 1.000000e+00 : f32
    %160 = vector.broadcast %cst_47 : f32 to vector<2x32xf32>
    %161 = arith.addf %160, %159 : vector<2x32xf32>
    %162 = arith.divf %160, %161 : vector<2x32xf32>
    %163 = arith.mulf %154, %102 : vector<2x32xf32>
    %164 = arith.mulf %148, %156 : vector<2x32xf32>
    %165 = arith.addf %163, %164 : vector<2x32xf32>
    %166 = math.tanh %165 : vector<2x32xf32>
    %167 = arith.mulf %162, %166 : vector<2x32xf32>
    %168 = tpu.concatenate %167, %133 in 1 : vector<2x32xf32>, vector<2x32xf32> -> vector<2x64xf32>
    %cst_48 = arith.constant dense<0.000000e+00> : vector<2x512xf32>
    %169 = tpu.matmul %168, %4, %cst_48 {dimension_numbers = #tpu.dot_dimension_numbers<[1], [0], [0], [1], [0, 0, 1, 1], [], []>} : vector<2x64xf32>, vector<64x512xf32>, vector<2x512xf32> -> vector<2x512xf32>
    %170 = vector.broadcast %6 : vector<1x512xf32> to vector<2x512xf32>
    %171 = arith.addf %169, %170 : vector<2x512xf32>
    %172 = vector.extract_strided_slice %171 {offsets = [0, 0], sizes = [2, 32], strides = [1, 1]} : vector<2x512xf32> to vector<2x32xf32>
    %173 = arith.negf %172 : vector<2x32xf32>
    %174 = math.exp %173 : vector<2x32xf32>
    %cst_49 = arith.constant 1.000000e+00 : f32
    %175 = vector.broadcast %cst_49 : f32 to vector<2x32xf32>
    %176 = arith.addf %175, %174 : vector<2x32xf32>
    %177 = arith.divf %175, %176 : vector<2x32xf32>
    %178 = vector.extract_strided_slice %171 {offsets = [0, 128], sizes = [2, 32], strides = [1, 1]} : vector<2x512xf32> to vector<2x32xf32>
    %179 = arith.negf %178 : vector<2x32xf32>
    %180 = math.exp %179 : vector<2x32xf32>
    %cst_50 = arith.constant 1.000000e+00 : f32
    %181 = vector.broadcast %cst_50 : f32 to vector<2x32xf32>
    %182 = arith.addf %181, %180 : vector<2x32xf32>
    %183 = arith.divf %181, %182 : vector<2x32xf32>
    %184 = vector.extract_strided_slice %171 {offsets = [0, 256], sizes = [2, 32], strides = [1, 1]} : vector<2x512xf32> to vector<2x32xf32>
    %185 = math.tanh %184 : vector<2x32xf32>
    %186 = vector.extract_strided_slice %171 {offsets = [0, 384], sizes = [2, 32], strides = [1, 1]} : vector<2x512xf32> to vector<2x32xf32>
    %187 = arith.negf %186 : vector<2x32xf32>
    %188 = math.exp %187 : vector<2x32xf32>
    %cst_51 = arith.constant 1.000000e+00 : f32
    %189 = vector.broadcast %cst_51 : f32 to vector<2x32xf32>
    %190 = arith.addf %189, %188 : vector<2x32xf32>
    %191 = arith.divf %189, %190 : vector<2x32xf32>
    %192 = arith.mulf %183, %131 : vector<2x32xf32>
    %193 = arith.mulf %177, %185 : vector<2x32xf32>
    %194 = arith.addf %192, %193 : vector<2x32xf32>
    %195 = math.tanh %194 : vector<2x32xf32>
    %196 = arith.mulf %191, %195 : vector<2x32xf32>
    %c0_52 = arith.constant 0 : index
    %c2_53 = arith.constant 2 : index
    %c0_54 = arith.constant 0 : index
    %197 = vector.load %arg7[%c0_52, %c2_53, %c0_54] : memref<2x8x32xf32, #tpu.memory_space<vmem>>, vector<2x1x32xf32>
    %198 = vector.shape_cast %197 : vector<2x1x32xf32> to vector<2x32xf32>
    %199 = vector.shape_cast %196 : vector<2x32xf32> to vector<2x1x32xf32>
    tpu.vector_store %arg7[%c0_52, %c2_53, %c0_54], %199 {strides = array<i32>} : memref<2x8x32xf32, #tpu.memory_space<vmem>>, vector<2x1x32xf32>,
    %c0_55 = arith.constant 0 : index
    %c3 = arith.constant 3 : index
    %c0_56 = arith.constant 0 : index
    %200 = vector.load %arg2[%c0_55, %c3, %c0_56] : memref<2x8x32xf32, #tpu.memory_space<vmem>>, vector<2x1x32xf32>
    %201 = vector.shape_cast %200 : vector<2x1x32xf32> to vector<2x32xf32>
    %202 = tpu.concatenate %201, %167 in 1 : vector<2x32xf32>, vector<2x32xf32> -> vector<2x64xf32>
    %cst_57 = arith.constant dense<0.000000e+00> : vector<2x512xf32>
    %203 = tpu.matmul %202, %3, %cst_57 {dimension_numbers = #tpu.dot_dimension_numbers<[1], [0], [0], [1], [0, 0, 1, 1], [], []>} : vector<2x64xf32>, vector<64x512xf32>, vector<2x512xf32> -> vector<2x512xf32>
    %204 = vector.broadcast %5 : vector<1x512xf32> to vector<2x512xf32>
    %205 = arith.addf %203, %204 : vector<2x512xf32>
    %206 = vector.extract_strided_slice %205 {offsets = [0, 0], sizes = [2, 32], strides = [1, 1]} : vector<2x512xf32> to vector<2x32xf32>
    %207 = arith.negf %206 : vector<2x32xf32>
    %208 = math.exp %207 : vector<2x32xf32>
    %cst_58 = arith.constant 1.000000e+00 : f32
    %209 = vector.broadcast %cst_58 : f32 to vector<2x32xf32>
    %210 = arith.addf %209, %208 : vector<2x32xf32>
    %211 = arith.divf %209, %210 : vector<2x32xf32>
    %212 = vector.extract_strided_slice %205 {offsets = [0, 128], sizes = [2, 32], strides = [1, 1]} : vector<2x512xf32> to vector<2x32xf32>
    %213 = arith.negf %212 : vector<2x32xf32>
    %214 = math.exp %213 : vector<2x32xf32>
    %cst_59 = arith.constant 1.000000e+00 : f32
    %215 = vector.broadcast %cst_59 : f32 to vector<2x32xf32>
    %216 = arith.addf %215, %214 : vector<2x32xf32>
    %217 = arith.divf %215, %216 : vector<2x32xf32>
    %218 = vector.extract_strided_slice %205 {offsets = [0, 256], sizes = [2, 32], strides = [1, 1]} : vector<2x512xf32> to vector<2x32xf32>
    %219 = math.tanh %218 : vector<2x32xf32>
    %220 = vector.extract_strided_slice %205 {offsets = [0, 384], sizes = [2, 32], strides = [1, 1]} : vector<2x512xf32> to vector<2x32xf32>
    %221 = arith.negf %220 : vector<2x32xf32>
    %222 = math.exp %221 : vector<2x32xf32>
    %cst_60 = arith.constant 1.000000e+00 : f32
    %223 = vector.broadcast %cst_60 : f32 to vector<2x32xf32>
    %224 = arith.addf %223, %222 : vector<2x32xf32>
    %225 = arith.divf %223, %224 : vector<2x32xf32>
    %226 = arith.mulf %217, %165 : vector<2x32xf32>
    %227 = arith.mulf %211, %219 : vector<2x32xf32>
    %228 = arith.addf %226, %227 : vector<2x32xf32>
    %229 = math.tanh %228 : vector<2x32xf32>
    %230 = arith.mulf %225, %229 : vector<2x32xf32>
    %231 = tpu.concatenate %230, %196 in 1 : vector<2x32xf32>, vector<2x32xf32> -> vector<2x64xf32>
    %cst_61 = arith.constant dense<0.000000e+00> : vector<2x512xf32>
    %232 = tpu.matmul %231, %4, %cst_61 {dimension_numbers = #tpu.dot_dimension_numbers<[1], [0], [0], [1], [0, 0, 1, 1], [], []>} : vector<2x64xf32>, vector<64x512xf32>, vector<2x512xf32> -> vector<2x512xf32>
    %233 = vector.broadcast %6 : vector<1x512xf32> to vector<2x512xf32>
    %234 = arith.addf %232, %233 : vector<2x512xf32>
    %235 = vector.extract_strided_slice %234 {offsets = [0, 0], sizes = [2, 32], strides = [1, 1]} : vector<2x512xf32> to vector<2x32xf32>
    %236 = arith.negf %235 : vector<2x32xf32>
    %237 = math.exp %236 : vector<2x32xf32>
    %cst_62 = arith.constant 1.000000e+00 : f32
    %238 = vector.broadcast %cst_62 : f32 to vector<2x32xf32>
    %239 = arith.addf %238, %237 : vector<2x32xf32>
    %240 = arith.divf %238, %239 : vector<2x32xf32>
    %241 = vector.extract_strided_slice %234 {offsets = [0, 128], sizes = [2, 32], strides = [1, 1]} : vector<2x512xf32> to vector<2x32xf32>
    %242 = arith.negf %241 : vector<2x32xf32>
    %243 = math.exp %242 : vector<2x32xf32>
    %cst_63 = arith.constant 1.000000e+00 : f32
    %244 = vector.broadcast %cst_63 : f32 to vector<2x32xf32>
    %245 = arith.addf %244, %243 : vector<2x32xf32>
    %246 = arith.divf %244, %245 : vector<2x32xf32>
    %247 = vector.extract_strided_slice %234 {offsets = [0, 256], sizes = [2, 32], strides = [1, 1]} : vector<2x512xf32> to vector<2x32xf32>
    %248 = math.tanh %247 : vector<2x32xf32>
    %249 = vector.extract_strided_slice %234 {offsets = [0, 384], sizes = [2, 32], strides = [1, 1]} : vector<2x512xf32> to vector<2x32xf32>
    %250 = arith.negf %249 : vector<2x32xf32>
    %251 = math.exp %250 : vector<2x32xf32>
    %cst_64 = arith.constant 1.000000e+00 : f32
    %252 = vector.broadcast %cst_64 : f32 to vector<2x32xf32>
    %253 = arith.addf %252, %251 : vector<2x32xf32>
    %254 = arith.divf %252, %253 : vector<2x32xf32>
    %255 = arith.mulf %246, %194 : vector<2x32xf32>
    %256 = arith.mulf %240, %248 : vector<2x32xf32>
    %257 = arith.addf %255, %256 : vector<2x32xf32>
    %258 = math.tanh %257 : vector<2x32xf32>
    %259 = arith.mulf %254, %258 : vector<2x32xf32>
    %c0_65 = arith.constant 0 : index
    %c3_66 = arith.constant 3 : index
    %c0_67 = arith.constant 0 : index
    %260 = vector.load %arg7[%c0_65, %c3_66, %c0_67] : memref<2x8x32xf32, #tpu.memory_space<vmem>>, vector<2x1x32xf32>
    %261 = vector.shape_cast %260 : vector<2x1x32xf32> to vector<2x32xf32>
    %262 = vector.shape_cast %259 : vector<2x32xf32> to vector<2x1x32xf32>
    tpu.vector_store %arg7[%c0_65, %c3_66, %c0_67], %262 {strides = array<i32>} : memref<2x8x32xf32, #tpu.memory_space<vmem>>, vector<2x1x32xf32>,
    %c0_68 = arith.constant 0 : index
    %c4 = arith.constant 4 : index
    %c0_69 = arith.constant 0 : index
    %263 = vector.load %arg2[%c0_68, %c4, %c0_69] : memref<2x8x32xf32, #tpu.memory_space<vmem>>, vector<2x1x32xf32>
    %264 = vector.shape_cast %263 : vector<2x1x32xf32> to vector<2x32xf32>
    %265 = tpu.concatenate %264, %230 in 1 : vector<2x32xf32>, vector<2x32xf32> -> vector<2x64xf32>
    %cst_70 = arith.constant dense<0.000000e+00> : vector<2x512xf32>
    %266 = tpu.matmul %265, %3, %cst_70 {dimension_numbers = #tpu.dot_dimension_numbers<[1], [0], [0], [1], [0, 0, 1, 1], [], []>} : vector<2x64xf32>, vector<64x512xf32>, vector<2x512xf32> -> vector<2x512xf32>
    %267 = vector.broadcast %5 : vector<1x512xf32> to vector<2x512xf32>
    %268 = arith.addf %266, %267 : vector<2x512xf32>
    %269 = vector.extract_strided_slice %268 {offsets = [0, 0], sizes = [2, 32], strides = [1, 1]} : vector<2x512xf32> to vector<2x32xf32>
    %270 = arith.negf %269 : vector<2x32xf32>
    %271 = math.exp %270 : vector<2x32xf32>
    %cst_71 = arith.constant 1.000000e+00 : f32
    %272 = vector.broadcast %cst_71 : f32 to vector<2x32xf32>
    %273 = arith.addf %272, %271 : vector<2x32xf32>
    %274 = arith.divf %272, %273 : vector<2x32xf32>
    %275 = vector.extract_strided_slice %268 {offsets = [0, 128], sizes = [2, 32], strides = [1, 1]} : vector<2x512xf32> to vector<2x32xf32>
    %276 = arith.negf %275 : vector<2x32xf32>
    %277 = math.exp %276 : vector<2x32xf32>
    %cst_72 = arith.constant 1.000000e+00 : f32
    %278 = vector.broadcast %cst_72 : f32 to vector<2x32xf32>
    %279 = arith.addf %278, %277 : vector<2x32xf32>
    %280 = arith.divf %278, %279 : vector<2x32xf32>
    %281 = vector.extract_strided_slice %268 {offsets = [0, 256], sizes = [2, 32], strides = [1, 1]} : vector<2x512xf32> to vector<2x32xf32>
    %282 = math.tanh %281 : vector<2x32xf32>
    %283 = vector.extract_strided_slice %268 {offsets = [0, 384], sizes = [2, 32], strides = [1, 1]} : vector<2x512xf32> to vector<2x32xf32>
    %284 = arith.negf %283 : vector<2x32xf32>
    %285 = math.exp %284 : vector<2x32xf32>
    %cst_73 = arith.constant 1.000000e+00 : f32
    %286 = vector.broadcast %cst_73 : f32 to vector<2x32xf32>
    %287 = arith.addf %286, %285 : vector<2x32xf32>
    %288 = arith.divf %286, %287 : vector<2x32xf32>
    %289 = arith.mulf %280, %228 : vector<2x32xf32>
    %290 = arith.mulf %274, %282 : vector<2x32xf32>
    %291 = arith.addf %289, %290 : vector<2x32xf32>
    %292 = math.tanh %291 : vector<2x32xf32>
    %293 = arith.mulf %288, %292 : vector<2x32xf32>
    %294 = tpu.concatenate %293, %259 in 1 : vector<2x32xf32>, vector<2x32xf32> -> vector<2x64xf32>
    %cst_74 = arith.constant dense<0.000000e+00> : vector<2x512xf32>
    %295 = tpu.matmul %294, %4, %cst_74 {dimension_numbers = #tpu.dot_dimension_numbers<[1], [0], [0], [1], [0, 0, 1, 1], [], []>} : vector<2x64xf32>, vector<64x512xf32>, vector<2x512xf32> -> vector<2x512xf32>
    %296 = vector.broadcast %6 : vector<1x512xf32> to vector<2x512xf32>
    %297 = arith.addf %295, %296 : vector<2x512xf32>
    %298 = vector.extract_strided_slice %297 {offsets = [0, 0], sizes = [2, 32], strides = [1, 1]} : vector<2x512xf32> to vector<2x32xf32>
    %299 = arith.negf %298 : vector<2x32xf32>
    %300 = math.exp %299 : vector<2x32xf32>
    %cst_75 = arith.constant 1.000000e+00 : f32
    %301 = vector.broadcast %cst_75 : f32 to vector<2x32xf32>
    %302 = arith.addf %301, %300 : vector<2x32xf32>
    %303 = arith.divf %301, %302 : vector<2x32xf32>
    %304 = vector.extract_strided_slice %297 {offsets = [0, 128], sizes = [2, 32], strides = [1, 1]} : vector<2x512xf32> to vector<2x32xf32>
    %305 = arith.negf %304 : vector<2x32xf32>
    %306 = math.exp %305 : vector<2x32xf32>
    %cst_76 = arith.constant 1.000000e+00 : f32
    %307 = vector.broadcast %cst_76 : f32 to vector<2x32xf32>
    %308 = arith.addf %307, %306 : vector<2x32xf32>
    %309 = arith.divf %307, %308 : vector<2x32xf32>
    %310 = vector.extract_strided_slice %297 {offsets = [0, 256], sizes = [2, 32], strides = [1, 1]} : vector<2x512xf32> to vector<2x32xf32>
    %311 = math.tanh %310 : vector<2x32xf32>
    %312 = vector.extract_strided_slice %297 {offsets = [0, 384], sizes = [2, 32], strides = [1, 1]} : vector<2x512xf32> to vector<2x32xf32>
    %313 = arith.negf %312 : vector<2x32xf32>
    %314 = math.exp %313 : vector<2x32xf32>
    %cst_77 = arith.constant 1.000000e+00 : f32
    %315 = vector.broadcast %cst_77 : f32 to vector<2x32xf32>
    %316 = arith.addf %315, %314 : vector<2x32xf32>
    %317 = arith.divf %315, %316 : vector<2x32xf32>
    %318 = arith.mulf %309, %257 : vector<2x32xf32>
    %319 = arith.mulf %303, %311 : vector<2x32xf32>
    %320 = arith.addf %318, %319 : vector<2x32xf32>
    %321 = math.tanh %320 : vector<2x32xf32>
    %322 = arith.mulf %317, %321 : vector<2x32xf32>
    %c0_78 = arith.constant 0 : index
    %c4_79 = arith.constant 4 : index
    %c0_80 = arith.constant 0 : index
    %323 = vector.load %arg7[%c0_78, %c4_79, %c0_80] : memref<2x8x32xf32, #tpu.memory_space<vmem>>, vector<2x1x32xf32>
    %324 = vector.shape_cast %323 : vector<2x1x32xf32> to vector<2x32xf32>
    %325 = vector.shape_cast %322 : vector<2x32xf32> to vector<2x1x32xf32>
    tpu.vector_store %arg7[%c0_78, %c4_79, %c0_80], %325 {strides = array<i32>} : memref<2x8x32xf32, #tpu.memory_space<vmem>>, vector<2x1x32xf32>,
    %c0_81 = arith.constant 0 : index
    %c5 = arith.constant 5 : index
    %c0_82 = arith.constant 0 : index
    %326 = vector.load %arg2[%c0_81, %c5, %c0_82] : memref<2x8x32xf32, #tpu.memory_space<vmem>>, vector<2x1x32xf32>
    %327 = vector.shape_cast %326 : vector<2x1x32xf32> to vector<2x32xf32>
    %328 = tpu.concatenate %327, %293 in 1 : vector<2x32xf32>, vector<2x32xf32> -> vector<2x64xf32>
    %cst_83 = arith.constant dense<0.000000e+00> : vector<2x512xf32>
    %329 = tpu.matmul %328, %3, %cst_83 {dimension_numbers = #tpu.dot_dimension_numbers<[1], [0], [0], [1], [0, 0, 1, 1], [], []>} : vector<2x64xf32>, vector<64x512xf32>, vector<2x512xf32> -> vector<2x512xf32>
    %330 = vector.broadcast %5 : vector<1x512xf32> to vector<2x512xf32>
    %331 = arith.addf %329, %330 : vector<2x512xf32>
    %332 = vector.extract_strided_slice %331 {offsets = [0, 0], sizes = [2, 32], strides = [1, 1]} : vector<2x512xf32> to vector<2x32xf32>
    %333 = arith.negf %332 : vector<2x32xf32>
    %334 = math.exp %333 : vector<2x32xf32>
    %cst_84 = arith.constant 1.000000e+00 : f32
    %335 = vector.broadcast %cst_84 : f32 to vector<2x32xf32>
    %336 = arith.addf %335, %334 : vector<2x32xf32>
    %337 = arith.divf %335, %336 : vector<2x32xf32>
    %338 = vector.extract_strided_slice %331 {offsets = [0, 128], sizes = [2, 32], strides = [1, 1]} : vector<2x512xf32> to vector<2x32xf32>
    %339 = arith.negf %338 : vector<2x32xf32>
    %340 = math.exp %339 : vector<2x32xf32>
    %cst_85 = arith.constant 1.000000e+00 : f32
    %341 = vector.broadcast %cst_85 : f32 to vector<2x32xf32>
    %342 = arith.addf %341, %340 : vector<2x32xf32>
    %343 = arith.divf %341, %342 : vector<2x32xf32>
    %344 = vector.extract_strided_slice %331 {offsets = [0, 256], sizes = [2, 32], strides = [1, 1]} : vector<2x512xf32> to vector<2x32xf32>
    %345 = math.tanh %344 : vector<2x32xf32>
    %346 = vector.extract_strided_slice %331 {offsets = [0, 384], sizes = [2, 32], strides = [1, 1]} : vector<2x512xf32> to vector<2x32xf32>
    %347 = arith.negf %346 : vector<2x32xf32>
    %348 = math.exp %347 : vector<2x32xf32>
    %cst_86 = arith.constant 1.000000e+00 : f32
    %349 = vector.broadcast %cst_86 : f32 to vector<2x32xf32>
    %350 = arith.addf %349, %348 : vector<2x32xf32>
    %351 = arith.divf %349, %350 : vector<2x32xf32>
    %352 = arith.mulf %343, %291 : vector<2x32xf32>
    %353 = arith.mulf %337, %345 : vector<2x32xf32>
    %354 = arith.addf %352, %353 : vector<2x32xf32>
    %355 = math.tanh %354 : vector<2x32xf32>
    %356 = arith.mulf %351, %355 : vector<2x32xf32>
    %357 = tpu.concatenate %356, %322 in 1 : vector<2x32xf32>, vector<2x32xf32> -> vector<2x64xf32>
    %cst_87 = arith.constant dense<0.000000e+00> : vector<2x512xf32>
    %358 = tpu.matmul %357, %4, %cst_87 {dimension_numbers = #tpu.dot_dimension_numbers<[1], [0], [0], [1], [0, 0, 1, 1], [], []>} : vector<2x64xf32>, vector<64x512xf32>, vector<2x512xf32> -> vector<2x512xf32>
    %359 = vector.broadcast %6 : vector<1x512xf32> to vector<2x512xf32>
    %360 = arith.addf %358, %359 : vector<2x512xf32>
    %361 = vector.extract_strided_slice %360 {offsets = [0, 0], sizes = [2, 32], strides = [1, 1]} : vector<2x512xf32> to vector<2x32xf32>
    %362 = arith.negf %361 : vector<2x32xf32>
    %363 = math.exp %362 : vector<2x32xf32>
    %cst_88 = arith.constant 1.000000e+00 : f32
    %364 = vector.broadcast %cst_88 : f32 to vector<2x32xf32>
    %365 = arith.addf %364, %363 : vector<2x32xf32>
    %366 = arith.divf %364, %365 : vector<2x32xf32>
    %367 = vector.extract_strided_slice %360 {offsets = [0, 128], sizes = [2, 32], strides = [1, 1]} : vector<2x512xf32> to vector<2x32xf32>
    %368 = arith.negf %367 : vector<2x32xf32>
    %369 = math.exp %368 : vector<2x32xf32>
    %cst_89 = arith.constant 1.000000e+00 : f32
    %370 = vector.broadcast %cst_89 : f32 to vector<2x32xf32>
    %371 = arith.addf %370, %369 : vector<2x32xf32>
    %372 = arith.divf %370, %371 : vector<2x32xf32>
    %373 = vector.extract_strided_slice %360 {offsets = [0, 256], sizes = [2, 32], strides = [1, 1]} : vector<2x512xf32> to vector<2x32xf32>
    %374 = math.tanh %373 : vector<2x32xf32>
    %375 = vector.extract_strided_slice %360 {offsets = [0, 384], sizes = [2, 32], strides = [1, 1]} : vector<2x512xf32> to vector<2x32xf32>
    %376 = arith.negf %375 : vector<2x32xf32>
    %377 = math.exp %376 : vector<2x32xf32>
    %cst_90 = arith.constant 1.000000e+00 : f32
    %378 = vector.broadcast %cst_90 : f32 to vector<2x32xf32>
    %379 = arith.addf %378, %377 : vector<2x32xf32>
    %380 = arith.divf %378, %379 : vector<2x32xf32>
    %381 = arith.mulf %372, %320 : vector<2x32xf32>
    %382 = arith.mulf %366, %374 : vector<2x32xf32>
    %383 = arith.addf %381, %382 : vector<2x32xf32>
    %384 = math.tanh %383 : vector<2x32xf32>
    %385 = arith.mulf %380, %384 : vector<2x32xf32>
    %c0_91 = arith.constant 0 : index
    %c5_92 = arith.constant 5 : index
    %c0_93 = arith.constant 0 : index
    %386 = vector.load %arg7[%c0_91, %c5_92, %c0_93] : memref<2x8x32xf32, #tpu.memory_space<vmem>>, vector<2x1x32xf32>
    %387 = vector.shape_cast %386 : vector<2x1x32xf32> to vector<2x32xf32>
    %388 = vector.shape_cast %385 : vector<2x32xf32> to vector<2x1x32xf32>
    tpu.vector_store %arg7[%c0_91, %c5_92, %c0_93], %388 {strides = array<i32>} : memref<2x8x32xf32, #tpu.memory_space<vmem>>, vector<2x1x32xf32>,
    %c0_94 = arith.constant 0 : index
    %c6 = arith.constant 6 : index
    %c0_95 = arith.constant 0 : index
    %389 = vector.load %arg2[%c0_94, %c6, %c0_95] : memref<2x8x32xf32, #tpu.memory_space<vmem>>, vector<2x1x32xf32>
    %390 = vector.shape_cast %389 : vector<2x1x32xf32> to vector<2x32xf32>
    %391 = tpu.concatenate %390, %356 in 1 : vector<2x32xf32>, vector<2x32xf32> -> vector<2x64xf32>
    %cst_96 = arith.constant dense<0.000000e+00> : vector<2x512xf32>
    %392 = tpu.matmul %391, %3, %cst_96 {dimension_numbers = #tpu.dot_dimension_numbers<[1], [0], [0], [1], [0, 0, 1, 1], [], []>} : vector<2x64xf32>, vector<64x512xf32>, vector<2x512xf32> -> vector<2x512xf32>
    %393 = vector.broadcast %5 : vector<1x512xf32> to vector<2x512xf32>
    %394 = arith.addf %392, %393 : vector<2x512xf32>
    %395 = vector.extract_strided_slice %394 {offsets = [0, 0], sizes = [2, 32], strides = [1, 1]} : vector<2x512xf32> to vector<2x32xf32>
    %396 = arith.negf %395 : vector<2x32xf32>
    %397 = math.exp %396 : vector<2x32xf32>
    %cst_97 = arith.constant 1.000000e+00 : f32
    %398 = vector.broadcast %cst_97 : f32 to vector<2x32xf32>
    %399 = arith.addf %398, %397 : vector<2x32xf32>
    %400 = arith.divf %398, %399 : vector<2x32xf32>
    %401 = vector.extract_strided_slice %394 {offsets = [0, 128], sizes = [2, 32], strides = [1, 1]} : vector<2x512xf32> to vector<2x32xf32>
    %402 = arith.negf %401 : vector<2x32xf32>
    %403 = math.exp %402 : vector<2x32xf32>
    %cst_98 = arith.constant 1.000000e+00 : f32
    %404 = vector.broadcast %cst_98 : f32 to vector<2x32xf32>
    %405 = arith.addf %404, %403 : vector<2x32xf32>
    %406 = arith.divf %404, %405 : vector<2x32xf32>
    %407 = vector.extract_strided_slice %394 {offsets = [0, 256], sizes = [2, 32], strides = [1, 1]} : vector<2x512xf32> to vector<2x32xf32>
    %408 = math.tanh %407 : vector<2x32xf32>
    %409 = vector.extract_strided_slice %394 {offsets = [0, 384], sizes = [2, 32], strides = [1, 1]} : vector<2x512xf32> to vector<2x32xf32>
    %410 = arith.negf %409 : vector<2x32xf32>
    %411 = math.exp %410 : vector<2x32xf32>
    %cst_99 = arith.constant 1.000000e+00 : f32
    %412 = vector.broadcast %cst_99 : f32 to vector<2x32xf32>
    %413 = arith.addf %412, %411 : vector<2x32xf32>
    %414 = arith.divf %412, %413 : vector<2x32xf32>
    %415 = arith.mulf %406, %354 : vector<2x32xf32>
    %416 = arith.mulf %400, %408 : vector<2x32xf32>
    %417 = arith.addf %415, %416 : vector<2x32xf32>
    %418 = math.tanh %417 : vector<2x32xf32>
    %419 = arith.mulf %414, %418 : vector<2x32xf32>
    %420 = tpu.concatenate %419, %385 in 1 : vector<2x32xf32>, vector<2x32xf32> -> vector<2x64xf32>
    %cst_100 = arith.constant dense<0.000000e+00> : vector<2x512xf32>
    %421 = tpu.matmul %420, %4, %cst_100 {dimension_numbers = #tpu.dot_dimension_numbers<[1], [0], [0], [1], [0, 0, 1, 1], [], []>} : vector<2x64xf32>, vector<64x512xf32>, vector<2x512xf32> -> vector<2x512xf32>
    %422 = vector.broadcast %6 : vector<1x512xf32> to vector<2x512xf32>
    %423 = arith.addf %421, %422 : vector<2x512xf32>
    %424 = vector.extract_strided_slice %423 {offsets = [0, 0], sizes = [2, 32], strides = [1, 1]} : vector<2x512xf32> to vector<2x32xf32>
    %425 = arith.negf %424 : vector<2x32xf32>
    %426 = math.exp %425 : vector<2x32xf32>
    %cst_101 = arith.constant 1.000000e+00 : f32
    %427 = vector.broadcast %cst_101 : f32 to vector<2x32xf32>
    %428 = arith.addf %427, %426 : vector<2x32xf32>
    %429 = arith.divf %427, %428 : vector<2x32xf32>
    %430 = vector.extract_strided_slice %423 {offsets = [0, 128], sizes = [2, 32], strides = [1, 1]} : vector<2x512xf32> to vector<2x32xf32>
    %431 = arith.negf %430 : vector<2x32xf32>
    %432 = math.exp %431 : vector<2x32xf32>
    %cst_102 = arith.constant 1.000000e+00 : f32
    %433 = vector.broadcast %cst_102 : f32 to vector<2x32xf32>
    %434 = arith.addf %433, %432 : vector<2x32xf32>
    %435 = arith.divf %433, %434 : vector<2x32xf32>
    %436 = vector.extract_strided_slice %423 {offsets = [0, 256], sizes = [2, 32], strides = [1, 1]} : vector<2x512xf32> to vector<2x32xf32>
    %437 = math.tanh %436 : vector<2x32xf32>
    %438 = vector.extract_strided_slice %423 {offsets = [0, 384], sizes = [2, 32], strides = [1, 1]} : vector<2x512xf32> to vector<2x32xf32>
    %439 = arith.negf %438 : vector<2x32xf32>
    %440 = math.exp %439 : vector<2x32xf32>
    %cst_103 = arith.constant 1.000000e+00 : f32
    %441 = vector.broadcast %cst_103 : f32 to vector<2x32xf32>
    %442 = arith.addf %441, %440 : vector<2x32xf32>
    %443 = arith.divf %441, %442 : vector<2x32xf32>
    %444 = arith.mulf %435, %383 : vector<2x32xf32>
    %445 = arith.mulf %429, %437 : vector<2x32xf32>
    %446 = arith.addf %444, %445 : vector<2x32xf32>
    %447 = math.tanh %446 : vector<2x32xf32>
    %448 = arith.mulf %443, %447 : vector<2x32xf32>
    %c0_104 = arith.constant 0 : index
    %c6_105 = arith.constant 6 : index
    %c0_106 = arith.constant 0 : index
    %449 = vector.load %arg7[%c0_104, %c6_105, %c0_106] : memref<2x8x32xf32, #tpu.memory_space<vmem>>, vector<2x1x32xf32>
    %450 = vector.shape_cast %449 : vector<2x1x32xf32> to vector<2x32xf32>
    %451 = vector.shape_cast %448 : vector<2x32xf32> to vector<2x1x32xf32>
    tpu.vector_store %arg7[%c0_104, %c6_105, %c0_106], %451 {strides = array<i32>} : memref<2x8x32xf32, #tpu.memory_space<vmem>>, vector<2x1x32xf32>,
    %c0_107 = arith.constant 0 : index
    %c7 = arith.constant 7 : index
    %c0_108 = arith.constant 0 : index
    %452 = vector.load %arg2[%c0_107, %c7, %c0_108] : memref<2x8x32xf32, #tpu.memory_space<vmem>>, vector<2x1x32xf32>
    %453 = vector.shape_cast %452 : vector<2x1x32xf32> to vector<2x32xf32>
    %454 = tpu.concatenate %453, %419 in 1 : vector<2x32xf32>, vector<2x32xf32> -> vector<2x64xf32>
    %cst_109 = arith.constant dense<0.000000e+00> : vector<2x512xf32>
    %455 = tpu.matmul %454, %3, %cst_109 {dimension_numbers = #tpu.dot_dimension_numbers<[1], [0], [0], [1], [0, 0, 1, 1], [], []>} : vector<2x64xf32>, vector<64x512xf32>, vector<2x512xf32> -> vector<2x512xf32>
    %456 = vector.broadcast %5 : vector<1x512xf32> to vector<2x512xf32>
    %457 = arith.addf %455, %456 : vector<2x512xf32>
    %458 = vector.extract_strided_slice %457 {offsets = [0, 0], sizes = [2, 32], strides = [1, 1]} : vector<2x512xf32> to vector<2x32xf32>
    %459 = arith.negf %458 : vector<2x32xf32>
    %460 = math.exp %459 : vector<2x32xf32>
    %cst_110 = arith.constant 1.000000e+00 : f32
    %461 = vector.broadcast %cst_110 : f32 to vector<2x32xf32>
    %462 = arith.addf %461, %460 : vector<2x32xf32>
    %463 = arith.divf %461, %462 : vector<2x32xf32>
    %464 = vector.extract_strided_slice %457 {offsets = [0, 128], sizes = [2, 32], strides = [1, 1]} : vector<2x512xf32> to vector<2x32xf32>
    %465 = arith.negf %464 : vector<2x32xf32>
    %466 = math.exp %465 : vector<2x32xf32>
    %cst_111 = arith.constant 1.000000e+00 : f32
    %467 = vector.broadcast %cst_111 : f32 to vector<2x32xf32>
    %468 = arith.addf %467, %466 : vector<2x32xf32>
    %469 = arith.divf %467, %468 : vector<2x32xf32>
    %470 = vector.extract_strided_slice %457 {offsets = [0, 256], sizes = [2, 32], strides = [1, 1]} : vector<2x512xf32> to vector<2x32xf32>
    %471 = math.tanh %470 : vector<2x32xf32>
    %472 = vector.extract_strided_slice %457 {offsets = [0, 384], sizes = [2, 32], strides = [1, 1]} : vector<2x512xf32> to vector<2x32xf32>
    %473 = arith.negf %472 : vector<2x32xf32>
    %474 = math.exp %473 : vector<2x32xf32>
    %cst_112 = arith.constant 1.000000e+00 : f32
    %475 = vector.broadcast %cst_112 : f32 to vector<2x32xf32>
    %476 = arith.addf %475, %474 : vector<2x32xf32>
    %477 = arith.divf %475, %476 : vector<2x32xf32>
    %478 = arith.mulf %469, %417 : vector<2x32xf32>
    %479 = arith.mulf %463, %471 : vector<2x32xf32>
    %480 = arith.addf %478, %479 : vector<2x32xf32>
    %481 = math.tanh %480 : vector<2x32xf32>
    %482 = arith.mulf %477, %481 : vector<2x32xf32>
    %483 = tpu.concatenate %482, %448 in 1 : vector<2x32xf32>, vector<2x32xf32> -> vector<2x64xf32>
    %cst_113 = arith.constant dense<0.000000e+00> : vector<2x512xf32>
    %484 = tpu.matmul %483, %4, %cst_113 {dimension_numbers = #tpu.dot_dimension_numbers<[1], [0], [0], [1], [0, 0, 1, 1], [], []>} : vector<2x64xf32>, vector<64x512xf32>, vector<2x512xf32> -> vector<2x512xf32>
    %485 = vector.broadcast %6 : vector<1x512xf32> to vector<2x512xf32>
    %486 = arith.addf %484, %485 : vector<2x512xf32>
    %487 = vector.extract_strided_slice %486 {offsets = [0, 0], sizes = [2, 32], strides = [1, 1]} : vector<2x512xf32> to vector<2x32xf32>
    %488 = arith.negf %487 : vector<2x32xf32>
    %489 = math.exp %488 : vector<2x32xf32>
    %cst_114 = arith.constant 1.000000e+00 : f32
    %490 = vector.broadcast %cst_114 : f32 to vector<2x32xf32>
    %491 = arith.addf %490, %489 : vector<2x32xf32>
    %492 = arith.divf %490, %491 : vector<2x32xf32>
    %493 = vector.extract_strided_slice %486 {offsets = [0, 128], sizes = [2, 32], strides = [1, 1]} : vector<2x512xf32> to vector<2x32xf32>
    %494 = arith.negf %493 : vector<2x32xf32>
    %495 = math.exp %494 : vector<2x32xf32>
    %cst_115 = arith.constant 1.000000e+00 : f32
    %496 = vector.broadcast %cst_115 : f32 to vector<2x32xf32>
    %497 = arith.addf %496, %495 : vector<2x32xf32>
    %498 = arith.divf %496, %497 : vector<2x32xf32>
    %499 = vector.extract_strided_slice %486 {offsets = [0, 256], sizes = [2, 32], strides = [1, 1]} : vector<2x512xf32> to vector<2x32xf32>
    %500 = math.tanh %499 : vector<2x32xf32>
    %501 = vector.extract_strided_slice %486 {offsets = [0, 384], sizes = [2, 32], strides = [1, 1]} : vector<2x512xf32> to vector<2x32xf32>
    %502 = arith.negf %501 : vector<2x32xf32>
    %503 = math.exp %502 : vector<2x32xf32>
    %cst_116 = arith.constant 1.000000e+00 : f32
    %504 = vector.broadcast %cst_116 : f32 to vector<2x32xf32>
    %505 = arith.addf %504, %503 : vector<2x32xf32>
    %506 = arith.divf %504, %505 : vector<2x32xf32>
    %507 = arith.mulf %498, %446 : vector<2x32xf32>
    %508 = arith.mulf %492, %500 : vector<2x32xf32>
    %509 = arith.addf %507, %508 : vector<2x32xf32>
    %510 = math.tanh %509 : vector<2x32xf32>
    %511 = arith.mulf %506, %510 : vector<2x32xf32>
    %c0_117 = arith.constant 0 : index
    %c7_118 = arith.constant 7 : index
    %c0_119 = arith.constant 0 : index
    %512 = vector.load %arg7[%c0_117, %c7_118, %c0_119] : memref<2x8x32xf32, #tpu.memory_space<vmem>>, vector<2x1x32xf32>
    %513 = vector.shape_cast %512 : vector<2x1x32xf32> to vector<2x32xf32>
    %514 = vector.shape_cast %511 : vector<2x32xf32> to vector<2x1x32xf32>
    tpu.vector_store %arg7[%c0_117, %c7_118, %c0_119], %514 {strides = array<i32>} : memref<2x8x32xf32, #tpu.memory_space<vmem>>, vector<2x1x32xf32>,
    %c0_120 = arith.constant 0 : index
    %c0_121 = arith.constant 0 : index
    %515 = vector.load %arg10[%c0_120, %c0_121] : memref<2x32xf32, #tpu.memory_space<vmem>>, vector<2x32xf32>
    tpu.vector_store %arg10[%c0_120, %c0_121], %482 {strides = array<i32>} : memref<2x32xf32, #tpu.memory_space<vmem>>, vector<2x32xf32>,
    %c0_122 = arith.constant 0 : index
    %c0_123 = arith.constant 0 : index
    %516 = vector.load %arg11[%c0_122, %c0_123] : memref<2x32xf32, #tpu.memory_space<vmem>>, vector<2x32xf32>
    tpu.vector_store %arg11[%c0_122, %c0_123], %480 {strides = array<i32>} : memref<2x32xf32, #tpu.memory_space<vmem>>, vector<2x32xf32>,
    %c0_124 = arith.constant 0 : index
    %c0_125 = arith.constant 0 : index
    %517 = vector.load %arg12[%c0_124, %c0_125] : memref<2x32xf32, #tpu.memory_space<vmem>>, vector<2x32xf32>
    tpu.vector_store %arg12[%c0_124, %c0_125], %511 {strides = array<i32>} : memref<2x32xf32, #tpu.memory_space<vmem>>, vector<2x32xf32>,
    %c0_126 = arith.constant 0 : index
    %c0_127 = arith.constant 0 : index
    %518 = vector.load %arg13[%c0_126, %c0_127] : memref<2x32xf32, #tpu.memory_space<vmem>>, vector<2x32xf32>
    tpu.vector_store %arg13[%c0_126, %c0_127], %509 {strides = array<i32>} : memref<2x32xf32, #tpu.memory_space<vmem>>, vector<2x32xf32>,
    return
  }
  func.func @transform_0(%arg0: i32, %arg1: i32) -> (i32, i32, i32) {
    %c0_i32 = arith.constant 0 : i32
    %c0_i32_0 = arith.constant 0 : i32
    return %arg0, %arg1, %c0_i32 : i32, i32, i32
  }
  func.func @transform_2(%arg0: i32, %arg1: i32) -> (i32, i32) {
    %c0_i32 = arith.constant 0 : i32
    %c0_i32_0 = arith.constant 0 : i32
    %c0_i32_1 = arith.constant 0 : i32
    return %c0_i32, %c0_i32_0 : i32, i32
  }
  func.func @transform_4(%arg0: i32, %arg1: i32) -> (i32, i32) {
    %c0_i32 = arith.constant 0 : i32
    %c0_i32_0 = arith.constant 0 : i32
    %c0_i32_1 = arith.constant 0 : i32
    return %c0_i32, %c0_i32_0 : i32, i32
  }
  func.func @transform_5(%arg0: i32, %arg1: i32) -> (i32, i32, i32) {
    %c0_i32 = arith.constant 0 : i32
    %c0_i32_0 = arith.constant 0 : i32
    return %arg0, %arg1, %c0_i32 : i32, i32, i32
  }
}

</mosaic_0001>

<bundles_post_ra>
// kernel: temporal_context_analyzer.1
= control target key start
LH: loop header
LB: loop body
LE: loop exit
PB: predicated region body
PF: predicated region fallthrough
CT: control target
= control target key end

     0   :  { %10 = vsyncpa [#allocation10], 0  ;;  %s4649_s0 = inlined_call_operand.hbm [shape: f32[2,8,32], index: 0, kind: input, shape index: {}]   ;;  %s4650_s1 = inlined_call_operand.hbm [shape: f32[64,512], index: 1, kind: input, shape index: {}]   ;;  %s4651_s2 = inlined_call_operand.hbm [shape: f32[1,512], index: 2, kind: input, shape index: {}]   ;;  %s4652_s3 = inlined_call_operand.hbm [shape: f32[64,512], index: 3, kind: input, shape index: {}]   ;;  %s4653_s4 = inlined_call_operand.hbm [shape: f32[1,512], index: 4, kind: input, shape index: {}]   ;;  %s4654_s5 = inlined_call_operand.hbm [shape: f32[2,8,32], index: 5, kind: output, shape index: {}]  }
   0x1   :  { %11 = vsyncpa [#allocation13], 0  ;;  %s31_s20 = sshll.u32 %s4651_s2, 4  ;;  %s32_s20 = int_to_ptr.hbm [resolvable:$true] %s31_s20 }
   0x2   :  { %12 = vsyncpa [#allocation11], 0  ;;  %s3399_s21 = smov [#allocation12]   ;;  %s17_s25 = sshll.u32 %s4649_s0, 4  ;;  %s18_s25 = int_to_ptr.hbm [resolvable:$true] %s17_s25 }
   0x3   :  { %s33_s22 = sshll.u32 %s3399_s21, 4  ;;  %s3400_s26 = smov [#allocation9]   ;;  %s34_s22 = int_to_ptr.vmem [resolvable:$true] %s33_s22 }
   0x4   :  { %36 = dma.hbm_to_vmem [thread:$0]  %s32_s20, 64, %s34_s22, [#allocation13]  }
   0x5   :  { %s19_s27 = sshll.u32 %s3400_s26, 4  ;;  %s3401_s28 = smov 128   ;;  %s20_s27 = int_to_ptr.vmem [resolvable:$true] %s19_s27 }
   0x6   :  { %s3402_s29 = smov 8   ;;  %s42_s6 = sshll.u32 %s4653_s4, 4  ;;  %s43_s6 = int_to_ptr.hbm [resolvable:$true] %s42_s6 }
   0x7   :  { %25 = dma.hbm_to_vmem [thread:$0]  %s18_s25, 256, %s20_s27, [#allocation10], %s3401_s28, %s3401_s28, %s3402_s29  }
   0x8   :  { %s3403_s7 = smov [#allocation14]  }
   0x9   :  { %s44_s8 = sshll.u32 %s3403_s7, 4  ;;  %s45_s8 = int_to_ptr.vmem [resolvable:$true] %s44_s8 }
   0xa   :  { %47 = dma.hbm_to_vmem [thread:$0]  %s43_s6, 64, %s45_s8, [#allocation13]  }
   0xb   :  { %3389 = dma.done.wait [#allocation10], 256  }
   0xc   :  { %3390 = vsyncadd [#allocation10], 4294967040 }
   0xd   :  { %3391 = dma.done.wait [#allocation13], 128  }
   0xe   :  { %3392 = vsyncadd [#allocation13], 4294967168  ;;  %s71_s10 = sshll.u32 %s4650_s1, 4  ;;  %vm91_vm0 = vcmask 254976   ;;  %s3404_s11 = smov [#allocation2]   ;;  %v3405_v0 = vmov 0.0   ;;  %s72_s10 = int_to_ptr.hbm [resolvable:$true] %s71_s10 }
   0xf   :  { %s73_s12 = sshll.u32 %s3404_s11, 4  ;;  %92 = vst.msk [vmem:[#allocation4] sm:$0x3] %vm91_vm0, %v3405_v0  ;;  %s85_s14 = sshll.u32 %s4652_s3, 4  ;;  %s74_s12 = int_to_ptr.vmem [resolvable:$true] %s73_s12  ;;  %s86_s14 = int_to_ptr.hbm [resolvable:$true] %s85_s14 }
  0x10   :  { %93 = vst.msk [vmem:[#allocation5] sm:$0x3] %vm91_vm0, %v3405_v0  ;;  %76 = dma.hbm_to_vmem [thread:$0]  %s72_s10, 4096, %s74_s12, [#allocation8] }
  0x11   :  { %94 = vst.msk [vmem:[#allocation6] sm:$0x3] %vm91_vm0, %v3405_v0  ;;  %s3406_s1 = smov [#allocation3]  }
  0x12   :  { %95 = vst.msk [vmem:[#allocation7] sm:$0x3] %vm91_vm0, %v3405_v0  ;;  %s87_s15 = sshll.u32 %s3406_s1, 4  ;;  %s88_s15 = int_to_ptr.vmem [resolvable:$true] %s87_s15 }
  0x13   :  { %90 = dma.hbm_to_vmem [thread:$0]  %s86_s14, 4096, %s88_s15, [#allocation8 + $0x1] }
  0x14   :  { %3393 = dma.done.wait [#allocation8], 4096 }
  0x15   :  { %3394 = vsyncadd [#allocation8], 4294963200 }
  0x16   :  { %3395 = dma.done.wait [#allocation8 + $0x1], 4096 }
  0x17   :  { %3396 = vsyncadd [#allocation8 + $0x1], 4294963200  ;;  %v168_v1 = vld [vmem:[#allocation4] sm:$0x3]  ;;  %v3463_v3 = vld [vmem:[#allocation2 + $0xe8] sm:$0xff]  ;;  %s3407_s3 = smov 32  }
  0x18   :  { %v3461_v2 = vld [vmem:[#allocation2 + $0xe0] sm:$0xff]  ;;  %181 = vrot.lane.b32.xlu0 %v168_v1, %s3407_s3  ;;  %v3467_v4 = vld [vmem:[#allocation2 + $0xf0] sm:$0xff]  ;;  %v3469_v5 = vld [vmem:[#allocation2 + $0xf8] sm:$0xff]  ;;  %227 = vmatpush.msra.mxu1 %v3463_v3  ;;  %vm177_vm1 = vcmask 1041409   ;;  %vm184_vm2 = vcmask 261120   ;;  %vm195_vm3 = vcmask 523264  }
  0x19   :  { %4755 = vst [vmem:[#allocation27_spill] sm:$0xff] %v3461_v2  ;;  %207 = vmatpush.msra.mxu0 %v3461_v2  ;;  %v3471_v6 = vld [vmem:[#allocation2 + $0xc0] sm:$0xff]  ;;  %247 = vmatpush.msra.mxu2 %v3467_v4  ;;  %v3475_v7 = vld [vmem:[#allocation2 + $0xc8] sm:$0xff]  ;;  %v3477_v8 = vld [vmem:[#allocation2 + $0xd0] sm:$0xff]  ;;  %s3408_s16 = smov [#allocation15]   ;;  %s2710_s20 = sshll.u32 %s4654_s5, 4  ;;  %s2711_s20 = int_to_ptr.hbm [resolvable:$true] %s2710_s20 }
  0x1a   :  { %4756 = vst [vmem:[#allocation28_spill] sm:$0xff] %v3467_v4  ;;  %v3479_v9 = vld [vmem:[#allocation2 + $0xd8] sm:$0xff]  ;;  %267 = vmatpush.msra.mxu3 %v3469_v5  ;;  %v3483_v10 = vld [vmem:[#allocation2 + $0xa0] sm:$0xff]  ;;  %v3485_v11 = vld [vmem:[#allocation2 + $0xa8] sm:$0xff]  ;;  %228 = vmatpush.msra.mxu1 %v3475_v7  ;;  %s2708_s17 = sshll.u32 %s3408_s16, 4  ;;  %s2709_s17 = int_to_ptr.vmem [resolvable:$true] %s2708_s17 }
  0x1b   :  { %4757 = vst [vmem:[#allocation29_spill] sm:$0xff] %v3471_v6  ;;  %208 = vmatpush.msra.mxu0 %v3471_v6  ;;  %v3487_v12 = vld [vmem:[#allocation2 + $0xb0] sm:$0xff]  ;;  %248 = vmatpush.msra.mxu2 %v3477_v8  ;;  %v3491_v13 = vld [vmem:[#allocation2 + $0xb8] sm:$0xff]  ;;  %v3493_v14 = vld [vmem:[#allocation2 + $0x80] sm:$0xff] }
  0x1c   :  { %4758 = vst [vmem:[#allocation30_spill] sm:$0xff] %v3475_v7  ;;  %268 = vmatpush.msra.mxu3 %v3479_v9  ;;  %v3497_v15 = vld [vmem:[#allocation2 + $0x88] sm:$0xff]  ;;  %v3499_v16 = vld [vmem:[#allocation2 + $0x90] sm:$0xff]  ;;  %229 = vmatpush.msra.mxu1 %v3485_v11  ;;  %v3503_v17 = vld [vmem:[#allocation2 + $0x98] sm:$0xff] }
  0x1d   :  { %4759 = vst [vmem:[#allocation31_spill] sm:$0xff] %v3491_v13  ;;  %209 = vmatpush.msra.mxu0 %v3483_v10  ;;  %249 = vmatpush.msra.mxu2 %v3487_v12  ;;  %v3505_v18 = vld [vmem:[#allocation2 + $0x60] sm:$0xff]  ;;  %v3509_v19 = vld [vmem:[#allocation2 + $0x68] sm:$0xff]  ;;  %v3511_v20 = vld [vmem:[#allocation2 + $0x70] sm:$0xff] }
  0x1e   :  { %4760 = vst [vmem:[#allocation32_spill] sm:$0xff] %v3493_v14  ;;  %269 = vmatpush.msra.mxu3 %v3491_v13  ;;  %230 = vmatpush.msra.mxu1 %v3497_v15  ;;  %v3515_v21 = vld [vmem:[#allocation2 + $0x78] sm:$0xff]  ;;  %v3517_v22 = vld [vmem:[#allocation2 + $0x40] sm:$0xff]  ;;  %v3521_v23 = vld [vmem:[#allocation2 + $0x48] sm:$0xff] }
  0x1f   :  { %4761 = vst [vmem:[#allocation33_spill] sm:$0xff] %v3497_v15  ;;  %210 = vmatpush.msra.mxu0 %v3493_v14  ;;  %250 = vmatpush.msra.mxu2 %v3499_v16  ;;  %v3523_v24 = vld [vmem:[#allocation2 + $0x50] sm:$0xff]  ;;  %v3527_v25 = vld [vmem:[#allocation2 + $0x58] sm:$0xff]  ;;  %v3529_v26 = vld [vmem:[#allocation2 + $0x20] sm:$0xff] }
  0x20   :  { %4762 = vst [vmem:[#allocation34_spill] sm:$0xff] %v3499_v16  ;;  %270 = vmatpush.msra.mxu3 %v3503_v17  ;;  %231 = vmatpush.msra.mxu1 %v3509_v19  ;;  %v3533_v27 = vld [vmem:[#allocation2 + $0x28] sm:$0xff]  ;;  %v3535_v28 = vld [vmem:[#allocation2 + $0x30] sm:$0xff]  ;;  %v3539_v29 = vld [vmem:[#allocation2 + $0x38] sm:$0xff] }
  0x21   :  { %4763 = vst [vmem:[#allocation35_spill] sm:$0xff] %v3515_v21  ;;  %211 = vmatpush.msra.mxu0 %v3505_v18  ;;  %251 = vmatpush.msra.mxu2 %v3511_v20  ;;  %v3546_v30 = vld [vmem:[#allocation2] sm:$0xff]  ;;  %v3548_v31 = vld [vmem:[#allocation2 + $0x8] sm:$0xff]  ;;  %v3550_v32 = vld [vmem:[#allocation2 + $0x10] sm:$0xff] }
  0x22   :  { %4764 = vst [vmem:[#allocation36_spill] sm:$0xff] %v3521_v23  ;;  %271 = vmatpush.msra.mxu3 %v3515_v21  ;;  %232 = vmatpush.msra.mxu1 %v3521_v23  ;;  %v3554_v33 = vld [vmem:[#allocation2 + $0x18] sm:$0xff]  ;;  %v170_v34 = vld [vmem:[#allocation6] sm:$0x3]  ;;  %v173_v35 = vld [vmem:[#allocation9 + $0x8] sm:$0x1] }
  0x23   :  { %4765 = vst [vmem:[#allocation37_spill] sm:$0xff] %v3523_v24  ;;  %212 = vmatpush.msra.mxu0 %v3517_v22  ;;  %252 = vmatpush.msra.mxu2 %v3523_v24  ;;  %v176_v36 = vrot.slane %v173_v35, 7  ;;  %v172_v37 = vld [vmem:[#allocation9] sm:$0x1]  ;;  %v3565_v41 = vld [vmem:[#allocation12] sm:$0xf] }
  0x24   :  { %4766 = vst [vmem:[#allocation38_spill] sm:$0xff] %v3527_v25  ;;  %272 = vmatpush.msra.mxu3 %v3527_v25  ;;  %233 = vmatpush.msra.mxu1 %v3533_v27  ;;  %v3568_v42 = vperm.slane %v3565_v41, 0  ;;  %v3571_v43 = vperm.slane %v3565_v41, 1  ;;  %v3573_v44 = vld [vmem:[#allocation3 + $0xe0] sm:$0xff]  ;;  %v3575_v45 = vld [vmem:[#allocation3 + $0xe8] sm:$0xff]  ;;  %v3577_v46 = vld [vmem:[#allocation3 + $0xf0] sm:$0xff] }
  0x25   :  { %4767 = vst [vmem:[#allocation39_spill] sm:$0xff] %v3529_v26  ;;  %213 = vmatpush.msra.mxu0 %v3529_v26  ;;  %253 = vmatpush.msra.mxu2 %v3535_v28  ;;  %v178_v38 = vsel %vm177_vm1, %v176_v36, %v172_v37  ;;  %v3581_v47 = vld [vmem:[#allocation3 + $0xf8] sm:$0xff]  ;;  %v3585_v50 = vld [vmem:[#allocation3 + $0xc0] sm:$0xff]  ;;  %v3587_v51 = vld [vmem:[#allocation3 + $0xc8] sm:$0xff]  ;;  %v3612_v63 = vperm.slane %v3565_v41, 3 }
  0x26   :  { %4768 = vst [vmem:[#allocation40_spill] sm:$0xff] %v3533_v27  ;;  %273 = vmatpush.msra.mxu3 %v3539_v29  ;;  %234 = vmatpush.msra.mxu1 %v3548_v31  ;;  %v3589_v52 = vld [vmem:[#allocation3 + $0xd0] sm:$0xff]  ;;  %v3595_v55 = vld [vmem:[#allocation3 + $0xd8] sm:$0xff]  ;;  %v3599_v56 = vld [vmem:[#allocation3 + $0xa0] sm:$0xff] }
  0x27   :  { %4769 = vst [vmem:[#allocation41_spill] sm:$0xff] %v3535_v28  ;;  %214 = vmatpush.msra.mxu0 %v3546_v30  ;;  %254 = vmatpush.msra.mxu2 %v3550_v32  ;;  %v3601_v57 = vld [vmem:[#allocation3 + $0xa8] sm:$0xff]  ;;  %v3603_v58 = vld [vmem:[#allocation3 + $0xb0] sm:$0xff]  ;;  %v3607_v61 = vld [vmem:[#allocation3 + $0xb8] sm:$0xff] }
  0x28   :  { %4770 = vst [vmem:[#allocation42_spill] sm:$0xff] %v3539_v29  ;;  %274 = vmatpush.msra.mxu3 %v3554_v33  ;;  %343 = vrot.lane.b32.xlu0 %v170_v34, %s3407_s3  ;;  %v3609_v62 = vld [vmem:[#allocation3 + $0x80] sm:$0xff]  ;;  %v3616_v0 = vld [vmem:[#allocation3 + $0x88] sm:$0xff]  ;;  %v3618_v1 = vld [vmem:[#allocation3 + $0x90] sm:$0xff] }
  0x29   :  { %4771 = vst [vmem:[#allocation43_spill] sm:$0xff] %v3568_v42  ;;  %367 = vmatpush.msrb.mxu0 %v3573_v44  ;;  %387 = vmatpush.msrb.mxu1 %v3575_v45  ;;  %v3620_v34 = vld [vmem:[#allocation3 + $0x98] sm:$0xff]  ;;  %v3624_v35 = vld [vmem:[#allocation3 + $0x60] sm:$0xff]  ;;  %v3626_v36 = vld [vmem:[#allocation3 + $0x68] sm:$0xff] }
  0x2a   :  { %4772 = vst [vmem:[#allocation44_spill] sm:$0xff] %v3571_v43  ;;  %407 = vmatpush.msrb.mxu2 %v3577_v46  ;;  %427 = vmatpush.msrb.mxu3 %v3581_v47  ;;  %v3628_v37 = vld [vmem:[#allocation3 + $0x70] sm:$0xff] }
  0x2b   :  { %368 = vmatpush.msrb.mxu0 %v3585_v50  ;;  %388 = vmatpush.msrb.mxu1 %v3587_v51  ;;  %4773 = vst [vmem:[#allocation45_spill] sm:$0xff] %v3612_v63 }
  0x2c   :  { %408 = vmatpush.msrb.mxu2 %v3589_v52  ;;  %428 = vmatpush.msrb.mxu3 %v3595_v55  ;;  %4774 = vst [vmem:[#allocation46_spill] sm:$0xff] %v3624_v35 }
  0x2d   :  { %369 = vmatpush.msrb.mxu0 %v3599_v56  ;;  %389 = vmatpush.msrb.mxu1 %v3601_v57  ;;  %4775 = vst [vmem:[#allocation47_spill] sm:$0xff] %v3626_v36 }
  0x2e   :  { %409 = vmatpush.msrb.mxu2 %v3603_v58  ;;  %429 = vmatpush.msrb.mxu3 %v3607_v61  ;;  %4776 = vst [vmem:[#allocation48_spill] sm:$0xff] %v3628_v37 }
  0x2f   :  { %370 = vmatpush.msrb.mxu0 %v3609_v62  ;;  %390 = vmatpush.msrb.mxu1 %v3616_v0 }
  0x30   :  { %410 = vmatpush.msrb.mxu2 %v3618_v1  ;;  %430 = vmatpush.msrb.mxu3 %v3620_v34 }
  0x31   :  { %371 = vmatpush.msrb.mxu0 %v3624_v35  ;;  %391 = vmatpush.msrb.mxu1 %v3626_v36 }
  0x32   :  { %411 = vmatpush.msrb.mxu2 %v3628_v37 }
  0x8a   :  { %v182_v39 = vpop.permute.xlu0 %181 }
  0x8b   :  { %v185_v40 = vsel %vm184_vm2, %v178_v38, %v182_v39  ;;  %v3632_v38 = vld [vmem:[#allocation3 + $0x78] sm:$0xff]  ;;  %v3634_v39 = vld [vmem:[#allocation3 + $0x40] sm:$0xff] }
  0x8c   :  { %2737 = vmatmul.msk.f32.vlgmr.msra.gmra.mxu0 %vm195_vm3, %v185_v40  ;;  %2738 = vmatmul.msk.f32.vlgmr.msra.gmra.mxu1 %vm195_vm3, %v185_v40  ;;  %4777 = vst [vmem:[#allocation49_spill] sm:$0xff] %v3632_v38 }
  0x8d   :  { %2739 = vmatmul.msk.f32.vlgmr.msra.gmra.mxu2 %vm195_vm3, %v185_v40  ;;  %2740 = vmatmul.msk.f32.vlgmr.msra.gmra.mxu3 %vm195_vm3, %v185_v40  ;;  %4778 = vst [vmem:[#allocation50_spill] sm:$0xff] %v3634_v39  ;;  %v3636_v40 = vld [vmem:[#allocation3 + $0x48] sm:$0xff] }
  0x8e   :  { %4779 = vst [vmem:[#allocation51_spill] sm:$0xff] %v3636_v40  ;;  %431 = vmatpush.msrb.mxu3 %v3632_v38  ;;  %372 = vmatpush.msrb.mxu0 %v3634_v39  ;;  %v3665_v39 = vld [vmem:[#allocation3 + $0x10] sm:$0xff] }
  0x8f   :  { %392 = vmatpush.msrb.mxu1 %v3636_v40  ;;  %v3667_v40 = vld [vmem:[#allocation3 + $0x18] sm:$0xff] }
 0x109   :  { %v216_v48 = vpop.f32.mrf.mxu0  ;;  %v236_v49 = vpop.f32.mrf.mxu1 }
 0x10a   :  { %v217_v53 = vadd.f32 %v216_v48, %v3568_v42  ;;  %v237_v54 = vadd.f32 %v236_v49, %v3571_v43  ;;  %v3640_v49 = vld [vmem:[#allocation3 + $0x50] sm:$0xff]  ;;  %v3655_v42 = vld [vmem:[#allocation3 + $0x38] sm:$0xff] }
 0x10b   :  { %v3653_v43 = vld [vmem:[#allocation3 + $0x30] sm:$0xff]  ;;  %412 = vmatpush.msrb.mxu2 %v3640_v49 }
 0x10c   :  { %v2741_v59 = vmul.f32 -1.442695, %v217_v53  ;;  %v2742_v60 = vmul.f32 -1.442695, %v237_v54  ;;  %v3642_v53 = vld [vmem:[#allocation3 + $0x58] sm:$0xff] }
 0x10d   :  { %432 = vmatpush.msrb.mxu3 %v3642_v53  ;;  %413 = vmatpush.msrb.mxu2 %v3653_v43 }
 0x10e   :  { %2861 = vpow2.f32 %v2741_v59  ;;  %v3647_v59 = vld [vmem:[#allocation3 + $0x20] sm:$0xff] }
 0x10f   :  { %2863 = vpow2.f32 %v2742_v60  ;;  %v3649_v60 = vld [vmem:[#allocation3 + $0x28] sm:$0xff]  ;;  %373 = vmatpush.msrb.mxu0 %v3647_v59  ;;  %433 = vmatpush.msrb.mxu3 %v3655_v42 }
 0x110   :  { %v276_v48 = vpop.f32.mrf.mxu3  ;;  %393 = vmatpush.msrb.mxu1 %v3649_v60  ;;  %414 = vmatpush.msrb.mxu2 %v3665_v39 }
 0x111   :  { %v277_v54 = vadd.f32 %v276_v48, %v3612_v63  ;;  %v3659_v48 = vld [vmem:[#allocation3] sm:$0xff]  ;;  %v3661_v63 = vld [vmem:[#allocation3 + $0x8] sm:$0xff]  ;;  %434 = vmatpush.msrb.mxu3 %v3667_v40 }
 0x112   :  { %374 = vmatpush.msrb.mxu0 %v3659_v48  ;;  %394 = vmatpush.msrb.mxu1 %v3661_v63 }
 0x113   :  { %v2743_v36 = vmul.f32 -1.442695, %v277_v54  ;;  %571 = vmatpush.msra.mxu2 %v3467_v4  ;;  %591 = vmatpush.msra.mxu3 %v3469_v5 }
 0x114   :  { %v2862_v38 = vpop.eup %2861  ;;  %531 = vmatpush.msra.mxu0 %v3461_v2  ;;  %551 = vmatpush.msra.mxu1 %v3463_v3 }
 0x115   :  { %v2864_v37 = vpop.eup %2863  ;;  %v3669_v35 = vadd.f32 1.0, %v2862_v38  ;;  %2865 = vpow2.f32 %v2743_v36  ;;  %v3684_v36 = vperm.slane %v3565_v41, 2  ;;  %572 = vmatpush.msra.mxu2 %v3477_v8  ;;  %592 = vmatpush.msra.mxu3 %v3479_v9 }
 0x116   :  { %v3673_v54 = vadd.f32 1.0, %v2864_v37  ;;  %v256_v37 = vpop.f32.mrf.mxu2  ;;  %532 = vmatpush.msra.mxu0 %v3471_v6  ;;  %552 = vmatpush.msra.mxu1 %v3475_v7 }
 0x117   :  { %2867 = vrcp.f32 %v3669_v35  ;;  %4780 = vst [vmem:[#allocation52_spill] sm:$0xff] %v3684_v36  ;;  %v257_v4 = vadd.f32 %v256_v37, %v3684_v36  ;;  %573 = vmatpush.msra.mxu2 %v3487_v12  ;;  %593 = vmatpush.msra.mxu3 %v3491_v13  ;;  %v294_v13 = vand.u32 2147483648, %v3669_v35  ;;  %vm288_vm6 = vweird.f32 %v3669_v35 }
 0x118   :  { %2869 = vrcp.f32 %v3673_v54  ;;  %533 = vmatpush.msra.mxu0 %v3483_v10  ;;  %553 = vmatpush.msra.mxu1 %v3485_v11  ;;  %vm307_vm7 = vweird.f32 %v3673_v54 }
 0x119   :  { %574 = vmatpush.msra.mxu2 %v3499_v16  ;;  %594 = vmatpush.msra.mxu3 %v3503_v17  ;;  %v292_v16 = vand.u32 2147483647, %v3669_v35 }
 0x11a   :  { %534 = vmatpush.msra.mxu0 %v3493_v14  ;;  %554 = vmatpush.msra.mxu1 %v3497_v15  ;;  %v313_v15 = vand.u32 2147483648, %v3673_v54 }
 0x11b   :  { %v2866_v38 = vpop.eup %2865  ;;  %575 = vmatpush.msra.mxu2 %v3511_v20  ;;  %595 = vmatpush.msra.mxu3 %v3515_v21  ;;  %vm293_vm10 = vcmp.eq.f32.partialorder %v292_v16, 8.507059e+37 }
 0x11c   :  { %v3692_v2 = vadd.f32 1.0, %v2866_v38  ;;  %535 = vmatpush.msra.mxu0 %v3505_v18  ;;  %555 = vmatpush.msra.mxu1 %v3509_v19 }
 0x11d   :  { %v2868_v41 = vpop.eup %2867  ;;  %576 = vmatpush.msra.mxu2 %v3523_v24  ;;  %596 = vmatpush.msra.mxu3 %v3527_v25 }
 0x11e   :  { %v2870_v6 = vpop.eup %2869  ;;  %v284_v7 = vmul.f32 %v2868_v41, %v3669_v35  ;;  %2871 = vrcp.f32 %v3692_v2  ;;  %vm289_vm4 = vweird.f32 %v2868_v41  ;;  %536 = vmatpush.msra.mxu0 %v3517_v22  ;;  %556 = vmatpush.msra.mxu1 %v3521_v23  ;;  %v169_v35 = vld [vmem:[#allocation5] sm:$0x3]  ;;  %vm327_vm13 = vweird.f32 %v3692_v2 }
 0x11f   :  { %v303_v38 = vmul.f32 %v2870_v6, %v3673_v54  ;;  %2873 = vtanh.f32 %v257_v4  ;;  %vm308_vm5 = vweird.f32 %v2870_v6  ;;  %vm290_vm8 = vmor %vm288_vm6, %vm289_vm4  ;;  %577 = vmatpush.msra.mxu2 %v3535_v28  ;;  %597 = vmatpush.msra.mxu3 %v3539_v29 }
 0x120   :  { %v285_v37 = vsub.f32 1.0, %v284_v7  ;;  %537 = vmatpush.msra.mxu0 %v3529_v26  ;;  %557 = vmatpush.msra.mxu1 %v3533_v27  ;;  %vm309_vm9 = vmor %vm307_vm7, %vm308_vm5 }
 0x121   :  { %v304_v36 = vsub.f32 1.0, %v303_v38  ;;  %v311_v38 = vand.u32 2147483647, %v3673_v54  ;;  %578 = vmatpush.msra.mxu2 %v3550_v32  ;;  %598 = vmatpush.msra.mxu3 %v3554_v33 }
 0x122   :  { %v286_v14 = vmul.f32 %v2868_v41, %v285_v37  ;;  %538 = vmatpush.msra.mxu0 %v3546_v30  ;;  %558 = vmatpush.msra.mxu1 %v3548_v31 }
 0x123   :  { %v305_v7 = vmul.f32 %v2870_v6, %v304_v36  ;;  %v295_v36 = vor.u32 1.1754944e-38, %v294_v13  ;;  %vm312_vm11 = vcmp.eq.f32.partialorder %v311_v38, 8.507059e+37 }
 0x124   :  { %v2872_v4 = vpop.eup %2871  ;;  %v287_v21 = vadd.f32 %v2868_v41, %v286_v14  ;;  %v314_v14 = vor.u32 1.1754944e-38, %v313_v15 }
 0x125   :  { %v306_v37 = vadd.f32 %v2870_v6, %v305_v7  ;;  %v323_v23 = vmul.f32 %v2872_v4, %v3692_v2  ;;  %v2874_v54 = vpop.eup %2873  ;;  %vm328_vm12 = vweird.f32 %v2872_v4 }
 0x126   :  { %v291_v25 = vsel %vm290_vm8, %v2868_v41, %v287_v21  ;;  %v333_v21 = vand.u32 2147483648, %v3692_v2  ;;  %vm329_vm14 = vmor %vm327_vm13, %vm328_vm12 }
 0x127   :  { %v296_v27 = vsel %vm293_vm10, %v295_v36, %v291_v25  ;;  %v310_v13 = vsel %vm309_vm9, %v2870_v6, %v306_v37  ;;  %v324_v7 = vsub.f32 1.0, %v323_v23  ;;  %v331_v6 = vand.u32 2147483647, %v3692_v2  ;;  %v4781_v2 = vld [vmem:[#allocation46_spill] sm:$0xff]  ;;  %v4784_v36 = vld [vmem:[#allocation49_spill] sm:$0xff] }
 0x128   :  { %v315_v29 = vsel %vm312_vm11, %v314_v14, %v310_v13  ;;  %v338_v28 = vmul.f32 %v2874_v54, %v296_v27  ;;  %v334_v25 = vor.u32 1.1754944e-38, %v333_v21  ;;  %v344_v27 = vpop.permute.xlu0 %343  ;;  %v4785_v37 = vld [vmem:[#allocation50_spill] sm:$0xff]  ;;  %v4786_v14 = vld [vmem:[#allocation51_spill] sm:$0xff] }
 0x129   :  { %v337_v26 = vmul.f32 %v315_v29, %v169_v35  ;;  %v325_v15 = vmul.f32 %v2872_v4, %v324_v7  ;;  %vm332_vm15 = vcmp.eq.f32.partialorder %v331_v6, 8.507059e+37  ;;  %v509_v35 = vld [vmem:[#allocation9 + $0x9] sm:$0x1]  ;;  %v508_v13 = vld [vmem:[#allocation9 + $0x1] sm:$0x1]  ;;  %v4788_v6 = vld [vmem:[#allocation28_spill] sm:$0xff] }
 0x12a   :  { %v512_v54 = vrot.slane %v509_v35, 7  ;;  %v4787_v21 = vld [vmem:[#allocation27_spill] sm:$0xff]  ;;  %v4798_v35 = vld [vmem:[#allocation36_spill] sm:$0xff] }
 0x12b   :  { %v3731_v24 = vadd.f32 %v338_v28, %v337_v26  ;;  %v326_v16 = vadd.f32 %v2872_v4, %v325_v15  ;;  %v4782_v28 = vld [vmem:[#allocation47_spill] sm:$0xff] }
 0x12c   :  { %v513_v7 = vsel %vm177_vm1, %v512_v54, %v508_v13  ;;  %v4799_v13 = vld [vmem:[#allocation37_spill] sm:$0xff] }
 0x12d   :  { %2875 = vtanh.f32 %v3731_v24  ;;  %v330_v23 = vsel %vm329_vm14, %v2872_v4, %v326_v16  ;;  %v4783_v4 = vld [vmem:[#allocation48_spill] sm:$0xff] }
 0x12e   :  { %v335_v29 = vsel %vm332_vm15, %v334_v25, %v330_v23  ;;  %v167_v23 = vld [vmem:[#allocation14] sm:$0xf]  ;;  %v4789_v25 = vld [vmem:[#allocation29_spill] sm:$0xff] }
 0x133   :  { %v2876_v41 = vpop.eup %2875 }
 0x134   :  { %v341_v38 = vmul.f32 %v2876_v41, %v335_v29  ;;  %v4790_v41 = vld [vmem:[#allocation30_spill] sm:$0xff]  ;;  %v4794_v29 = vld [vmem:[#allocation32_spill] sm:$0xff] }
 0x136   :  { %516 = vrot.lane.b32.xlu1 %v341_v38, %s3407_s3  ;;  %v346_v26 = vsel %vm184_vm2, %v341_v38, %v344_v27  ;;  %v3791_v27 = vperm.slane %v167_v23, 0  ;;  %v4795_v38 = vld [vmem:[#allocation33_spill] sm:$0xff] }
 0x137   :  { %2744 = vmatmul.msk.f32.vlgmr.msrb.gmra.mxu0 %vm195_vm3, %v346_v26  ;;  %2745 = vmatmul.msk.f32.vlgmr.msrb.gmra.mxu1 %vm195_vm3, %v346_v26 }
 0x138   :  { %2746 = vmatmul.msk.f32.vlgmr.msrb.gmra.mxu2 %vm195_vm3, %v346_v26  ;;  %2747 = vmatmul.msk.f32.vlgmr.msrb.gmra.mxu3 %vm195_vm3, %v346_v26  ;;  %4791 = vst [vmem:[#allocation46_spill] sm:$0xff] %v3791_v27  ;;  %v4796_v26 = vld [vmem:[#allocation34_spill] sm:$0xff] }
 0x139   :  { %681 = vmatpush.msrb.mxu0 %v3573_v44  ;;  %701 = vmatpush.msrb.mxu1 %v3575_v45 }
 0x13a   :  { %721 = vmatpush.msrb.mxu2 %v3577_v46  ;;  %741 = vmatpush.msrb.mxu3 %v3581_v47 }
 0x13b   :  { %682 = vmatpush.msrb.mxu0 %v3585_v50  ;;  %702 = vmatpush.msrb.mxu1 %v3587_v51 }
 0x13c   :  { %722 = vmatpush.msrb.mxu2 %v3589_v52  ;;  %742 = vmatpush.msrb.mxu3 %v3595_v55 }
 0x13d   :  { %683 = vmatpush.msrb.mxu0 %v3599_v56  ;;  %703 = vmatpush.msrb.mxu1 %v3601_v57 }
 0x13e   :  { %723 = vmatpush.msrb.mxu2 %v3603_v58  ;;  %743 = vmatpush.msrb.mxu3 %v3607_v61 }
 0x13f   :  { %684 = vmatpush.msrb.mxu0 %v3609_v62  ;;  %704 = vmatpush.msrb.mxu1 %v3616_v0 }
 0x140   :  { %724 = vmatpush.msrb.mxu2 %v3618_v1  ;;  %744 = vmatpush.msrb.mxu3 %v3620_v34 }
 0x141   :  { %685 = vmatpush.msrb.mxu0 %v4781_v2  ;;  %705 = vmatpush.msrb.mxu1 %v4782_v28 }
 0x142   :  { %725 = vmatpush.msrb.mxu2 %v4783_v4  ;;  %745 = vmatpush.msrb.mxu3 %v4784_v36 }
 0x143   :  { %686 = vmatpush.msrb.mxu0 %v4785_v37  ;;  %706 = vmatpush.msrb.mxu1 %v4786_v14 }
 0x144   :  { %726 = vmatpush.msrb.mxu2 %v3640_v49  ;;  %746 = vmatpush.msrb.mxu3 %v3642_v53 }
 0x145   :  { %687 = vmatpush.msrb.mxu0 %v3647_v59  ;;  %707 = vmatpush.msrb.mxu1 %v3649_v60 }
 0x146   :  { %727 = vmatpush.msrb.mxu2 %v3653_v43  ;;  %747 = vmatpush.msrb.mxu3 %v3655_v42 }
 0x147   :  { %688 = vmatpush.msrb.mxu0 %v3659_v48  ;;  %708 = vmatpush.msrb.mxu1 %v3661_v63 }
 0x148   :  { %728 = vmatpush.msrb.mxu2 %v3665_v39  ;;  %748 = vmatpush.msrb.mxu3 %v3667_v40 }
 0x1a8   :  { %v517_v15 = vpop.permute.xlu1 %516 }
 0x1a9   :  { %v519_v16 = vsel %vm184_vm2, %v513_v7, %v517_v15  ;;  %v4800_v7 = vld [vmem:[#allocation38_spill] sm:$0xff]  ;;  %v4803_v15 = vld [vmem:[#allocation40_spill] sm:$0xff] }
 0x1aa   :  { %2751 = vmatmul.msk.f32.vlgmr.msra.gmra.mxu0 %vm195_vm3, %v519_v16  ;;  %2752 = vmatmul.msk.f32.vlgmr.msra.gmra.mxu1 %vm195_vm3, %v519_v16 }
 0x1ab   :  { %2753 = vmatmul.msk.f32.vlgmr.msra.gmra.mxu2 %vm195_vm3, %v519_v16  ;;  %2754 = vmatmul.msk.f32.vlgmr.msra.gmra.mxu3 %vm195_vm3, %v519_v16  ;;  %v4805_v16 = vld [vmem:[#allocation42_spill] sm:$0xff] }
 0x1ac   :  { %844 = vmatpush.msra.mxu0 %v4787_v21  ;;  %864 = vmatpush.msra.mxu1 %v3463_v3  ;;  %v3793_v3 = vperm.slane %v167_v23, 1 }
 0x1ad   :  { %884 = vmatpush.msra.mxu2 %v4788_v6  ;;  %904 = vmatpush.msra.mxu3 %v3469_v5  ;;  %v4793_v5 = vld [vmem:[#allocation31_spill] sm:$0xff] }
 0x1ae   :  { %845 = vmatpush.msra.mxu0 %v4789_v25  ;;  %865 = vmatpush.msra.mxu1 %v4790_v41  ;;  %4792 = vst [vmem:[#allocation47_spill] sm:$0xff] %v3793_v3 }
 0x1af   :  { %885 = vmatpush.msra.mxu2 %v3477_v8  ;;  %905 = vmatpush.msra.mxu3 %v3479_v9 }
 0x1b0   :  { %846 = vmatpush.msra.mxu0 %v3483_v10  ;;  %866 = vmatpush.msra.mxu1 %v3485_v11 }
 0x1b1   :  { %886 = vmatpush.msra.mxu2 %v3487_v12  ;;  %906 = vmatpush.msra.mxu3 %v4793_v5  ;;  %v4797_v12 = vld [vmem:[#allocation35_spill] sm:$0xff] }
 0x1b2   :  { %847 = vmatpush.msra.mxu0 %v4794_v29  ;;  %867 = vmatpush.msra.mxu1 %v4795_v38  ;;  %v3822_v38 = vperm.slane %v167_v23, 2 }
 0x1b3   :  { %887 = vmatpush.msra.mxu2 %v4796_v26  ;;  %907 = vmatpush.msra.mxu3 %v3503_v17 }
 0x1b4   :  { %v376_v8 = vpop.f32.mrf.mxu0  ;;  %v396_v9 = vpop.f32.mrf.mxu1  ;;  %848 = vmatpush.msra.mxu0 %v3505_v18  ;;  %868 = vmatpush.msra.mxu1 %v3509_v19  ;;  %v3811_v18 = vperm.slane %v167_v23, 3  ;;  %v4802_v19 = vld [vmem:[#allocation39_spill] sm:$0xff]  ;;  %4806 = vst [vmem:[#allocation49_spill] sm:$0xff] %v3822_v38 }
 0x1b5   :  { %v377_v10 = vadd.f32 %v376_v8, %v3791_v27  ;;  %v397_v11 = vadd.f32 %v396_v9, %v3793_v3  ;;  %888 = vmatpush.msra.mxu2 %v3511_v20  ;;  %908 = vmatpush.msra.mxu3 %v4797_v12  ;;  %v4804_v20 = vld [vmem:[#allocation41_spill] sm:$0xff] }
 0x1b6   :  { %849 = vmatpush.msra.mxu0 %v3517_v22  ;;  %869 = vmatpush.msra.mxu1 %v4798_v35  ;;  %4801 = vst [vmem:[#allocation48_spill] sm:$0xff] %v3811_v18 }
 0x1b7   :  { %v2748_v54 = vmul.f32 -1.442695, %v377_v10  ;;  %v2749_v17 = vmul.f32 -1.442695, %v397_v11  ;;  %889 = vmatpush.msra.mxu2 %v4799_v13  ;;  %909 = vmatpush.msra.mxu3 %v4800_v7 }
 0x1b8   :  { %850 = vmatpush.msra.mxu0 %v4802_v19  ;;  %870 = vmatpush.msra.mxu1 %v4803_v15 }
 0x1b9   :  { %2877 = vpow2.f32 %v2748_v54  ;;  %890 = vmatpush.msra.mxu2 %v4804_v20  ;;  %910 = vmatpush.msra.mxu3 %v4805_v16 }
 0x1ba   :  { %2879 = vpow2.f32 %v2749_v17  ;;  %851 = vmatpush.msra.mxu0 %v3546_v30  ;;  %871 = vmatpush.msra.mxu1 %v3548_v31 }
 0x1bb   :  { %v436_v22 = vpop.f32.mrf.mxu3  ;;  %891 = vmatpush.msra.mxu2 %v3550_v32  ;;  %911 = vmatpush.msra.mxu3 %v3554_v33  ;;  %v416_v30 = vpop.f32.mrf.mxu2 }
 0x1bc   :  { %v437_v21 = vadd.f32 %v436_v22, %v3811_v18  ;;  %v417_v32 = vadd.f32 %v416_v30, %v3822_v38 }
 0x1be   :  { %v2750_v6 = vmul.f32 -1.442695, %v437_v21 }
 0x1bf   :  { %v2878_v25 = vpop.eup %2877 }
 0x1c0   :  { %v2880_v41 = vpop.eup %2879  ;;  %v442_v5 = vadd.f32 1.0, %v2878_v25  ;;  %2881 = vpow2.f32 %v2750_v6  ;;  %v171_v25 = vld [vmem:[#allocation7] sm:$0x3] }
 0x1c1   :  { %v461_v29 = vadd.f32 1.0, %v2880_v41 }
 0x1c2   :  { %2883 = vrcp.f32 %v442_v5  ;;  %v454_v54 = vand.u32 2147483648, %v442_v5  ;;  %v452_v7 = vand.u32 2147483647, %v442_v5  ;;  %vm448_vm6 = vweird.f32 %v442_v5 }
 0x1c3   :  { %2885 = vrcp.f32 %v461_v29  ;;  %v473_v17 = vand.u32 2147483648, %v461_v29  ;;  %v471_v19 = vand.u32 2147483647, %v461_v29  ;;  %vm467_vm7 = vweird.f32 %v461_v29 }
 0x1c4   :  { %v455_v16 = vor.u32 1.1754944e-38, %v454_v54  ;;  %vm453_vm10 = vcmp.eq.f32.partialorder %v452_v7, 8.507059e+37 }
 0x1c5   :  { %v474_v6 = vor.u32 1.1754944e-38, %v473_v17  ;;  %vm472_vm11 = vcmp.eq.f32.partialorder %v471_v19, 8.507059e+37 }
 0x1c6   :  { %v2882_v26 = vpop.eup %2881 }
 0x1c7   :  { %v481_v31 = vadd.f32 1.0, %v2882_v26 }
 0x1c8   :  { %v2884_v8 = vpop.eup %2883 }
 0x1c9   :  { %v2886_v9 = vpop.eup %2885  ;;  %v444_v10 = vmul.f32 %v2884_v8, %v442_v5  ;;  %2887 = vrcp.f32 %v481_v31  ;;  %vm449_vm4 = vweird.f32 %v2884_v8  ;;  %v493_v54 = vand.u32 2147483648, %v481_v31 }
 0x1ca   :  { %v463_v11 = vmul.f32 %v2886_v9, %v461_v29  ;;  %2889 = vtanh.f32 %v417_v32  ;;  %vm468_vm5 = vweird.f32 %v2886_v9  ;;  %vm450_vm8 = vmor %vm448_vm6, %vm449_vm4  ;;  %vm487_vm13 = vweird.f32 %v481_v31 }
 0x1cb   :  { %v445_v12 = vsub.f32 1.0, %v444_v10  ;;  %vm469_vm9 = vmor %vm467_vm7, %vm468_vm5  ;;  %v491_v17 = vand.u32 2147483647, %v481_v31  ;;  %v494_v7 = vor.u32 1.1754944e-38, %v493_v54  ;;  %vm505_vm4 = vcmask 253952  }
 0x1cc   :  { %v464_v35 = vsub.f32 1.0, %v463_v11 }
 0x1cd   :  { %v446_v13 = vmul.f32 %v2884_v8, %v445_v12  ;;  %vm492_vm15 = vcmp.eq.f32.partialorder %v491_v17, 8.507059e+37 }
 0x1ce   :  { %v465_v23 = vmul.f32 %v2886_v9, %v464_v35 }
 0x1cf   :  { %v2888_v15 = vpop.eup %2887  ;;  %v447_v20 = vadd.f32 %v2884_v8, %v446_v13 }
 0x1d0   :  { %v466_v22 = vadd.f32 %v2886_v9, %v465_v23  ;;  %v483_v21 = vmul.f32 %v2888_v15, %v481_v31  ;;  %v2890_v30 = vpop.eup %2889  ;;  %vm488_vm12 = vweird.f32 %v2888_v15  ;;  %v4808_v31 = vld [vmem:[#allocation44_spill] sm:$0xff] }
 0x1d1   :  { %v451_v41 = vsel %vm450_vm8, %v2884_v8, %v447_v20  ;;  %vm489_vm14 = vmor %vm487_vm13, %vm488_vm12 }
 0x1d2   :  { %v456_v26 = vsel %vm453_vm10, %v455_v16, %v451_v41  ;;  %v470_v32 = vsel %vm469_vm9, %v2886_v9, %v466_v22  ;;  %v484_v10 = vsub.f32 1.0, %v483_v21  ;;  %v4807_v21 = vld [vmem:[#allocation43_spill] sm:$0xff] }
 0x1d3   :  { %v475_v11 = vsel %vm472_vm11, %v474_v6, %v470_v32  ;;  %v498_v12 = vmul.f32 %v2890_v30, %v456_v26  ;;  %v4809_v26 = vld [vmem:[#allocation45_spill] sm:$0xff] }
 0x1d4   :  { %v497_v35 = vmul.f32 %v475_v11, %v171_v25  ;;  %v485_v13 = vmul.f32 %v2888_v15, %v484_v10 }
 0x1d6   :  { %v3825_v5 = vadd.f32 %v498_v12, %v497_v35  ;;  %v486_v29 = vadd.f32 %v2888_v15, %v485_v13 }
 0x1d8   :  { %2891 = vtanh.f32 %v3825_v5  ;;  %v490_v8 = vsel %vm489_vm14, %v2888_v15, %v486_v29 }
 0x1d9   :  { %v495_v23 = vsel %vm492_vm15, %v494_v7, %v490_v8  ;;  %v4810_v7 = vld [vmem:[#allocation52_spill] sm:$0xff] }
 0x1de   :  { %v2892_v9 = vpop.eup %2891 }
 0x1df   :  { %v501_v19 = vmul.f32 %v2892_v9, %v495_v23 }
 0x1e1   :  { %666 = vrot.lane.b32.xlu1 %v501_v19, %s3407_s3  ;;  %v503_v20 = vrot.slane %v501_v19, 1  ;;  %506 = vst.msk [vmem:[#allocation15] sm:$0x1] %vm505_vm4, %v501_v19 }
 0x1e3   :  { %507 = vst.msk [vmem:[#allocation15 + $0x8] sm:$0x1] %vm505_vm4, %v503_v20 }
 0x227   :  { %v540_v16 = vpop.f32.mrf.mxu0  ;;  %v560_v22 = vpop.f32.mrf.mxu1 }
 0x228   :  { %v541_v6 = vadd.f32 %v540_v16, %v4807_v21  ;;  %v561_v25 = vadd.f32 %v560_v22, %v4808_v31 }
 0x22a   :  { %v2755_v15 = vmul.f32 -1.442695, %v541_v6  ;;  %v2756_v41 = vmul.f32 -1.442695, %v561_v25 }
 0x22c   :  { %2893 = vpow2.f32 %v2755_v15 }
 0x22d   :  { %2895 = vpow2.f32 %v2756_v41 }
 0x22e   :  { %v600_v30 = vpop.f32.mrf.mxu3  ;;  %v580_v29 = vpop.f32.mrf.mxu2 }
 0x22f   :  { %v601_v32 = vadd.f32 %v600_v30, %v4809_v26  ;;  %v581_v9 = vadd.f32 %v580_v29, %v4810_v7 }
 0x231   :  { %v2757_v10 = vmul.f32 -1.442695, %v601_v32 }
 0x232   :  { %v2894_v11 = vpop.eup %2893 }
 0x233   :  { %v2896_v12 = vpop.eup %2895  ;;  %v606_v35 = vadd.f32 1.0, %v2894_v11  ;;  %2897 = vpow2.f32 %v2757_v10 }
 0x234   :  { %v625_v13 = vadd.f32 1.0, %v2896_v12 }
 0x235   :  { %2899 = vrcp.f32 %v606_v35  ;;  %v618_v6 = vand.u32 2147483648, %v606_v35  ;;  %v616_v41 = vand.u32 2147483647, %v606_v35  ;;  %vm612_vm7 = vweird.f32 %v606_v35 }
 0x236   :  { %2901 = vrcp.f32 %v625_v13  ;;  %v637_v25 = vand.u32 2147483648, %v625_v13  ;;  %v635_v32 = vand.u32 2147483647, %v625_v13  ;;  %vm631_vm8 = vweird.f32 %v625_v13 }
 0x237   :  { %v619_v12 = vor.u32 1.1754944e-38, %v618_v6  ;;  %vm617_vm11 = vcmp.eq.f32.partialorder %v616_v41, 8.507059e+37 }
 0x238   :  { %vm636_vm12 = vcmp.eq.f32.partialorder %v635_v32, 8.507059e+37 }
 0x239   :  { %v2898_v54 = vpop.eup %2897 }
 0x23a   :  { %v645_v17 = vadd.f32 1.0, %v2898_v54 }
 0x23b   :  { %v2900_v8 = vpop.eup %2899 }
 0x23c   :  { %v2902_v23 = vpop.eup %2901  ;;  %v608_v19 = vmul.f32 %v2900_v8, %v606_v35  ;;  %2903 = vrcp.f32 %v645_v17  ;;  %vm613_vm5 = vweird.f32 %v2900_v8  ;;  %v657_v6 = vand.u32 2147483648, %v645_v17 }
 0x23d   :  { %v627_v20 = vmul.f32 %v2902_v23, %v625_v13  ;;  %2905 = vtanh.f32 %v581_v9  ;;  %vm632_vm6 = vweird.f32 %v2902_v23  ;;  %vm614_vm9 = vmor %vm612_vm7, %vm613_vm5  ;;  %vm651_vm14 = vweird.f32 %v645_v17 }
 0x23e   :  { %v609_v16 = vsub.f32 1.0, %v608_v19  ;;  %vm633_vm10 = vmor %vm631_vm8, %vm632_vm6  ;;  %v638_v19 = vor.u32 1.1754944e-38, %v637_v25  ;;  %v658_v41 = vor.u32 1.1754944e-38, %v657_v6 }
 0x23f   :  { %v628_v22 = vsub.f32 1.0, %v627_v20 }
 0x240   :  { %v610_v15 = vmul.f32 %v2900_v8, %v609_v16 }
 0x241   :  { %v629_v30 = vmul.f32 %v2902_v23, %v628_v22 }
 0x242   :  { %v2904_v10 = vpop.eup %2903  ;;  %v611_v11 = vadd.f32 %v2900_v8, %v610_v15 }
 0x243   :  { %v630_v29 = vadd.f32 %v2902_v23, %v629_v30  ;;  %v647_v54 = vmul.f32 %v2904_v10, %v645_v17  ;;  %v2906_v9 = vpop.eup %2905  ;;  %vm652_vm13 = vweird.f32 %v2904_v10 }
 0x244   :  { %v615_v20 = vsel %vm614_vm9, %v2900_v8, %v611_v11  ;;  %v655_v8 = vand.u32 2147483647, %v645_v17  ;;  %vm653_vm15 = vmor %vm651_vm14, %vm652_vm13  ;;  %v3970_v17 = vld [vmem:[#allocation2 + $0x8] sm:$0xff] }
 0x245   :  { %v620_v7 = vsel %vm617_vm11, %v619_v12, %v615_v20  ;;  %v634_v16 = vsel %vm633_vm10, %v2902_v23, %v630_v29  ;;  %v648_v26 = vsub.f32 1.0, %v647_v54  ;;  %4824 = vst [vmem:[#allocation38_spill] sm:$0xff] %v3970_v17 }
 0x246   :  { %v639_v22 = vsel %vm636_vm12, %v638_v19, %v634_v16  ;;  %v662_v31 = vmul.f32 %v2906_v9, %v620_v7  ;;  %vm656_vm5 = vcmp.eq.f32.partialorder %v655_v8, 8.507059e+37 }
 0x247   :  { %v661_v21 = vmul.f32 %v639_v22, %v3731_v24  ;;  %v649_v15 = vmul.f32 %v2904_v10, %v648_v26  ;;  %v3967_v26 = vld [vmem:[#allocation2] sm:$0xff] }
 0x248   :  { %4823 = vst [vmem:[#allocation37_spill] sm:$0xff] %v3967_v26 }
 0x249   :  { %v3836_v35 = vadd.f32 %v662_v31, %v661_v21  ;;  %v650_v13 = vadd.f32 %v2904_v10, %v649_v15  ;;  %v3961_v21 = vld [vmem:[#allocation2 + $0x30] sm:$0xff]  ;;  %v3964_v31 = vld [vmem:[#allocation2 + $0x38] sm:$0xff] }
 0x24a   :  { %4821 = vst [vmem:[#allocation35_spill] sm:$0xff] %v3961_v21 }
 0x24b   :  { %2907 = vtanh.f32 %v3836_v35  ;;  %v654_v25 = vsel %vm653_vm15, %v2904_v10, %v650_v13  ;;  %4822 = vst [vmem:[#allocation36_spill] sm:$0xff] %v3964_v31  ;;  %v3973_v10 = vld [vmem:[#allocation2 + $0x10] sm:$0xff] }
 0x24c   :  { %v659_v30 = vsel %vm656_vm5, %v658_v41, %v654_v25  ;;  %4825 = vst [vmem:[#allocation39_spill] sm:$0xff] %v3973_v10 }
 0x251   :  { %v2908_v23 = vpop.eup %2907 }
 0x252   :  { %v665_v32 = vmul.f32 %v2908_v23, %v659_v30 }
 0x253   :  { %v667_v7 = vpop.permute.xlu1 %666 }
 0x254   :  { %829 = vrot.lane.b32.xlu2 %v665_v32, %s3407_s3  ;;  %v669_v24 = vsel %vm184_vm2, %v665_v32, %v667_v7 }
 0x255   :  { %2758 = vmatmul.msk.f32.vlgmr.msrb.gmra.mxu0 %vm195_vm3, %v669_v24  ;;  %2759 = vmatmul.msk.f32.vlgmr.msrb.gmra.mxu1 %vm195_vm3, %v669_v24 }
 0x256   :  { %2760 = vmatmul.msk.f32.vlgmr.msrb.gmra.mxu2 %vm195_vm3, %v669_v24  ;;  %2761 = vmatmul.msk.f32.vlgmr.msrb.gmra.mxu3 %vm195_vm3, %v669_v24 }
 0x257   :  { %994 = vmatpush.msrb.mxu0 %v3573_v44  ;;  %1014 = vmatpush.msrb.mxu1 %v3575_v45  ;;  %v822_v44 = vld [vmem:[#allocation9 + $0xa] sm:$0x1] }
 0x258   :  { %1034 = vmatpush.msrb.mxu2 %v3577_v46  ;;  %1054 = vmatpush.msrb.mxu3 %v3581_v47  ;;  %v825_v45 = vrot.slane %v822_v44, 7  ;;  %v821_v46 = vld [vmem:[#allocation9 + $0x2] sm:$0x1] }
 0x259   :  { %995 = vmatpush.msrb.mxu0 %v3585_v50  ;;  %1015 = vmatpush.msrb.mxu1 %v3587_v51 }
 0x25a   :  { %1035 = vmatpush.msrb.mxu2 %v3589_v52  ;;  %1055 = vmatpush.msrb.mxu3 %v3595_v55  ;;  %v826_v47 = vsel %vm177_vm1, %v825_v45, %v821_v46  ;;  %v3889_v52 = vld [vmem:[#allocation2 + $0xf0] sm:$0xff]  ;;  %v3892_v55 = vld [vmem:[#allocation2 + $0xf8] sm:$0xff] }
 0x25b   :  { %996 = vmatpush.msrb.mxu0 %v3599_v56  ;;  %1016 = vmatpush.msrb.mxu1 %v3601_v57  ;;  %v3895_v56 = vld [vmem:[#allocation2 + $0xc0] sm:$0xff]  ;;  %v3898_v57 = vld [vmem:[#allocation2 + $0xc8] sm:$0xff] }
 0x25c   :  { %1036 = vmatpush.msrb.mxu2 %v3603_v58  ;;  %1056 = vmatpush.msrb.mxu3 %v3607_v61  ;;  %v3901_v58 = vld [vmem:[#allocation2 + $0xd0] sm:$0xff]  ;;  %v3904_v61 = vld [vmem:[#allocation2 + $0xd8] sm:$0xff] }
 0x25d   :  { %997 = vmatpush.msrb.mxu0 %v3609_v62  ;;  %1017 = vmatpush.msrb.mxu1 %v3616_v0  ;;  %v3907_v62 = vld [vmem:[#allocation2 + $0xa0] sm:$0xff]  ;;  %v3913_v0 = vld [vmem:[#allocation2 + $0xb0] sm:$0xff] }
 0x25e   :  { %1037 = vmatpush.msrb.mxu2 %v3618_v1  ;;  %1057 = vmatpush.msrb.mxu3 %v3620_v34  ;;  %v3916_v1 = vld [vmem:[#allocation2 + $0xb8] sm:$0xff]  ;;  %v3919_v34 = vld [vmem:[#allocation2 + $0x80] sm:$0xff] }
 0x25f   :  { %998 = vmatpush.msrb.mxu0 %v4781_v2  ;;  %1018 = vmatpush.msrb.mxu1 %v4782_v28  ;;  %v3943_v2 = vld [vmem:[#allocation2 + $0x40] sm:$0xff]  ;;  %v3946_v28 = vld [vmem:[#allocation2 + $0x48] sm:$0xff] }
 0x260   :  { %1038 = vmatpush.msrb.mxu2 %v4783_v4  ;;  %1058 = vmatpush.msrb.mxu3 %v4784_v36  ;;  %4815 = vst [vmem:[#allocation29_spill] sm:$0xff] %v3943_v2  ;;  %v3949_v4 = vld [vmem:[#allocation2 + $0x50] sm:$0xff]  ;;  %v3952_v36 = vld [vmem:[#allocation2 + $0x58] sm:$0xff] }
 0x261   :  { %999 = vmatpush.msrb.mxu0 %v4785_v37  ;;  %1019 = vmatpush.msrb.mxu1 %v4786_v14  ;;  %4816 = vst [vmem:[#allocation30_spill] sm:$0xff] %v3946_v28  ;;  %v3955_v37 = vld [vmem:[#allocation2 + $0x20] sm:$0xff]  ;;  %v3958_v14 = vld [vmem:[#allocation2 + $0x28] sm:$0xff] }
 0x262   :  { %1039 = vmatpush.msrb.mxu2 %v3640_v49  ;;  %1059 = vmatpush.msrb.mxu3 %v3642_v53  ;;  %v3928_v49 = vld [vmem:[#allocation2 + $0x98] sm:$0xff]  ;;  %v3931_v53 = vld [vmem:[#allocation2 + $0x60] sm:$0xff]  ;;  %4817 = vst [vmem:[#allocation31_spill] sm:$0xff] %v3949_v4 }
 0x263   :  { %1000 = vmatpush.msrb.mxu0 %v3647_v59  ;;  %1020 = vmatpush.msrb.mxu1 %v3649_v60  ;;  %4811 = vst [vmem:[#allocation50_spill] sm:$0xff] %v3931_v53  ;;  %v3934_v59 = vld [vmem:[#allocation2 + $0x68] sm:$0xff]  ;;  %v3937_v60 = vld [vmem:[#allocation2 + $0x70] sm:$0xff] }
 0x264   :  { %1040 = vmatpush.msrb.mxu2 %v3653_v43  ;;  %1060 = vmatpush.msrb.mxu3 %v3655_v42  ;;  %v3883_v42 = vld [vmem:[#allocation2 + $0xe0] sm:$0xff]  ;;  %v3886_v43 = vld [vmem:[#allocation2 + $0xe8] sm:$0xff]  ;;  %4812 = vst [vmem:[#allocation51_spill] sm:$0xff] %v3934_v59 }
 0x265   :  { %1001 = vmatpush.msrb.mxu0 %v3659_v48  ;;  %1021 = vmatpush.msrb.mxu1 %v3661_v63  ;;  %v3910_v63 = vld [vmem:[#allocation2 + $0xa8] sm:$0xff]  ;;  %4813 = vst [vmem:[#allocation27_spill] sm:$0xff] %v3937_v60  ;;  %v3940_v48 = vld [vmem:[#allocation2 + $0x78] sm:$0xff] }
 0x266   :  { %1041 = vmatpush.msrb.mxu2 %v3665_v39  ;;  %1061 = vmatpush.msrb.mxu3 %v3667_v40  ;;  %v3922_v39 = vld [vmem:[#allocation2 + $0x88] sm:$0xff]  ;;  %v3925_v40 = vld [vmem:[#allocation2 + $0x90] sm:$0xff]  ;;  %4814 = vst [vmem:[#allocation28_spill] sm:$0xff] %v3940_v48 }
 0x267   :  { %4818 = vst [vmem:[#allocation32_spill] sm:$0xff] %v3952_v36 }
 0x268   :  { %4819 = vst [vmem:[#allocation33_spill] sm:$0xff] %v3955_v37 }
 0x269   :  { %4820 = vst [vmem:[#allocation34_spill] sm:$0xff] %v3958_v14 }
 0x2ae   :  { %v830_v50 = vpop.permute.xlu2 %829 }
 0x2af   :  { %v832_v51 = vsel %vm184_vm2, %v826_v47, %v830_v50 }
 0x2b0   :  { %2765 = vmatmul.msk.f32.vlgmr.msra.gmra.mxu0 %vm195_vm3, %v832_v51  ;;  %2766 = vmatmul.msk.f32.vlgmr.msra.gmra.mxu1 %vm195_vm3, %v832_v51 }
 0x2b1   :  { %2767 = vmatmul.msk.f32.vlgmr.msra.gmra.mxu2 %vm195_vm3, %v832_v51  ;;  %2768 = vmatmul.msk.f32.vlgmr.msra.gmra.mxu3 %vm195_vm3, %v832_v51 }
 0x2b2   :  { %1157 = vmatpush.msra.mxu0 %v3883_v42  ;;  %1177 = vmatpush.msra.mxu1 %v3886_v43 }
 0x2b3   :  { %1197 = vmatpush.msra.mxu2 %v3889_v52  ;;  %1217 = vmatpush.msra.mxu3 %v3892_v55 }
 0x2b4   :  { %1158 = vmatpush.msra.mxu0 %v3895_v56  ;;  %1178 = vmatpush.msra.mxu1 %v3898_v57 }
 0x2b5   :  { %1198 = vmatpush.msra.mxu2 %v3901_v58  ;;  %1218 = vmatpush.msra.mxu3 %v3904_v61 }
 0x2b6   :  { %1159 = vmatpush.msra.mxu0 %v3907_v62  ;;  %1179 = vmatpush.msra.mxu1 %v3910_v63 }
 0x2b7   :  { %1199 = vmatpush.msra.mxu2 %v3913_v0  ;;  %1219 = vmatpush.msra.mxu3 %v3916_v1 }
 0x2b8   :  { %1160 = vmatpush.msra.mxu0 %v3919_v34  ;;  %1180 = vmatpush.msra.mxu1 %v3922_v39 }
 0x2b9   :  { %1200 = vmatpush.msra.mxu2 %v3925_v40  ;;  %1220 = vmatpush.msra.mxu3 %v3928_v49 }
 0x2ba   :  { %1161 = vmatpush.msra.mxu0 %v3931_v53  ;;  %1181 = vmatpush.msra.mxu1 %v3934_v59 }
 0x2bb   :  { %1201 = vmatpush.msra.mxu2 %v3937_v60  ;;  %1221 = vmatpush.msra.mxu3 %v3940_v48 }
 0x2bc   :  { %1162 = vmatpush.msra.mxu0 %v3943_v2  ;;  %1182 = vmatpush.msra.mxu1 %v3946_v28 }
 0x2bd   :  { %1202 = vmatpush.msra.mxu2 %v3949_v4  ;;  %1222 = vmatpush.msra.mxu3 %v3952_v36 }
 0x2be   :  { %1163 = vmatpush.msra.mxu0 %v3955_v37  ;;  %1183 = vmatpush.msra.mxu1 %v3958_v14 }
 0x2bf   :  { %1203 = vmatpush.msra.mxu2 %v3961_v21  ;;  %1223 = vmatpush.msra.mxu3 %v3964_v31 }
 0x2c0   :  { %1164 = vmatpush.msra.mxu0 %v3967_v26  ;;  %1184 = vmatpush.msra.mxu1 %v3970_v17 }
 0x2c1   :  { %1204 = vmatpush.msra.mxu2 %v3973_v10  ;;  %1224 = vmatpush.msra.mxu3 %v3554_v33 }
 0x2d2   :  { %v690_v11 = vpop.f32.mrf.mxu0  ;;  %v710_v12 = vpop.f32.mrf.mxu1 }
 0x2d3   :  { %v691_v29 = vadd.f32 %v690_v11, %v3791_v27  ;;  %v711_v54 = vadd.f32 %v710_v12, %v3793_v3 }
 0x2d5   :  { %v2762_v19 = vmul.f32 -1.442695, %v691_v29  ;;  %v2763_v20 = vmul.f32 -1.442695, %v711_v54 }
 0x2d7   :  { %2909 = vpow2.f32 %v2762_v19 }
 0x2d8   :  { %2911 = vpow2.f32 %v2763_v20 }
 0x2d9   :  { %v750_v9 = vpop.f32.mrf.mxu3  ;;  %v730_v33 = vpop.f32.mrf.mxu2 }
 0x2da   :  { %v751_v16 = vadd.f32 %v750_v9, %v3811_v18  ;;  %v731_v30 = vadd.f32 %v730_v33, %v3822_v38 }
 0x2dc   :  { %v2764_v22 = vmul.f32 -1.442695, %v751_v16 }
 0x2dd   :  { %v2910_v15 = vpop.eup %2909 }
 0x2de   :  { %v2912_v13 = vpop.eup %2911  ;;  %v756_v6 = vadd.f32 1.0, %v2910_v15  ;;  %2913 = vpow2.f32 %v2764_v22 }
 0x2df   :  { %v775_v8 = vadd.f32 1.0, %v2912_v13 }
 0x2e0   :  { %2915 = vrcp.f32 %v756_v6  ;;  %v768_v46 = vand.u32 2147483648, %v756_v6  ;;  %v766_v51 = vand.u32 2147483647, %v756_v6  ;;  %vm762_vm8 = vweird.f32 %v756_v6 }
 0x2e1   :  { %2917 = vrcp.f32 %v775_v8  ;;  %v787_v47 = vand.u32 2147483648, %v775_v8  ;;  %v785_v12 = vand.u32 2147483647, %v775_v8  ;;  %vm781_vm9 = vweird.f32 %v775_v8 }
 0x2e2   :  { %v769_v19 = vor.u32 1.1754944e-38, %v768_v46  ;;  %vm767_vm12 = vcmp.eq.f32.partialorder %v766_v51, 8.507059e+37 }
 0x2e3   :  { %v788_v16 = vor.u32 1.1754944e-38, %v787_v47  ;;  %vm786_vm13 = vcmp.eq.f32.partialorder %v785_v12, 8.507059e+37 }
 0x2e4   :  { %v2914_v25 = vpop.eup %2913 }
 0x2e5   :  { %v795_v41 = vadd.f32 1.0, %v2914_v25 }
 0x2e6   :  { %v2916_v23 = vpop.eup %2915 }
 0x2e7   :  { %v2918_v32 = vpop.eup %2917  ;;  %v758_v7 = vmul.f32 %v2916_v23, %v756_v6  ;;  %2919 = vrcp.f32 %v795_v41  ;;  %vm763_vm6 = vweird.f32 %v2916_v23  ;;  %vm801_vm15 = vweird.f32 %v795_v41 }
 0x2e8   :  { %v777_v24 = vmul.f32 %v2918_v32, %v775_v8  ;;  %2921 = vtanh.f32 %v731_v30  ;;  %vm782_vm7 = vweird.f32 %v2918_v32  ;;  %vm764_vm10 = vmor %vm762_vm8, %vm763_vm6 }
 0x2e9   :  { %v759_v44 = vsub.f32 1.0, %v758_v7  ;;  %vm783_vm11 = vmor %vm781_vm9, %vm782_vm7 }
 0x2ea   :  { %v778_v45 = vsub.f32 1.0, %v777_v24 }
 0x2eb   :  { %v760_v50 = vmul.f32 %v2916_v23, %v759_v44 }
 0x2ec   :  { %v779_v11 = vmul.f32 %v2918_v32, %v778_v45  ;;  %v807_v45 = vand.u32 2147483648, %v795_v41 }
 0x2ed   :  { %v2920_v29 = vpop.eup %2919  ;;  %v761_v54 = vadd.f32 %v2916_v23, %v760_v50 }
 0x2ee   :  { %v780_v20 = vadd.f32 %v2918_v32, %v779_v11  ;;  %v797_v9 = vmul.f32 %v2920_v29, %v795_v41  ;;  %v2922_v15 = vpop.eup %2921  ;;  %vm802_vm14 = vweird.f32 %v2920_v29  ;;  %v808_v47 = vor.u32 1.1754944e-38, %v807_v45 }
 0x2ef   :  { %v765_v22 = vsel %vm764_vm10, %v2916_v23, %v761_v54  ;;  %v805_v23 = vand.u32 2147483647, %v795_v41  ;;  %vm803_vm5 = vmor %vm801_vm15, %vm802_vm14  ;;  %v4826_v54 = vld [vmem:[#allocation43_spill] sm:$0xff] }
 0x2f0   :  { %v770_v13 = vsel %vm767_vm12, %v769_v19, %v765_v22  ;;  %v784_v33 = vsel %vm783_vm11, %v2918_v32, %v780_v20  ;;  %v798_v25 = vsub.f32 1.0, %v797_v9  ;;  %v4827_v20 = vld [vmem:[#allocation44_spill] sm:$0xff]  ;;  %v4828_v22 = vld [vmem:[#allocation45_spill] sm:$0xff] }
 0x2f1   :  { %v789_v30 = vsel %vm786_vm13, %v788_v16, %v784_v33  ;;  %v812_v7 = vmul.f32 %v2922_v15, %v770_v13  ;;  %vm806_vm6 = vcmp.eq.f32.partialorder %v805_v23, 8.507059e+37  ;;  %v4829_v23 = vld [vmem:[#allocation52_spill] sm:$0xff] }
 0x2f2   :  { %v811_v24 = vmul.f32 %v789_v30, %v3825_v5  ;;  %v799_v44 = vmul.f32 %v2920_v29, %v798_v25 }
 0x2f4   :  { %v3982_v6 = vadd.f32 %v812_v7, %v811_v24  ;;  %v800_v8 = vadd.f32 %v2920_v29, %v799_v44 }
 0x2f6   :  { %2923 = vtanh.f32 %v3982_v6  ;;  %v804_v46 = vsel %vm803_vm5, %v2920_v29, %v800_v8 }
 0x2f7   :  { %v809_v50 = vsel %vm806_vm6, %v808_v47, %v804_v46 }
 0x2fc   :  { %v2924_v32 = vpop.eup %2923 }
 0x2fd   :  { %v815_v51 = vmul.f32 %v2924_v32, %v809_v50 }
 0x2ff   :  { %979 = vrot.lane.b32.xlu2 %v815_v51, %s3407_s3  ;;  %v817_v5 = vrot.slane %v815_v51, 1  ;;  %819 = vst.msk [vmem:[#allocation15 + $0x1] sm:$0x1] %vm505_vm4, %v815_v51 }
 0x301   :  { %820 = vst.msk [vmem:[#allocation15 + $0x9] sm:$0x1] %vm505_vm4, %v817_v5 }
 0x32d   :  { %v853_v11 = vpop.f32.mrf.mxu0  ;;  %v873_v12 = vpop.f32.mrf.mxu1 }
 0x32e   :  { %v854_v19 = vadd.f32 %v853_v11, %v4826_v54  ;;  %v874_v41 = vadd.f32 %v873_v12, %v4827_v20 }
 0x330   :  { %v2769_v9 = vmul.f32 -1.442695, %v854_v19  ;;  %v2770_v29 = vmul.f32 -1.442695, %v874_v41 }
 0x332   :  { %2925 = vpow2.f32 %v2769_v9 }
 0x333   :  { %2927 = vpow2.f32 %v2770_v29 }
 0x334   :  { %v913_v16 = vpop.f32.mrf.mxu3  ;;  %v893_v24 = vpop.f32.mrf.mxu2 }
 0x335   :  { %v914_v15 = vadd.f32 %v913_v16, %v4828_v22  ;;  %v894_v46 = vadd.f32 %v893_v24, %v4829_v23 }
 0x337   :  { %v2771_v13 = vmul.f32 -1.442695, %v914_v15 }
 0x338   :  { %v2926_v33 = vpop.eup %2925 }
 0x339   :  { %v2928_v25 = vpop.eup %2927  ;;  %v919_v30 = vadd.f32 1.0, %v2926_v33  ;;  %2929 = vpow2.f32 %v2771_v13 }
 0x33a   :  { %v938_v7 = vadd.f32 1.0, %v2928_v25 }
 0x33b   :  { %2931 = vrcp.f32 %v919_v30  ;;  %v931_v11 = vand.u32 2147483648, %v919_v30  ;;  %v929_v41 = vand.u32 2147483647, %v919_v30  ;;  %vm925_vm9 = vweird.f32 %v919_v30 }
 0x33c   :  { %2933 = vrcp.f32 %v938_v7  ;;  %v950_v12 = vand.u32 2147483648, %v938_v7  ;;  %v948_v29 = vand.u32 2147483647, %v938_v7  ;;  %vm944_vm10 = vweird.f32 %v938_v7 }
 0x33d   :  { %v932_v13 = vor.u32 1.1754944e-38, %v931_v11  ;;  %vm930_vm13 = vcmp.eq.f32.partialorder %v929_v41, 8.507059e+37 }
 0x33e   :  { %v951_v24 = vor.u32 1.1754944e-38, %v950_v12  ;;  %vm949_vm14 = vcmp.eq.f32.partialorder %v948_v29, 8.507059e+37 }
 0x33f   :  { %v2930_v44 = vpop.eup %2929 }
 0x340   :  { %v958_v8 = vadd.f32 1.0, %v2930_v44 }
 0x341   :  { %v2932_v45 = vpop.eup %2931 }
 0x342   :  { %v2934_v47 = vpop.eup %2933  ;;  %v921_v32 = vmul.f32 %v2932_v45, %v919_v30  ;;  %2935 = vrcp.f32 %v958_v8  ;;  %vm926_vm7 = vweird.f32 %v2932_v45  ;;  %v970_v11 = vand.u32 2147483648, %v958_v8 }
 0x343   :  { %v940_v50 = vmul.f32 %v2934_v47, %v938_v7  ;;  %2937 = vtanh.f32 %v894_v46  ;;  %vm945_vm8 = vweird.f32 %v2934_v47  ;;  %vm927_vm11 = vmor %vm925_vm9, %vm926_vm7  ;;  %vm964_vm5 = vweird.f32 %v958_v8 }
 0x344   :  { %v922_v51 = vsub.f32 1.0, %v921_v32  ;;  %vm946_vm12 = vmor %vm944_vm10, %vm945_vm8  ;;  %v971_v41 = vor.u32 1.1754944e-38, %v970_v11  ;;  %v4050_v11 = vld [vmem:[#allocation3 + $0x60] sm:$0xff] }
 0x345   :  { %v941_v5 = vsub.f32 1.0, %v940_v50  ;;  %4830 = vst [vmem:[#allocation40_spill] sm:$0xff] %v4050_v11 }
 0x346   :  { %v923_v19 = vmul.f32 %v2932_v45, %v922_v51 }
 0x347   :  { %v942_v9 = vmul.f32 %v2934_v47, %v941_v5 }
 0x348   :  { %v2936_v16 = vpop.eup %2935  ;;  %v924_v15 = vadd.f32 %v2932_v45, %v923_v19 }
 0x349   :  { %v943_v33 = vadd.f32 %v2934_v47, %v942_v9  ;;  %v960_v25 = vmul.f32 %v2936_v16, %v958_v8  ;;  %v2938_v46 = vpop.eup %2937  ;;  %vm965_vm15 = vweird.f32 %v2936_v16 }
 0x34a   :  { %v928_v44 = vsel %vm927_vm11, %v2932_v45, %v924_v15  ;;  %v968_v45 = vand.u32 2147483647, %v958_v8  ;;  %vm966_vm6 = vmor %vm964_vm5, %vm965_vm15  ;;  %v4005_v8 = vld [vmem:[#allocation3 + $0xe8] sm:$0xff] }
 0x34b   :  { %v933_v32 = vsel %vm930_vm13, %v932_v13, %v928_v44  ;;  %v947_v50 = vsel %vm946_vm12, %v2934_v47, %v943_v33  ;;  %v961_v51 = vsub.f32 1.0, %v960_v25  ;;  %v4014_v13 = vld [vmem:[#allocation3 + $0xc0] sm:$0xff]  ;;  %v4017_v33 = vld [vmem:[#allocation3 + $0xc8] sm:$0xff]  ;;  %v4020_v25 = vld [vmem:[#allocation3 + $0xd0] sm:$0xff] }
 0x34c   :  { %v952_v5 = vsel %vm949_vm14, %v951_v24, %v947_v50  ;;  %v975_v23 = vmul.f32 %v2938_v46, %v933_v32  ;;  %vm969_vm7 = vcmp.eq.f32.partialorder %v968_v45, 8.507059e+37  ;;  %v4023_v24 = vld [vmem:[#allocation3 + $0xd8] sm:$0xff]  ;;  %v4026_v44 = vld [vmem:[#allocation3 + $0xa0] sm:$0xff]  ;;  %v4029_v46 = vld [vmem:[#allocation3 + $0xa8] sm:$0xff] }
 0x34d   :  { %v974_v22 = vmul.f32 %v952_v5, %v3836_v35  ;;  %v962_v19 = vmul.f32 %v2936_v16, %v961_v51  ;;  %v4032_v32 = vld [vmem:[#allocation3 + $0xb0] sm:$0xff]  ;;  %v4035_v50 = vld [vmem:[#allocation3 + $0xb8] sm:$0xff]  ;;  %v4038_v51 = vld [vmem:[#allocation3 + $0x80] sm:$0xff] }
 0x34e   :  { %v4041_v5 = vld [vmem:[#allocation3 + $0x88] sm:$0xff] }
 0x34f   :  { %v3993_v30 = vadd.f32 %v975_v23, %v974_v22  ;;  %v963_v7 = vadd.f32 %v2936_v16, %v962_v19  ;;  %v4002_v22 = vld [vmem:[#allocation3 + $0xe0] sm:$0xff]  ;;  %v4008_v23 = vld [vmem:[#allocation3 + $0xf0] sm:$0xff]  ;;  %v4053_v45 = vld [vmem:[#allocation3 + $0x68] sm:$0xff] }
 0x350   :  { %v4044_v19 = vld [vmem:[#allocation3 + $0x90] sm:$0xff]  ;;  %4831 = vst [vmem:[#allocation41_spill] sm:$0xff] %v4053_v45 }
 0x351   :  { %2939 = vtanh.f32 %v3993_v30  ;;  %v967_v12 = vsel %vm966_vm6, %v2936_v16, %v963_v7  ;;  %v4011_v16 = vld [vmem:[#allocation3 + $0xf8] sm:$0xff] }
 0x352   :  { %v972_v9 = vsel %vm969_vm7, %v971_v41, %v967_v12  ;;  %v4047_v7 = vld [vmem:[#allocation3 + $0x98] sm:$0xff]  ;;  %v4056_v12 = vld [vmem:[#allocation3 + $0x70] sm:$0xff] }
 0x353   :  { %4832 = vst [vmem:[#allocation42_spill] sm:$0xff] %v4056_v12  ;;  %v4059_v41 = vld [vmem:[#allocation3 + $0x78] sm:$0xff] }
 0x354   :  { %4833 = vst [vmem:[#allocation43_spill] sm:$0xff] %v4059_v41 }
 0x357   :  { %v2940_v47 = vpop.eup %2939 }
 0x358   :  { %v978_v29 = vmul.f32 %v2940_v47, %v972_v9  ;;  %v4062_v47 = vld [vmem:[#allocation3 + $0x40] sm:$0xff]  ;;  %v4065_v9 = vld [vmem:[#allocation3 + $0x48] sm:$0xff] }
 0x359   :  { %v980_v15 = vpop.permute.xlu2 %979  ;;  %4834 = vst [vmem:[#allocation44_spill] sm:$0xff] %v4062_v47 }
 0x35a   :  { %v982_v35 = vsel %vm184_vm2, %v978_v29, %v980_v15  ;;  %1142 = vrot.lane.b32.xlu0 %v978_v29, %s3407_s3  ;;  %4835 = vst [vmem:[#allocation53_spill] sm:$0xff] %v4065_v9  ;;  %v4068_v29 = vld [vmem:[#allocation3 + $0x50] sm:$0xff]  ;;  %v4071_v15 = vld [vmem:[#allocation3 + $0x58] sm:$0xff] }
 0x35b   :  { %2772 = vmatmul.msk.f32.vlgmr.msrb.gmra.mxu0 %vm195_vm3, %v982_v35  ;;  %2773 = vmatmul.msk.f32.vlgmr.msrb.gmra.mxu1 %vm195_vm3, %v982_v35  ;;  %4836 = vst [vmem:[#allocation54_spill] sm:$0xff] %v4068_v29 }
 0x35c   :  { %2774 = vmatmul.msk.f32.vlgmr.msrb.gmra.mxu2 %vm195_vm3, %v982_v35  ;;  %2775 = vmatmul.msk.f32.vlgmr.msrb.gmra.mxu3 %vm195_vm3, %v982_v35  ;;  %4837 = vst [vmem:[#allocation55_spill] sm:$0xff] %v4071_v15  ;;  %v4074_v35 = vld [vmem:[#allocation3 + $0x20] sm:$0xff] }
 0x35d   :  { %1307 = vmatpush.msrb.mxu0 %v4002_v22  ;;  %1327 = vmatpush.msrb.mxu1 %v4005_v8  ;;  %4838 = vst [vmem:[#allocation56_spill] sm:$0xff] %v4074_v35 }
 0x35e   :  { %1347 = vmatpush.msrb.mxu2 %v4008_v23  ;;  %1367 = vmatpush.msrb.mxu3 %v4011_v16 }
 0x35f   :  { %1308 = vmatpush.msrb.mxu0 %v4014_v13  ;;  %1328 = vmatpush.msrb.mxu1 %v4017_v33 }
 0x360   :  { %1348 = vmatpush.msrb.mxu2 %v4020_v25  ;;  %1368 = vmatpush.msrb.mxu3 %v4023_v24 }
 0x361   :  { %1309 = vmatpush.msrb.mxu0 %v4026_v44  ;;  %1329 = vmatpush.msrb.mxu1 %v4029_v46 }
 0x362   :  { %1349 = vmatpush.msrb.mxu2 %v4032_v32  ;;  %1369 = vmatpush.msrb.mxu3 %v4035_v50 }
 0x363   :  { %1310 = vmatpush.msrb.mxu0 %v4038_v51  ;;  %1330 = vmatpush.msrb.mxu1 %v4041_v5 }
 0x364   :  { %1350 = vmatpush.msrb.mxu2 %v4044_v19  ;;  %1370 = vmatpush.msrb.mxu3 %v4047_v7 }
 0x365   :  { %1311 = vmatpush.msrb.mxu0 %v4050_v11  ;;  %1331 = vmatpush.msrb.mxu1 %v4053_v45  ;;  %v1134_v45 = vld [vmem:[#allocation9 + $0x3] sm:$0x1] }
 0x366   :  { %1351 = vmatpush.msrb.mxu2 %v4056_v12  ;;  %1371 = vmatpush.msrb.mxu3 %v4059_v41  ;;  %v4077_v41 = vld [vmem:[#allocation3 + $0x28] sm:$0xff] }
 0x367   :  { %1312 = vmatpush.msrb.mxu0 %v4062_v47  ;;  %1332 = vmatpush.msrb.mxu1 %v4065_v9  ;;  %4839 = vst [vmem:[#allocation57_spill] sm:$0xff] %v4077_v41  ;;  %v4080_v47 = vld [vmem:[#allocation3 + $0x30] sm:$0xff]  ;;  %v4083_v9 = vld [vmem:[#allocation3 + $0x38] sm:$0xff] }
 0x368   :  { %1352 = vmatpush.msrb.mxu2 %v4068_v29  ;;  %1372 = vmatpush.msrb.mxu3 %v4071_v15  ;;  %4840 = vst [vmem:[#allocation58_spill] sm:$0xff] %v4080_v47  ;;  %v4086_v29 = vld [vmem:[#allocation3] sm:$0xff]  ;;  %v4089_v15 = vld [vmem:[#allocation3 + $0x8] sm:$0xff] }
 0x369   :  { %1313 = vmatpush.msrb.mxu0 %v4074_v35  ;;  %1333 = vmatpush.msrb.mxu1 %v4077_v41  ;;  %4841 = vst [vmem:[#allocation59_spill] sm:$0xff] %v4083_v9  ;;  %v4092_v35 = vld [vmem:[#allocation3 + $0x10] sm:$0xff]  ;;  %v4095_v41 = vld [vmem:[#allocation3 + $0x18] sm:$0xff] }
 0x36a   :  { %1353 = vmatpush.msrb.mxu2 %v4080_v47  ;;  %1373 = vmatpush.msrb.mxu3 %v4083_v9  ;;  %4842 = vst [vmem:[#allocation60_spill] sm:$0xff] %v4086_v29  ;;  %v1135_v47 = vld [vmem:[#allocation9 + $0xb] sm:$0x1] }
 0x36b   :  { %1314 = vmatpush.msrb.mxu0 %v4086_v29  ;;  %1334 = vmatpush.msrb.mxu1 %v4089_v15  ;;  %v1138_v12 = vrot.slane %v1135_v47, 7 }
 0x36c   :  { %1354 = vmatpush.msrb.mxu2 %v4092_v35  ;;  %1374 = vmatpush.msrb.mxu3 %v4095_v41 }
 0x36d   :  { %v1139_v9 = vsel %vm177_vm1, %v1138_v12, %v1134_v45 }
 0x3cc   :  { %v1143_v11 = vpop.permute.xlu0 %1142 }
 0x3cd   :  { %v1145_v29 = vsel %vm184_vm2, %v1139_v9, %v1143_v11 }
 0x3ce   :  { %2779 = vmatmul.msk.f32.vlgmr.msra.gmra.mxu0 %vm195_vm3, %v1145_v29  ;;  %2780 = vmatmul.msk.f32.vlgmr.msra.gmra.mxu1 %vm195_vm3, %v1145_v29 }
 0x3cf   :  { %2781 = vmatmul.msk.f32.vlgmr.msra.gmra.mxu2 %vm195_vm3, %v1145_v29  ;;  %2782 = vmatmul.msk.f32.vlgmr.msra.gmra.mxu3 %vm195_vm3, %v1145_v29 }
 0x3d0   :  { %1470 = vmatpush.msra.mxu0 %v3883_v42  ;;  %1490 = vmatpush.msra.mxu1 %v3886_v43 }
 0x3d1   :  { %1510 = vmatpush.msra.mxu2 %v3889_v52  ;;  %1530 = vmatpush.msra.mxu3 %v3892_v55 }
 0x3d2   :  { %1471 = vmatpush.msra.mxu0 %v3895_v56  ;;  %1491 = vmatpush.msra.mxu1 %v3898_v57 }
 0x3d3   :  { %1511 = vmatpush.msra.mxu2 %v3901_v58  ;;  %1531 = vmatpush.msra.mxu3 %v3904_v61 }
 0x3d4   :  { %1472 = vmatpush.msra.mxu0 %v3907_v62  ;;  %1492 = vmatpush.msra.mxu1 %v3910_v63 }
 0x3d5   :  { %1512 = vmatpush.msra.mxu2 %v3913_v0  ;;  %1532 = vmatpush.msra.mxu3 %v3916_v1 }
 0x3d6   :  { %1473 = vmatpush.msra.mxu0 %v3919_v34  ;;  %1493 = vmatpush.msra.mxu1 %v3922_v39 }
 0x3d7   :  { %1513 = vmatpush.msra.mxu2 %v3925_v40  ;;  %1533 = vmatpush.msra.mxu3 %v3928_v49 }
 0x3d8   :  { %v1003_v11 = vpop.f32.mrf.mxu0  ;;  %v1023_v45 = vpop.f32.mrf.mxu1  ;;  %1474 = vmatpush.msra.mxu0 %v3931_v53  ;;  %1494 = vmatpush.msra.mxu1 %v3934_v59 }
 0x3d9   :  { %v1004_v12 = vadd.f32 %v1003_v11, %v3791_v27  ;;  %v1024_v47 = vadd.f32 %v1023_v45, %v3793_v3  ;;  %1514 = vmatpush.msra.mxu2 %v3937_v60  ;;  %1534 = vmatpush.msra.mxu3 %v3940_v48  ;;  %v4137_v45 = vld [vmem:[#allocation2 + $0x18] sm:$0xff] }
 0x3da   :  { %1475 = vmatpush.msra.mxu0 %v3943_v2  ;;  %1495 = vmatpush.msra.mxu1 %v3946_v28  ;;  %4843 = vst [vmem:[#allocation61_spill] sm:$0xff] %v4137_v45 }
 0x3db   :  { %v2776_v9 = vmul.f32 -1.442695, %v1004_v12  ;;  %v2777_v29 = vmul.f32 -1.442695, %v1024_v47  ;;  %1515 = vmatpush.msra.mxu2 %v3949_v4  ;;  %1535 = vmatpush.msra.mxu3 %v3952_v36 }
 0x3dc   :  { %1476 = vmatpush.msra.mxu0 %v3955_v37  ;;  %1496 = vmatpush.msra.mxu1 %v3958_v14 }
 0x3dd   :  { %2941 = vpow2.f32 %v2776_v9  ;;  %1516 = vmatpush.msra.mxu2 %v3961_v21  ;;  %1536 = vmatpush.msra.mxu3 %v3964_v31 }
 0x3de   :  { %2943 = vpow2.f32 %v2777_v29  ;;  %1477 = vmatpush.msra.mxu0 %v3967_v26  ;;  %1497 = vmatpush.msra.mxu1 %v3970_v17 }
 0x3df   :  { %v1063_v11 = vpop.f32.mrf.mxu3  ;;  %1517 = vmatpush.msra.mxu2 %v3973_v10  ;;  %1537 = vmatpush.msra.mxu3 %v4137_v45  ;;  %v1043_v29 = vpop.f32.mrf.mxu2 }
 0x3e0   :  { %v1064_v12 = vadd.f32 %v1063_v11, %v3811_v18  ;;  %v1044_v10 = vadd.f32 %v1043_v29, %v3822_v38 }
 0x3e2   :  { %v2778_v47 = vmul.f32 -1.442695, %v1064_v12 }
 0x3e3   :  { %v2942_v9 = vpop.eup %2941 }
 0x3e4   :  { %v2944_v3 = vpop.eup %2943  ;;  %v1069_v27 = vadd.f32 1.0, %v2942_v9  ;;  %2945 = vpow2.f32 %v2778_v47 }
 0x3e5   :  { %v1088_v31 = vadd.f32 1.0, %v2944_v3 }
 0x3e6   :  { %2947 = vrcp.f32 %v1069_v27  ;;  %v1081_v12 = vand.u32 2147483648, %v1069_v27  ;;  %v1079_v3 = vand.u32 2147483647, %v1069_v27  ;;  %vm1075_vm10 = vweird.f32 %v1069_v27 }
 0x3e7   :  { %2949 = vrcp.f32 %v1088_v31  ;;  %v1100_v18 = vand.u32 2147483648, %v1088_v31  ;;  %v1098_v4 = vand.u32 2147483647, %v1088_v31  ;;  %vm1094_vm11 = vweird.f32 %v1088_v31 }
 0x3e8   :  { %v1082_v29 = vor.u32 1.1754944e-38, %v1081_v12  ;;  %vm1080_vm14 = vcmp.eq.f32.partialorder %v1079_v3, 8.507059e+37 }
 0x3e9   :  { %vm1099_vm15 = vcmp.eq.f32.partialorder %v1098_v4, 8.507059e+37 }
 0x3ea   :  { %v2946_v26 = vpop.eup %2945 }
 0x3eb   :  { %v1108_v17 = vadd.f32 1.0, %v2946_v26 }
 0x3ec   :  { %v2948_v21 = vpop.eup %2947 }
 0x3ed   :  { %v2950_v14 = vpop.eup %2949  ;;  %v1071_v37 = vmul.f32 %v2948_v21, %v1069_v27  ;;  %2951 = vrcp.f32 %v1108_v17  ;;  %vm1076_vm8 = vweird.f32 %v2948_v21  ;;  %v1120_v12 = vand.u32 2147483648, %v1108_v17 }
 0x3ee   :  { %v1090_v45 = vmul.f32 %v2950_v14, %v1088_v31  ;;  %2953 = vtanh.f32 %v1044_v10  ;;  %vm1095_vm9 = vweird.f32 %v2950_v14  ;;  %vm1077_vm12 = vmor %vm1075_vm10, %vm1076_vm8  ;;  %vm1114_vm6 = vweird.f32 %v1108_v17 }
 0x3ef   :  { %v1072_v36 = vsub.f32 1.0, %v1071_v37  ;;  %vm1096_vm13 = vmor %vm1094_vm11, %vm1095_vm9  ;;  %v1101_v37 = vor.u32 1.1754944e-38, %v1100_v18  ;;  %v1118_v18 = vand.u32 2147483647, %v1108_v17  ;;  %v1121_v3 = vor.u32 1.1754944e-38, %v1120_v12 }
 0x3f0   :  { %v1091_v11 = vsub.f32 1.0, %v1090_v45 }
 0x3f1   :  { %v1073_v9 = vmul.f32 %v2948_v21, %v1072_v36  ;;  %vm1119_vm8 = vcmp.eq.f32.partialorder %v1118_v18, 8.507059e+37  ;;  %v4845_v18 = vld [vmem:[#allocation52_spill] sm:$0xff] }
 0x3f2   :  { %v1092_v47 = vmul.f32 %v2950_v14, %v1091_v11 }
 0x3f3   :  { %v2952_v28 = vpop.eup %2951  ;;  %v1074_v26 = vadd.f32 %v2948_v21, %v1073_v9 }
 0x3f4   :  { %v1093_v38 = vadd.f32 %v2950_v14, %v1092_v47  ;;  %v1110_v2 = vmul.f32 %v2952_v28, %v1108_v17  ;;  %v2954_v10 = vpop.eup %2953  ;;  %vm1115_vm5 = vweird.f32 %v2952_v28  ;;  %v4844_v47 = vld [vmem:[#allocation45_spill] sm:$0xff] }
 0x3f5   :  { %v1078_v45 = vsel %vm1077_vm12, %v2948_v21, %v1074_v26  ;;  %vm1116_vm7 = vmor %vm1114_vm6, %vm1115_vm5 }
 0x3f6   :  { %v1083_v48 = vsel %vm1080_vm14, %v1082_v29, %v1078_v45  ;;  %v1097_v36 = vsel %vm1096_vm13, %v2950_v14, %v1093_v38  ;;  %v1111_v60 = vsub.f32 1.0, %v1110_v2 }
 0x3f7   :  { %v1102_v11 = vsel %vm1099_vm15, %v1101_v37, %v1097_v36  ;;  %v1125_v59 = vmul.f32 %v2954_v10, %v1083_v48 }
 0x3f8   :  { %v1124_v53 = vmul.f32 %v1102_v11, %v3982_v6  ;;  %v1112_v9 = vmul.f32 %v2952_v28, %v1111_v60 }
 0x3fa   :  { %v4143_v27 = vadd.f32 %v1125_v59, %v1124_v53  ;;  %v1113_v31 = vadd.f32 %v2952_v28, %v1112_v9 }
 0x3fc   :  { %2955 = vtanh.f32 %v4143_v27  ;;  %v1117_v21 = vsel %vm1116_vm7, %v2952_v28, %v1113_v31 }
 0x3fd   :  { %v1122_v2 = vsel %vm1119_vm8, %v1121_v3, %v1117_v21 }
 0x402   :  { %v2956_v38 = vpop.eup %2955 }
 0x403   :  { %v1128_v4 = vmul.f32 %v2956_v38, %v1122_v2 }
 0x405   :  { %1292 = vrot.lane.b32.xlu1 %v1128_v4, %s3407_s3  ;;  %v1130_v48 = vrot.slane %v1128_v4, 1  ;;  %1132 = vst.msk [vmem:[#allocation15 + $0x2] sm:$0x1] %vm505_vm4, %v1128_v4 }
 0x407   :  { %1133 = vst.msk [vmem:[#allocation15 + $0xa] sm:$0x1] %vm505_vm4, %v1130_v48 }
 0x44b   :  { %v1166_v53 = vpop.f32.mrf.mxu0  ;;  %v1186_v59 = vpop.f32.mrf.mxu1 }
 0x44c   :  { %v1167_v60 = vadd.f32 %v1166_v53, %v4826_v54  ;;  %v1187_v14 = vadd.f32 %v1186_v59, %v4827_v20 }
 0x44e   :  { %v2783_v17 = vmul.f32 -1.442695, %v1167_v60  ;;  %v2784_v28 = vmul.f32 -1.442695, %v1187_v14 }
 0x450   :  { %2957 = vpow2.f32 %v2783_v17 }
 0x451   :  { %2959 = vpow2.f32 %v2784_v28 }
 0x452   :  { %v1226_v6 = vpop.f32.mrf.mxu3  ;;  %v1206_v11 = vpop.f32.mrf.mxu2 }
 0x453   :  { %v1227_v26 = vadd.f32 %v1226_v6, %v4844_v47  ;;  %v1207_v21 = vadd.f32 %v1206_v11, %v4845_v18 }
 0x455   :  { %v2785_v29 = vmul.f32 -1.442695, %v1227_v26 }
 0x456   :  { %v2958_v37 = vpop.eup %2957 }
 0x457   :  { %v2960_v45 = vpop.eup %2959  ;;  %v1232_v10 = vadd.f32 1.0, %v2958_v37  ;;  %2961 = vpow2.f32 %v2785_v29 }
 0x458   :  { %v1251_v36 = vadd.f32 1.0, %v2960_v45 }
 0x459   :  { %2963 = vrcp.f32 %v1232_v10  ;;  %v1244_v53 = vand.u32 2147483648, %v1232_v10  ;;  %v1242_v14 = vand.u32 2147483647, %v1232_v10  ;;  %vm1238_vm11 = vweird.f32 %v1232_v10 }
 0x45a   :  { %2965 = vrcp.f32 %v1251_v36  ;;  %v1263_v59 = vand.u32 2147483648, %v1251_v36  ;;  %v1261_v28 = vand.u32 2147483647, %v1251_v36  ;;  %vm1257_vm12 = vweird.f32 %v1251_v36 }
 0x45b   :  { %v1245_v29 = vor.u32 1.1754944e-38, %v1244_v53  ;;  %vm1243_vm15 = vcmp.eq.f32.partialorder %v1242_v14, 8.507059e+37 }
 0x45c   :  { %v1264_v11 = vor.u32 1.1754944e-38, %v1263_v59  ;;  %vm1262_vm5 = vcmp.eq.f32.partialorder %v1261_v28, 8.507059e+37 }
 0x45d   :  { %v2962_v9 = vpop.eup %2961 }
 0x45e   :  { %v1271_v31 = vadd.f32 1.0, %v2962_v9 }
 0x45f   :  { %v2964_v12 = vpop.eup %2963 }
 0x460   :  { %v2966_v3 = vpop.eup %2965  ;;  %v1234_v38 = vmul.f32 %v2964_v12, %v1232_v10  ;;  %2967 = vrcp.f32 %v1271_v31  ;;  %vm1239_vm9 = vweird.f32 %v2964_v12  ;;  %v1283_v53 = vand.u32 2147483648, %v1271_v31 }
 0x461   :  { %v1253_v2 = vmul.f32 %v2966_v3, %v1251_v36  ;;  %2969 = vtanh.f32 %v1207_v21  ;;  %vm1258_vm10 = vweird.f32 %v2966_v3  ;;  %vm1240_vm13 = vmor %vm1238_vm11, %vm1239_vm9  ;;  %vm1277_vm7 = vweird.f32 %v1271_v31 }
 0x462   :  { %v1235_v4 = vsub.f32 1.0, %v1234_v38  ;;  %vm1259_vm14 = vmor %vm1257_vm12, %vm1258_vm10  ;;  %v1284_v14 = vor.u32 1.1754944e-38, %v1283_v53 }
 0x463   :  { %v1254_v48 = vsub.f32 1.0, %v1253_v2 }
 0x464   :  { %v1236_v60 = vmul.f32 %v2964_v12, %v1235_v4 }
 0x465   :  { %v1255_v17 = vmul.f32 %v2966_v3, %v1254_v48 }
 0x466   :  { %v2968_v6 = vpop.eup %2967  ;;  %v1237_v26 = vadd.f32 %v2964_v12, %v1236_v60 }
 0x467   :  { %v1256_v37 = vadd.f32 %v2966_v3, %v1255_v17  ;;  %v1273_v45 = vmul.f32 %v2968_v6, %v1271_v31  ;;  %v2970_v21 = vpop.eup %2969  ;;  %vm1278_vm6 = vweird.f32 %v2968_v6 }
 0x468   :  { %v1241_v9 = vsel %vm1240_vm13, %v2964_v12, %v1237_v26  ;;  %v1281_v12 = vand.u32 2147483647, %v1271_v31  ;;  %vm1279_vm8 = vmor %vm1277_vm7, %vm1278_vm6  ;;  %v4847_v31 = vld [vmem:[#allocation41_spill] sm:$0xff] }
 0x469   :  { %v1246_v38 = vsel %vm1243_vm15, %v1245_v29, %v1241_v9  ;;  %v1260_v2 = vsel %vm1259_vm14, %v2966_v3, %v1256_v37  ;;  %v1274_v4 = vsub.f32 1.0, %v1273_v45  ;;  %v4850_v29 = vld [vmem:[#allocation44_spill] sm:$0xff]  ;;  %v4851_v37 = vld [vmem:[#allocation53_spill] sm:$0xff]  ;;  %v4852_v45 = vld [vmem:[#allocation54_spill] sm:$0xff] }
 0x46a   :  { %v1265_v48 = vsel %vm1262_vm5, %v1264_v11, %v1260_v2  ;;  %v1288_v18 = vmul.f32 %v2970_v21, %v1246_v38  ;;  %vm1282_vm9 = vcmp.eq.f32.partialorder %v1281_v12, 8.507059e+37  ;;  %v4853_v11 = vld [vmem:[#allocation55_spill] sm:$0xff]  ;;  %v4854_v9 = vld [vmem:[#allocation56_spill] sm:$0xff]  ;;  %v4855_v21 = vld [vmem:[#allocation57_spill] sm:$0xff] }
 0x46b   :  { %v1287_v47 = vmul.f32 %v1265_v48, %v3993_v30  ;;  %v1275_v60 = vmul.f32 %v2968_v6, %v1274_v4  ;;  %v4856_v38 = vld [vmem:[#allocation58_spill] sm:$0xff]  ;;  %v4857_v2 = vld [vmem:[#allocation59_spill] sm:$0xff]  ;;  %v4858_v4 = vld [vmem:[#allocation60_spill] sm:$0xff] }
 0x46c   :  { %v1448_v48 = vld [vmem:[#allocation9 + $0xc] sm:$0x1] }
 0x46d   :  { %v4154_v10 = vadd.f32 %v1288_v18, %v1287_v47  ;;  %v1276_v36 = vadd.f32 %v2968_v6, %v1275_v60  ;;  %v4846_v47 = vld [vmem:[#allocation40_spill] sm:$0xff]  ;;  %v4848_v18 = vld [vmem:[#allocation42_spill] sm:$0xff]  ;;  %v1451_v60 = vrot.slane %v1448_v48, 7 }
 0x46f   :  { %2971 = vtanh.f32 %v4154_v10  ;;  %v1280_v59 = vsel %vm1279_vm8, %v2968_v6, %v1276_v36  ;;  %v4849_v6 = vld [vmem:[#allocation43_spill] sm:$0xff]  ;;  %v1447_v36 = vld [vmem:[#allocation9 + $0x4] sm:$0x1] }
 0x470   :  { %v1285_v17 = vsel %vm1282_vm9, %v1284_v14, %v1280_v59  ;;  %v1452_v53 = vsel %vm177_vm1, %v1451_v60, %v1447_v36 }
 0x475   :  { %v2972_v3 = vpop.eup %2971 }
 0x476   :  { %v1291_v28 = vmul.f32 %v2972_v3, %v1285_v17  ;;  %v4875_v17 = vld [vmem:[#allocation46_spill] sm:$0xff] }
 0x477   :  { %v1293_v26 = vpop.permute.xlu1 %1292 }
 0x478   :  { %v1295_v30 = vsel %vm184_vm2, %v1291_v28, %v1293_v26  ;;  %1455 = vrot.lane.b32.xlu2 %v1291_v28, %s3407_s3  ;;  %v4876_v26 = vld [vmem:[#allocation47_spill] sm:$0xff] }
 0x479   :  { %2786 = vmatmul.msk.f32.vlgmr.msrb.gmra.mxu0 %vm195_vm3, %v1295_v30  ;;  %2787 = vmatmul.msk.f32.vlgmr.msrb.gmra.mxu1 %vm195_vm3, %v1295_v30 }
 0x47a   :  { %2788 = vmatmul.msk.f32.vlgmr.msrb.gmra.mxu2 %vm195_vm3, %v1295_v30  ;;  %2789 = vmatmul.msk.f32.vlgmr.msrb.gmra.mxu3 %vm195_vm3, %v1295_v30 }
 0x47b   :  { %1620 = vmatpush.msrb.mxu0 %v4002_v22  ;;  %1640 = vmatpush.msrb.mxu1 %v4005_v8 }
 0x47c   :  { %1660 = vmatpush.msrb.mxu2 %v4008_v23  ;;  %1680 = vmatpush.msrb.mxu3 %v4011_v16 }
 0x47d   :  { %1621 = vmatpush.msrb.mxu0 %v4014_v13  ;;  %1641 = vmatpush.msrb.mxu1 %v4017_v33 }
 0x47e   :  { %1661 = vmatpush.msrb.mxu2 %v4020_v25  ;;  %1681 = vmatpush.msrb.mxu3 %v4023_v24 }
 0x47f   :  { %1622 = vmatpush.msrb.mxu0 %v4026_v44  ;;  %1642 = vmatpush.msrb.mxu1 %v4029_v46 }
 0x480   :  { %1662 = vmatpush.msrb.mxu2 %v4032_v32  ;;  %1682 = vmatpush.msrb.mxu3 %v4035_v50 }
 0x481   :  { %1623 = vmatpush.msrb.mxu0 %v4038_v51  ;;  %1643 = vmatpush.msrb.mxu1 %v4041_v5 }
 0x482   :  { %1663 = vmatpush.msrb.mxu2 %v4044_v19  ;;  %1683 = vmatpush.msrb.mxu3 %v4047_v7 }
 0x483   :  { %1624 = vmatpush.msrb.mxu0 %v4846_v47  ;;  %1644 = vmatpush.msrb.mxu1 %v4847_v31 }
 0x484   :  { %1664 = vmatpush.msrb.mxu2 %v4848_v18  ;;  %1684 = vmatpush.msrb.mxu3 %v4849_v6 }
 0x485   :  { %1625 = vmatpush.msrb.mxu0 %v4850_v29  ;;  %1645 = vmatpush.msrb.mxu1 %v4851_v37 }
 0x486   :  { %1665 = vmatpush.msrb.mxu2 %v4852_v45  ;;  %1685 = vmatpush.msrb.mxu3 %v4853_v11 }
 0x487   :  { %1626 = vmatpush.msrb.mxu0 %v4854_v9  ;;  %1646 = vmatpush.msrb.mxu1 %v4855_v21 }
 0x488   :  { %1666 = vmatpush.msrb.mxu2 %v4856_v38  ;;  %1686 = vmatpush.msrb.mxu3 %v4857_v2 }
 0x489   :  { %1627 = vmatpush.msrb.mxu0 %v4858_v4  ;;  %1647 = vmatpush.msrb.mxu1 %v4089_v15 }
 0x48a   :  { %1667 = vmatpush.msrb.mxu2 %v4092_v35  ;;  %1687 = vmatpush.msrb.mxu3 %v4095_v41 }
 0x4d2   :  { %v1456_v12 = vpop.permute.xlu2 %1455 }
 0x4d3   :  { %v1458_v59 = vsel %vm184_vm2, %v1452_v53, %v1456_v12  ;;  %v4877_v53 = vld [vmem:[#allocation48_spill] sm:$0xff] }
 0x4d4   :  { %2793 = vmatmul.msk.f32.vlgmr.msra.gmra.mxu0 %vm195_vm3, %v1458_v59  ;;  %2794 = vmatmul.msk.f32.vlgmr.msra.gmra.mxu1 %vm195_vm3, %v1458_v59 }
 0x4d5   :  { %2795 = vmatmul.msk.f32.vlgmr.msra.gmra.mxu2 %vm195_vm3, %v1458_v59  ;;  %2796 = vmatmul.msk.f32.vlgmr.msra.gmra.mxu3 %vm195_vm3, %v1458_v59 }
 0x4d6   :  { %1783 = vmatpush.msra.mxu0 %v3883_v42  ;;  %1803 = vmatpush.msra.mxu1 %v3886_v43  ;;  %v4859_v42 = vld [vmem:[#allocation50_spill] sm:$0xff]  ;;  %v4860_v43 = vld [vmem:[#allocation51_spill] sm:$0xff] }
 0x4d7   :  { %1823 = vmatpush.msra.mxu2 %v3889_v52  ;;  %1843 = vmatpush.msra.mxu3 %v3892_v55  ;;  %v4861_v52 = vld [vmem:[#allocation27_spill] sm:$0xff]  ;;  %v4862_v55 = vld [vmem:[#allocation28_spill] sm:$0xff] }
 0x4d8   :  { %1784 = vmatpush.msra.mxu0 %v3895_v56  ;;  %1804 = vmatpush.msra.mxu1 %v3898_v57  ;;  %v4863_v56 = vld [vmem:[#allocation29_spill] sm:$0xff]  ;;  %v4864_v57 = vld [vmem:[#allocation30_spill] sm:$0xff] }
 0x4d9   :  { %1824 = vmatpush.msra.mxu2 %v3901_v58  ;;  %1844 = vmatpush.msra.mxu3 %v3904_v61  ;;  %v4865_v58 = vld [vmem:[#allocation31_spill] sm:$0xff]  ;;  %v4866_v61 = vld [vmem:[#allocation32_spill] sm:$0xff] }
 0x4da   :  { %1785 = vmatpush.msra.mxu0 %v3907_v62  ;;  %1805 = vmatpush.msra.mxu1 %v3910_v63  ;;  %v4867_v62 = vld [vmem:[#allocation33_spill] sm:$0xff]  ;;  %v4868_v63 = vld [vmem:[#allocation34_spill] sm:$0xff] }
 0x4db   :  { %1825 = vmatpush.msra.mxu2 %v3913_v0  ;;  %1845 = vmatpush.msra.mxu3 %v3916_v1  ;;  %v4869_v0 = vld [vmem:[#allocation35_spill] sm:$0xff]  ;;  %v4870_v1 = vld [vmem:[#allocation36_spill] sm:$0xff] }
 0x4dc   :  { %1786 = vmatpush.msra.mxu0 %v3919_v34  ;;  %1806 = vmatpush.msra.mxu1 %v3922_v39  ;;  %v4871_v34 = vld [vmem:[#allocation37_spill] sm:$0xff]  ;;  %v4872_v39 = vld [vmem:[#allocation38_spill] sm:$0xff] }
 0x4dd   :  { %1826 = vmatpush.msra.mxu2 %v3925_v40  ;;  %1846 = vmatpush.msra.mxu3 %v3928_v49  ;;  %v4873_v40 = vld [vmem:[#allocation39_spill] sm:$0xff]  ;;  %v4874_v49 = vld [vmem:[#allocation61_spill] sm:$0xff] }
 0x4de   :  { %1787 = vmatpush.msra.mxu0 %v4859_v42  ;;  %1807 = vmatpush.msra.mxu1 %v4860_v43 }
 0x4df   :  { %1827 = vmatpush.msra.mxu2 %v4861_v52  ;;  %1847 = vmatpush.msra.mxu3 %v4862_v55 }
 0x4e0   :  { %1788 = vmatpush.msra.mxu0 %v4863_v56  ;;  %1808 = vmatpush.msra.mxu1 %v4864_v57 }
 0x4e1   :  { %1828 = vmatpush.msra.mxu2 %v4865_v58  ;;  %1848 = vmatpush.msra.mxu3 %v4866_v61 }
 0x4e2   :  { %1789 = vmatpush.msra.mxu0 %v4867_v62  ;;  %1809 = vmatpush.msra.mxu1 %v4868_v63  ;;  %v4878_v62 = vld [vmem:[#allocation49_spill] sm:$0xff] }
 0x4e3   :  { %1829 = vmatpush.msra.mxu2 %v4869_v0  ;;  %1849 = vmatpush.msra.mxu3 %v4870_v1 }
 0x4e4   :  { %1790 = vmatpush.msra.mxu0 %v4871_v34  ;;  %1810 = vmatpush.msra.mxu1 %v4872_v39 }
 0x4e5   :  { %1830 = vmatpush.msra.mxu2 %v4873_v40  ;;  %1850 = vmatpush.msra.mxu3 %v4874_v49 }
 0x4f6   :  { %v1316_v14 = vpop.f32.mrf.mxu0  ;;  %v1336_v3 = vpop.f32.mrf.mxu1 }
 0x4f7   :  { %v1317_v28 = vadd.f32 %v1316_v14, %v4875_v17  ;;  %v1337_v30 = vadd.f32 %v1336_v3, %v4876_v26 }
 0x4f9   :  { %v2790_v48 = vmul.f32 -1.442695, %v1317_v28  ;;  %v2791_v60 = vmul.f32 -1.442695, %v1337_v30 }
 0x4fb   :  { %2973 = vpow2.f32 %v2790_v48 }
 0x4fc   :  { %2975 = vpow2.f32 %v2791_v60 }
 0x4fd   :  { %v1376_v36 = vpop.f32.mrf.mxu3  ;;  %v1356_v56 = vpop.f32.mrf.mxu2 }
 0x4fe   :  { %v1377_v12 = vadd.f32 %v1376_v36, %v4877_v53  ;;  %v1357_v63 = vadd.f32 %v1356_v56, %v4878_v62 }
 0x500   :  { %v2792_v59 = vmul.f32 -1.442695, %v1377_v12 }
 0x501   :  { %v2974_v42 = vpop.eup %2973 }
 0x502   :  { %v2976_v43 = vpop.eup %2975  ;;  %v1382_v52 = vadd.f32 1.0, %v2974_v42  ;;  %2977 = vpow2.f32 %v2792_v59 }
 0x503   :  { %v1401_v55 = vadd.f32 1.0, %v2976_v43 }
 0x504   :  { %2979 = vrcp.f32 %v1382_v52  ;;  %v1394_v14 = vand.u32 2147483648, %v1382_v52  ;;  %v1392_v30 = vand.u32 2147483647, %v1382_v52  ;;  %vm1388_vm12 = vweird.f32 %v1382_v52 }
 0x505   :  { %2981 = vrcp.f32 %v1401_v55  ;;  %v1413_v3 = vand.u32 2147483648, %v1401_v55  ;;  %v1411_v60 = vand.u32 2147483647, %v1401_v55  ;;  %vm1407_vm13 = vweird.f32 %v1401_v55 }
 0x506   :  { %v1395_v59 = vor.u32 1.1754944e-38, %v1394_v14  ;;  %vm1393_vm5 = vcmp.eq.f32.partialorder %v1392_v30, 8.507059e+37 }
 0x507   :  { %v1414_v56 = vor.u32 1.1754944e-38, %v1413_v3  ;;  %vm1412_vm6 = vcmp.eq.f32.partialorder %v1411_v60, 8.507059e+37 }
 0x508   :  { %v2978_v57 = vpop.eup %2977 }
 0x509   :  { %v1421_v58 = vadd.f32 1.0, %v2978_v57 }
 0x50a   :  { %v2980_v61 = vpop.eup %2979 }
 0x50b   :  { %v2982_v0 = vpop.eup %2981  ;;  %v1384_v1 = vmul.f32 %v2980_v61, %v1382_v52  ;;  %2983 = vrcp.f32 %v1421_v58  ;;  %vm1389_vm10 = vweird.f32 %v2980_v61  ;;  %v1433_v14 = vand.u32 2147483648, %v1421_v58 }
 0x50c   :  { %v1403_v34 = vmul.f32 %v2982_v0, %v1401_v55  ;;  %2985 = vtanh.f32 %v1357_v63  ;;  %vm1408_vm11 = vweird.f32 %v2982_v0  ;;  %vm1390_vm14 = vmor %vm1388_vm12, %vm1389_vm10  ;;  %vm1427_vm8 = vweird.f32 %v1421_v58 }
 0x50d   :  { %v1385_v39 = vsub.f32 1.0, %v1384_v1  ;;  %vm1409_vm15 = vmor %vm1407_vm13, %vm1408_vm11  ;;  %v1434_v30 = vor.u32 1.1754944e-38, %v1433_v14 }
 0x50e   :  { %v1404_v40 = vsub.f32 1.0, %v1403_v34 }
 0x50f   :  { %v1386_v28 = vmul.f32 %v2980_v61, %v1385_v39 }
 0x510   :  { %v1405_v48 = vmul.f32 %v2982_v0, %v1404_v40 }
 0x511   :  { %v2984_v36 = vpop.eup %2983  ;;  %v1387_v12 = vadd.f32 %v2980_v61, %v1386_v28 }
 0x512   :  { %v1406_v42 = vadd.f32 %v2982_v0, %v1405_v48  ;;  %v1423_v43 = vmul.f32 %v2984_v36, %v1421_v58  ;;  %v2986_v63 = vpop.eup %2985  ;;  %vm1428_vm7 = vweird.f32 %v2984_v36 }
 0x513   :  { %v1391_v57 = vsel %vm1390_vm14, %v2980_v61, %v1387_v12  ;;  %v1431_v61 = vand.u32 2147483647, %v1421_v58  ;;  %vm1429_vm9 = vmor %vm1427_vm8, %vm1428_vm7 }
 0x514   :  { %v1396_v1 = vsel %vm1393_vm5, %v1395_v59, %v1391_v57  ;;  %v1410_v34 = vsel %vm1409_vm15, %v2982_v0, %v1406_v42  ;;  %v1424_v39 = vsub.f32 1.0, %v1423_v43  ;;  %v4879_v43 = vld [vmem:[#allocation45_spill] sm:$0xff] }
 0x515   :  { %v1415_v40 = vsel %vm1412_vm6, %v1414_v56, %v1410_v34  ;;  %v1438_v62 = vmul.f32 %v2986_v63, %v1396_v1  ;;  %vm1432_vm10 = vcmp.eq.f32.partialorder %v1431_v61, 8.507059e+37  ;;  %v4880_v61 = vld [vmem:[#allocation52_spill] sm:$0xff] }
 0x516   :  { %v1437_v53 = vmul.f32 %v1415_v40, %v4143_v27  ;;  %v1425_v28 = vmul.f32 %v2984_v36, %v1424_v39 }
 0x518   :  { %v4238_v52 = vadd.f32 %v1438_v62, %v1437_v53  ;;  %v1426_v55 = vadd.f32 %v2984_v36, %v1425_v28 }
 0x51a   :  { %2987 = vtanh.f32 %v4238_v52  ;;  %v1430_v3 = vsel %vm1429_vm9, %v2984_v36, %v1426_v55 }
 0x51b   :  { %v1435_v48 = vsel %vm1432_vm10, %v1434_v30, %v1430_v3 }
 0x520   :  { %v2988_v0 = vpop.eup %2987 }
 0x521   :  { %v1441_v60 = vmul.f32 %v2988_v0, %v1435_v48 }
 0x523   :  { %1605 = vrot.lane.b32.xlu0 %v1441_v60, %s3407_s3  ;;  %v1443_v27 = vrot.slane %v1441_v60, 1  ;;  %1445 = vst.msk [vmem:[#allocation15 + $0x3] sm:$0x1] %vm505_vm4, %v1441_v60 }
 0x525   :  { %1446 = vst.msk [vmem:[#allocation15 + $0xb] sm:$0x1] %vm505_vm4, %v1443_v27 }
 0x551   :  { %v1479_v53 = vpop.f32.mrf.mxu0  ;;  %v1499_v62 = vpop.f32.mrf.mxu1 }
 0x552   :  { %v1480_v12 = vadd.f32 %v1479_v53, %v4826_v54  ;;  %v1500_v58 = vadd.f32 %v1499_v62, %v4827_v20 }
 0x554   :  { %v2797_v59 = vmul.f32 -1.442695, %v1480_v12  ;;  %v2798_v36 = vmul.f32 -1.442695, %v1500_v58 }
 0x556   :  { %2989 = vpow2.f32 %v2797_v59 }
 0x557   :  { %2991 = vpow2.f32 %v2798_v36 }
 0x558   :  { %v1539_v42 = vpop.f32.mrf.mxu3  ;;  %v1519_v40 = vpop.f32.mrf.mxu2 }
 0x559   :  { %v1540_v56 = vadd.f32 %v1539_v42, %v4879_v43  ;;  %v1520_v3 = vadd.f32 %v1519_v40, %v4880_v61 }
 0x55b   :  { %v2799_v57 = vmul.f32 -1.442695, %v1540_v56 }
 0x55c   :  { %v2990_v63 = vpop.eup %2989 }
 0x55d   :  { %v2992_v1 = vpop.eup %2991  ;;  %v1545_v34 = vadd.f32 1.0, %v2990_v63  ;;  %2993 = vpow2.f32 %v2799_v57 }
 0x55e   :  { %v1564_v39 = vadd.f32 1.0, %v2992_v1 }
 0x55f   :  { %2995 = vrcp.f32 %v1545_v34  ;;  %v1557_v53 = vand.u32 2147483648, %v1545_v34  ;;  %v1555_v58 = vand.u32 2147483647, %v1545_v34  ;;  %vm1551_vm13 = vweird.f32 %v1545_v34 }
 0x560   :  { %2997 = vrcp.f32 %v1564_v39  ;;  %v1576_v62 = vand.u32 2147483648, %v1564_v39  ;;  %v1574_v36 = vand.u32 2147483647, %v1564_v39  ;;  %vm1570_vm14 = vweird.f32 %v1564_v39 }
 0x561   :  { %v1558_v57 = vor.u32 1.1754944e-38, %v1557_v53  ;;  %vm1556_vm6 = vcmp.eq.f32.partialorder %v1555_v58, 8.507059e+37 }
 0x562   :  { %v1577_v40 = vor.u32 1.1754944e-38, %v1576_v62  ;;  %vm1575_vm7 = vcmp.eq.f32.partialorder %v1574_v36, 8.507059e+37 }
 0x563   :  { %v2994_v28 = vpop.eup %2993 }
 0x564   :  { %v1584_v55 = vadd.f32 1.0, %v2994_v28 }
 0x565   :  { %v2996_v14 = vpop.eup %2995 }
 0x566   :  { %v2998_v30 = vpop.eup %2997  ;;  %v1547_v0 = vmul.f32 %v2996_v14, %v1545_v34  ;;  %2999 = vrcp.f32 %v1584_v55  ;;  %vm1552_vm11 = vweird.f32 %v2996_v14  ;;  %v1596_v53 = vand.u32 2147483648, %v1584_v55 }
 0x567   :  { %v1566_v48 = vmul.f32 %v2998_v30, %v1564_v39  ;;  %3001 = vtanh.f32 %v1520_v3  ;;  %vm1571_vm12 = vweird.f32 %v2998_v30  ;;  %vm1553_vm15 = vmor %vm1551_vm13, %vm1552_vm11  ;;  %vm1590_vm9 = vweird.f32 %v1584_v55 }
 0x568   :  { %v1548_v60 = vsub.f32 1.0, %v1547_v0  ;;  %vm1572_vm5 = vmor %vm1570_vm14, %vm1571_vm12  ;;  %v1597_v58 = vor.u32 1.1754944e-38, %v1596_v53 }
 0x569   :  { %v1567_v27 = vsub.f32 1.0, %v1566_v48 }
 0x56a   :  { %v1549_v12 = vmul.f32 %v2996_v14, %v1548_v60 }
 0x56b   :  { %v1568_v59 = vmul.f32 %v2998_v30, %v1567_v27 }
 0x56c   :  { %v3000_v42 = vpop.eup %2999  ;;  %v1550_v56 = vadd.f32 %v2996_v14, %v1549_v12 }
 0x56d   :  { %v1569_v63 = vadd.f32 %v2998_v30, %v1568_v59  ;;  %v1586_v1 = vmul.f32 %v3000_v42, %v1584_v55  ;;  %v3002_v3 = vpop.eup %3001  ;;  %vm1591_vm8 = vweird.f32 %v3000_v42 }
 0x56e   :  { %v1554_v28 = vsel %vm1553_vm15, %v2996_v14, %v1550_v56  ;;  %v1594_v14 = vand.u32 2147483647, %v1584_v55  ;;  %vm1592_vm10 = vmor %vm1590_vm9, %vm1591_vm8  ;;  %v4374_v55 = vld [vmem:[#allocation2 + $0x30] sm:$0xff]  ;;  %v4383_v56 = vld [vmem:[#allocation2 + $0x8] sm:$0xff] }
 0x56f   :  { %v1559_v0 = vsel %vm1556_vm6, %v1558_v57, %v1554_v28  ;;  %v1573_v48 = vsel %vm1572_vm5, %v2998_v30, %v1569_v63  ;;  %v1587_v60 = vsub.f32 1.0, %v1586_v1  ;;  %v4386_v57 = vld [vmem:[#allocation2 + $0x10] sm:$0xff] }
 0x570   :  { %v1578_v27 = vsel %vm1575_vm7, %v1577_v40, %v1573_v48  ;;  %v1601_v61 = vmul.f32 %v3002_v3, %v1559_v0  ;;  %vm1595_vm11 = vcmp.eq.f32.partialorder %v1594_v14, 8.507059e+37 }
 0x571   :  { %v1600_v43 = vmul.f32 %v1578_v27, %v4154_v10  ;;  %v1588_v12 = vmul.f32 %v3000_v42, %v1587_v60  ;;  %v4881_v60 = vld [vmem:[#allocation48_spill] sm:$0xff] }
 0x573   :  { %v4249_v34 = vadd.f32 %v1601_v61, %v1600_v43  ;;  %v1589_v39 = vadd.f32 %v3000_v42, %v1588_v12  ;;  %v4377_v61 = vld [vmem:[#allocation2 + $0x38] sm:$0xff] }
 0x575   :  { %3003 = vtanh.f32 %v4249_v34  ;;  %v1593_v62 = vsel %vm1592_vm10, %v3000_v42, %v1589_v39  ;;  %v4380_v42 = vld [vmem:[#allocation2] sm:$0xff] }
 0x576   :  { %v1598_v59 = vsel %vm1595_vm11, %v1597_v58, %v1593_v62 }
 0x57b   :  { %v3004_v30 = vpop.eup %3003 }
 0x57c   :  { %v1604_v36 = vmul.f32 %v3004_v30, %v1598_v59 }
 0x57e   :  { %1768 = vrot.lane.b32.xlu1 %v1604_v36, %s3407_s3 }
 0x595   :  { %v1606_v10 = vpop.permute.xlu0 %1605 }
 0x596   :  { %v1608_v43 = vsel %vm184_vm2, %v1604_v36, %v1606_v10  ;;  %v4882_v36 = vld [vmem:[#allocation49_spill] sm:$0xff] }
 0x597   :  { %2800 = vmatmul.msk.f32.vlgmr.msrb.gmra.mxu0 %vm195_vm3, %v1608_v43  ;;  %2801 = vmatmul.msk.f32.vlgmr.msrb.gmra.mxu1 %vm195_vm3, %v1608_v43 }
 0x598   :  { %2802 = vmatmul.msk.f32.vlgmr.msrb.gmra.mxu2 %vm195_vm3, %v1608_v43  ;;  %2803 = vmatmul.msk.f32.vlgmr.msrb.gmra.mxu3 %vm195_vm3, %v1608_v43 }
 0x599   :  { %1933 = vmatpush.msrb.mxu0 %v4002_v22  ;;  %1953 = vmatpush.msrb.mxu1 %v4005_v8  ;;  %v1761_v22 = vld [vmem:[#allocation9 + $0xd] sm:$0x1] }
 0x59a   :  { %1973 = vmatpush.msrb.mxu2 %v4008_v23  ;;  %1993 = vmatpush.msrb.mxu3 %v4011_v16  ;;  %v1764_v8 = vrot.slane %v1761_v22, 7  ;;  %v1760_v23 = vld [vmem:[#allocation9 + $0x5] sm:$0x1] }
 0x59b   :  { %1934 = vmatpush.msrb.mxu0 %v4014_v13  ;;  %1954 = vmatpush.msrb.mxu1 %v4017_v33 }
 0x59c   :  { %1974 = vmatpush.msrb.mxu2 %v4020_v25  ;;  %1994 = vmatpush.msrb.mxu3 %v4023_v24  ;;  %v1765_v16 = vsel %vm177_vm1, %v1764_v8, %v1760_v23  ;;  %v4296_v25 = vld [vmem:[#allocation2 + $0xe0] sm:$0xff]  ;;  %v4299_v24 = vld [vmem:[#allocation2 + $0xe8] sm:$0xff] }
 0x59d   :  { %1935 = vmatpush.msrb.mxu0 %v4026_v44  ;;  %1955 = vmatpush.msrb.mxu1 %v4029_v46  ;;  %v4302_v44 = vld [vmem:[#allocation2 + $0xf0] sm:$0xff]  ;;  %v4305_v46 = vld [vmem:[#allocation2 + $0xf8] sm:$0xff] }
 0x59e   :  { %1975 = vmatpush.msrb.mxu2 %v4032_v32  ;;  %1995 = vmatpush.msrb.mxu3 %v4035_v50  ;;  %v4308_v32 = vld [vmem:[#allocation2 + $0xc0] sm:$0xff]  ;;  %v4311_v50 = vld [vmem:[#allocation2 + $0xc8] sm:$0xff] }
 0x59f   :  { %1936 = vmatpush.msrb.mxu0 %v4038_v51  ;;  %1956 = vmatpush.msrb.mxu1 %v4041_v5  ;;  %v4314_v51 = vld [vmem:[#allocation2 + $0xd0] sm:$0xff]  ;;  %v4317_v5 = vld [vmem:[#allocation2 + $0xd8] sm:$0xff] }
 0x5a0   :  { %1976 = vmatpush.msrb.mxu2 %v4044_v19  ;;  %1996 = vmatpush.msrb.mxu3 %v4047_v7  ;;  %v4320_v19 = vld [vmem:[#allocation2 + $0xa0] sm:$0xff]  ;;  %v4323_v7 = vld [vmem:[#allocation2 + $0xa8] sm:$0xff] }
 0x5a1   :  { %1937 = vmatpush.msrb.mxu0 %v4846_v47  ;;  %1957 = vmatpush.msrb.mxu1 %v4847_v31  ;;  %v4335_v47 = vld [vmem:[#allocation2 + $0x88] sm:$0xff]  ;;  %v4338_v31 = vld [vmem:[#allocation2 + $0x90] sm:$0xff] }
 0x5a2   :  { %1977 = vmatpush.msrb.mxu2 %v4848_v18  ;;  %1997 = vmatpush.msrb.mxu3 %v4849_v6  ;;  %v4341_v18 = vld [vmem:[#allocation2 + $0x98] sm:$0xff]  ;;  %v4344_v6 = vld [vmem:[#allocation2 + $0x60] sm:$0xff] }
 0x5a3   :  { %1938 = vmatpush.msrb.mxu0 %v4850_v29  ;;  %1958 = vmatpush.msrb.mxu1 %v4851_v37  ;;  %v4347_v29 = vld [vmem:[#allocation2 + $0x68] sm:$0xff]  ;;  %v4350_v37 = vld [vmem:[#allocation2 + $0x70] sm:$0xff] }
 0x5a4   :  { %1978 = vmatpush.msrb.mxu2 %v4852_v45  ;;  %1998 = vmatpush.msrb.mxu3 %v4853_v11  ;;  %v4353_v45 = vld [vmem:[#allocation2 + $0x78] sm:$0xff]  ;;  %v4356_v11 = vld [vmem:[#allocation2 + $0x40] sm:$0xff] }
 0x5a5   :  { %1939 = vmatpush.msrb.mxu0 %v4854_v9  ;;  %1959 = vmatpush.msrb.mxu1 %v4855_v21  ;;  %v4359_v9 = vld [vmem:[#allocation2 + $0x48] sm:$0xff]  ;;  %v4362_v21 = vld [vmem:[#allocation2 + $0x50] sm:$0xff] }
 0x5a6   :  { %1979 = vmatpush.msrb.mxu2 %v4856_v38  ;;  %1999 = vmatpush.msrb.mxu3 %v4857_v2  ;;  %v4365_v38 = vld [vmem:[#allocation2 + $0x58] sm:$0xff]  ;;  %v4368_v2 = vld [vmem:[#allocation2 + $0x20] sm:$0xff] }
 0x5a7   :  { %1940 = vmatpush.msrb.mxu0 %v4858_v4  ;;  %1960 = vmatpush.msrb.mxu1 %v4089_v15  ;;  %v4329_v15 = vld [vmem:[#allocation2 + $0xb8] sm:$0xff]  ;;  %v4371_v4 = vld [vmem:[#allocation2 + $0x28] sm:$0xff] }
 0x5a8   :  { %1980 = vmatpush.msrb.mxu2 %v4092_v35  ;;  %2000 = vmatpush.msrb.mxu3 %v4095_v41  ;;  %v4326_v41 = vld [vmem:[#allocation2 + $0xb0] sm:$0xff]  ;;  %v4332_v35 = vld [vmem:[#allocation2 + $0x80] sm:$0xff] }
 0x5f0   :  { %v1769_v13 = vpop.permute.xlu1 %1768 }
 0x5f1   :  { %v1771_v33 = vsel %vm184_vm2, %v1765_v16, %v1769_v13 }
 0x5f2   :  { %2807 = vmatmul.msk.f32.vlgmr.msra.gmra.mxu0 %vm195_vm3, %v1771_v33  ;;  %2808 = vmatmul.msk.f32.vlgmr.msra.gmra.mxu1 %vm195_vm3, %v1771_v33 }
 0x5f3   :  { %2809 = vmatmul.msk.f32.vlgmr.msra.gmra.mxu2 %vm195_vm3, %v1771_v33  ;;  %2810 = vmatmul.msk.f32.vlgmr.msra.gmra.mxu3 %vm195_vm3, %v1771_v33 }
 0x5f4   :  { %2096 = vmatpush.msra.mxu0 %v4296_v25  ;;  %2116 = vmatpush.msra.mxu1 %v4299_v24 }
 0x5f5   :  { %2136 = vmatpush.msra.mxu2 %v4302_v44  ;;  %2156 = vmatpush.msra.mxu3 %v4305_v46 }
 0x5f6   :  { %2097 = vmatpush.msra.mxu0 %v4308_v32  ;;  %2117 = vmatpush.msra.mxu1 %v4311_v50 }
 0x5f7   :  { %2137 = vmatpush.msra.mxu2 %v4314_v51  ;;  %2157 = vmatpush.msra.mxu3 %v4317_v5 }
 0x5f8   :  { %2098 = vmatpush.msra.mxu0 %v4320_v19  ;;  %2118 = vmatpush.msra.mxu1 %v4323_v7 }
 0x5f9   :  { %2138 = vmatpush.msra.mxu2 %v4326_v41  ;;  %2158 = vmatpush.msra.mxu3 %v4329_v15 }
 0x5fa   :  { %2099 = vmatpush.msra.mxu0 %v4332_v35  ;;  %2119 = vmatpush.msra.mxu1 %v4335_v47 }
 0x5fb   :  { %2139 = vmatpush.msra.mxu2 %v4338_v31  ;;  %2159 = vmatpush.msra.mxu3 %v4341_v18 }
 0x5fc   :  { %2100 = vmatpush.msra.mxu0 %v4344_v6  ;;  %2120 = vmatpush.msra.mxu1 %v4347_v29 }
 0x5fd   :  { %2140 = vmatpush.msra.mxu2 %v4350_v37  ;;  %2160 = vmatpush.msra.mxu3 %v4353_v45 }
 0x5fe   :  { %2101 = vmatpush.msra.mxu0 %v4356_v11  ;;  %2121 = vmatpush.msra.mxu1 %v4359_v9 }
 0x5ff   :  { %2141 = vmatpush.msra.mxu2 %v4362_v21  ;;  %2161 = vmatpush.msra.mxu3 %v4365_v38 }
 0x600   :  { %2102 = vmatpush.msra.mxu0 %v4368_v2  ;;  %2122 = vmatpush.msra.mxu1 %v4371_v4 }
 0x601   :  { %2142 = vmatpush.msra.mxu2 %v4374_v55  ;;  %2162 = vmatpush.msra.mxu3 %v4377_v61 }
 0x602   :  { %2103 = vmatpush.msra.mxu0 %v4380_v42  ;;  %2123 = vmatpush.msra.mxu1 %v4383_v56 }
 0x603   :  { %2143 = vmatpush.msra.mxu2 %v4386_v57  ;;  %2163 = vmatpush.msra.mxu3 %v4874_v49 }
 0x614   :  { %v1629_v63 = vpop.f32.mrf.mxu0  ;;  %v1649_v1 = vpop.f32.mrf.mxu1 }
 0x615   :  { %v1630_v40 = vadd.f32 %v1629_v63, %v4875_v17  ;;  %v1650_v28 = vadd.f32 %v1649_v1, %v4876_v26 }
 0x617   :  { %v2804_v3 = vmul.f32 -1.442695, %v1630_v40  ;;  %v2805_v0 = vmul.f32 -1.442695, %v1650_v28 }
 0x619   :  { %3005 = vpow2.f32 %v2804_v3 }
 0x61a   :  { %3007 = vpow2.f32 %v2805_v0 }
 0x61b   :  { %v1689_v48 = vpop.f32.mrf.mxu3  ;;  %v1669_v49 = vpop.f32.mrf.mxu2 }
 0x61c   :  { %v1690_v27 = vadd.f32 %v1689_v48, %v4881_v60  ;;  %v1670_v10 = vadd.f32 %v1669_v49, %v4882_v36 }
 0x61e   :  { %v2806_v12 = vmul.f32 -1.442695, %v1690_v27 }
 0x61f   :  { %v3006_v39 = vpop.eup %3005 }
 0x620   :  { %v3008_v53 = vpop.eup %3007  ;;  %v1695_v14 = vadd.f32 1.0, %v3006_v39  ;;  %3009 = vpow2.f32 %v2806_v12 }
 0x621   :  { %v1714_v62 = vadd.f32 1.0, %v3008_v53 }
 0x622   :  { %3011 = vrcp.f32 %v1695_v14  ;;  %v1707_v13 = vand.u32 2147483648, %v1695_v14  ;;  %v1705_v1 = vand.u32 2147483647, %v1695_v14  ;;  %vm1701_vm14 = vweird.f32 %v1695_v14 }
 0x623   :  { %3013 = vrcp.f32 %v1714_v62  ;;  %v1726_v33 = vand.u32 2147483648, %v1714_v62  ;;  %v1724_v28 = vand.u32 2147483647, %v1714_v62  ;;  %vm1720_vm15 = vweird.f32 %v1714_v62 }
 0x624   :  { %v1708_v48 = vor.u32 1.1754944e-38, %v1707_v13  ;;  %vm1706_vm7 = vcmp.eq.f32.partialorder %v1705_v1, 8.507059e+37 }
 0x625   :  { %v1727_v39 = vor.u32 1.1754944e-38, %v1726_v33  ;;  %vm1725_vm8 = vcmp.eq.f32.partialorder %v1724_v28, 8.507059e+37 }
 0x626   :  { %v3010_v58 = vpop.eup %3009 }
 0x627   :  { %v1734_v30 = vadd.f32 1.0, %v3010_v58 }
 0x628   :  { %v3012_v59 = vpop.eup %3011 }
 0x629   :  { %v3014_v43 = vpop.eup %3013  ;;  %v1697_v22 = vmul.f32 %v3012_v59, %v1695_v14  ;;  %3015 = vrcp.f32 %v1734_v30  ;;  %vm1702_vm12 = vweird.f32 %v3012_v59  ;;  %v1746_v13 = vand.u32 2147483648, %v1734_v30 }
 0x62a   :  { %v1716_v8 = vmul.f32 %v3014_v43, %v1714_v62  ;;  %3017 = vtanh.f32 %v1670_v10  ;;  %vm1721_vm13 = vweird.f32 %v3014_v43  ;;  %vm1703_vm5 = vmor %vm1701_vm14, %vm1702_vm12  ;;  %vm1740_vm10 = vweird.f32 %v1734_v30 }
 0x62b   :  { %v1698_v23 = vsub.f32 1.0, %v1697_v22  ;;  %vm1722_vm6 = vmor %vm1720_vm15, %vm1721_vm13  ;;  %v1747_v1 = vor.u32 1.1754944e-38, %v1746_v13 }
 0x62c   :  { %v1717_v16 = vsub.f32 1.0, %v1716_v8 }
 0x62d   :  { %v1699_v63 = vmul.f32 %v3012_v59, %v1698_v23 }
 0x62e   :  { %v1718_v40 = vmul.f32 %v3014_v43, %v1717_v16 }
 0x62f   :  { %v3016_v3 = vpop.eup %3015  ;;  %v1700_v0 = vadd.f32 %v3012_v59, %v1699_v63 }
 0x630   :  { %v1719_v27 = vadd.f32 %v3014_v43, %v1718_v40  ;;  %v1736_v12 = vmul.f32 %v3016_v3, %v1734_v30  ;;  %v3018_v49 = vpop.eup %3017  ;;  %vm1741_vm9 = vweird.f32 %v3016_v3 }
 0x631   :  { %v1704_v53 = vsel %vm1703_vm5, %v3012_v59, %v1700_v0  ;;  %v1744_v59 = vand.u32 2147483647, %v1734_v30  ;;  %vm1742_vm11 = vmor %vm1740_vm10, %vm1741_vm9 }
 0x632   :  { %v1709_v58 = vsel %vm1706_vm7, %v1708_v48, %v1704_v53  ;;  %v1723_v10 = vsel %vm1722_vm6, %v3014_v43, %v1719_v27  ;;  %v1737_v22 = vsub.f32 1.0, %v1736_v12  ;;  %v4883_v53 = vld [vmem:[#allocation45_spill] sm:$0xff] }
 0x633   :  { %v1728_v8 = vsel %vm1725_vm8, %v1727_v39, %v1723_v10  ;;  %v1751_v23 = vmul.f32 %v3018_v49, %v1709_v58  ;;  %vm1745_vm12 = vcmp.eq.f32.partialorder %v1744_v59, 8.507059e+37  ;;  %v4884_v59 = vld [vmem:[#allocation52_spill] sm:$0xff] }
 0x634   :  { %v1750_v16 = vmul.f32 %v1728_v8, %v4238_v52  ;;  %v1738_v63 = vmul.f32 %v3016_v3, %v1737_v22 }
 0x636   :  { %v4395_v14 = vadd.f32 %v1751_v23, %v1750_v16  ;;  %v1739_v62 = vadd.f32 %v3016_v3, %v1738_v63 }
 0x638   :  { %3019 = vtanh.f32 %v4395_v14  ;;  %v1743_v33 = vsel %vm1742_vm11, %v3016_v3, %v1739_v62 }
 0x639   :  { %v1748_v40 = vsel %vm1745_vm12, %v1747_v1, %v1743_v33 }
 0x63e   :  { %v3020_v43 = vpop.eup %3019 }
 0x63f   :  { %v1754_v28 = vmul.f32 %v3020_v43, %v1748_v40 }
 0x641   :  { %1918 = vrot.lane.b32.xlu2 %v1754_v28, %s3407_s3  ;;  %v1756_v52 = vrot.slane %v1754_v28, 1  ;;  %1758 = vst.msk [vmem:[#allocation15 + $0x4] sm:$0x1] %vm505_vm4, %v1754_v28 }
 0x643   :  { %1759 = vst.msk [vmem:[#allocation15 + $0xc] sm:$0x1] %vm505_vm4, %v1756_v52 }
 0x66f   :  { %v1792_v0 = vpop.f32.mrf.mxu0  ;;  %v1812_v48 = vpop.f32.mrf.mxu1 }
 0x670   :  { %v1793_v27 = vadd.f32 %v1792_v0, %v4826_v54  ;;  %v1813_v30 = vadd.f32 %v1812_v48, %v4827_v20 }
 0x672   :  { %v2811_v12 = vmul.f32 -1.442695, %v1793_v27  ;;  %v2812_v3 = vmul.f32 -1.442695, %v1813_v30 }
 0x674   :  { %3021 = vpow2.f32 %v2811_v12 }
 0x675   :  { %3023 = vpow2.f32 %v2812_v3 }
 0x676   :  { %v1852_v39 = vpop.f32.mrf.mxu3  ;;  %v1832_v16 = vpop.f32.mrf.mxu2 }
 0x677   :  { %v1853_v49 = vadd.f32 %v1852_v39, %v4883_v53  ;;  %v1833_v33 = vadd.f32 %v1832_v16, %v4884_v59 }
 0x679   :  { %v2813_v58 = vmul.f32 -1.442695, %v1853_v49 }
 0x67a   :  { %v3022_v10 = vpop.eup %3021 }
 0x67b   :  { %v3024_v22 = vpop.eup %3023  ;;  %v1858_v8 = vadd.f32 1.0, %v3022_v10  ;;  %3025 = vpow2.f32 %v2813_v58 }
 0x67c   :  { %v1877_v23 = vadd.f32 1.0, %v3024_v22 }
 0x67d   :  { %3027 = vrcp.f32 %v1858_v8  ;;  %v1870_v0 = vand.u32 2147483648, %v1858_v8  ;;  %v1868_v30 = vand.u32 2147483647, %v1858_v8  ;;  %vm1864_vm15 = vweird.f32 %v1858_v8 }
 0x67e   :  { %3029 = vrcp.f32 %v1877_v23  ;;  %v1889_v48 = vand.u32 2147483648, %v1877_v23  ;;  %v1887_v3 = vand.u32 2147483647, %v1877_v23  ;;  %vm1883_vm5 = vweird.f32 %v1877_v23 }
 0x67f   :  { %v1871_v58 = vor.u32 1.1754944e-38, %v1870_v0  ;;  %vm1869_vm8 = vcmp.eq.f32.partialorder %v1868_v30, 8.507059e+37 }
 0x680   :  { %v1890_v16 = vor.u32 1.1754944e-38, %v1889_v48  ;;  %vm1888_vm9 = vcmp.eq.f32.partialorder %v1887_v3, 8.507059e+37 }
 0x681   :  { %v3026_v63 = vpop.eup %3025 }
 0x682   :  { %v1897_v62 = vadd.f32 1.0, %v3026_v63 }
 0x683   :  { %v3028_v13 = vpop.eup %3027 }
 0x684   :  { %v3030_v1 = vpop.eup %3029  ;;  %v1860_v43 = vmul.f32 %v3028_v13, %v1858_v8  ;;  %3031 = vrcp.f32 %v1897_v62  ;;  %vm1865_vm13 = vweird.f32 %v3028_v13  ;;  %v1909_v0 = vand.u32 2147483648, %v1897_v62 }
 0x685   :  { %v1879_v40 = vmul.f32 %v3030_v1, %v1877_v23  ;;  %3033 = vtanh.f32 %v1833_v33  ;;  %vm1884_vm14 = vweird.f32 %v3030_v1  ;;  %vm1866_vm6 = vmor %vm1864_vm15, %vm1865_vm13  ;;  %vm1903_vm11 = vweird.f32 %v1897_v62 }
 0x686   :  { %v1861_v28 = vsub.f32 1.0, %v1860_v43  ;;  %vm1885_vm7 = vmor %vm1883_vm5, %vm1884_vm14  ;;  %v1910_v30 = vor.u32 1.1754944e-38, %v1909_v0  ;;  %v4463_v0 = vld [vmem:[#allocation3 + $0x60] sm:$0xff] }
 0x687   :  { %v1880_v52 = vsub.f32 1.0, %v1879_v40  ;;  %4885 = vst [vmem:[#allocation40_spill] sm:$0xff] %v4463_v0 }
 0x688   :  { %v1862_v27 = vmul.f32 %v3028_v13, %v1861_v28 }
 0x689   :  { %v1881_v12 = vmul.f32 %v3030_v1, %v1880_v52 }
 0x68a   :  { %v3032_v39 = vpop.eup %3031  ;;  %v1863_v49 = vadd.f32 %v3028_v13, %v1862_v27 }
 0x68b   :  { %v1882_v10 = vadd.f32 %v3030_v1, %v1881_v12  ;;  %v1899_v22 = vmul.f32 %v3032_v39, %v1897_v62  ;;  %v3034_v33 = vpop.eup %3033  ;;  %vm1904_vm10 = vweird.f32 %v3032_v39 }
 0x68c   :  { %v1867_v63 = vsel %vm1866_vm6, %v3028_v13, %v1863_v49  ;;  %v1907_v13 = vand.u32 2147483647, %v1897_v62  ;;  %vm1905_vm12 = vmor %vm1903_vm11, %vm1904_vm10  ;;  %v4418_v62 = vld [vmem:[#allocation3 + $0xe8] sm:$0xff] }
 0x68d   :  { %v1872_v43 = vsel %vm1869_vm8, %v1871_v58, %v1867_v63  ;;  %v1886_v40 = vsel %vm1885_vm7, %v3030_v1, %v1882_v10  ;;  %v1900_v28 = vsub.f32 1.0, %v1899_v22  ;;  %v4427_v58 = vld [vmem:[#allocation3 + $0xc0] sm:$0xff]  ;;  %v4430_v10 = vld [vmem:[#allocation3 + $0xc8] sm:$0xff]  ;;  %v4433_v22 = vld [vmem:[#allocation3 + $0xd0] sm:$0xff] }
 0x68e   :  { %v1891_v52 = vsel %vm1888_vm9, %v1890_v16, %v1886_v40  ;;  %v1914_v59 = vmul.f32 %v3034_v33, %v1872_v43  ;;  %vm1908_vm13 = vcmp.eq.f32.partialorder %v1907_v13, 8.507059e+37  ;;  %v4436_v16 = vld [vmem:[#allocation3 + $0xd8] sm:$0xff]  ;;  %v4439_v63 = vld [vmem:[#allocation3 + $0xa0] sm:$0xff]  ;;  %v4442_v33 = vld [vmem:[#allocation3 + $0xa8] sm:$0xff] }
 0x68f   :  { %v1913_v53 = vmul.f32 %v1891_v52, %v4249_v34  ;;  %v1901_v27 = vmul.f32 %v3032_v39, %v1900_v28  ;;  %v4445_v43 = vld [vmem:[#allocation3 + $0xb0] sm:$0xff]  ;;  %v4448_v40 = vld [vmem:[#allocation3 + $0xb8] sm:$0xff]  ;;  %v4451_v28 = vld [vmem:[#allocation3 + $0x80] sm:$0xff] }
 0x690   :  { %v4454_v52 = vld [vmem:[#allocation3 + $0x88] sm:$0xff] }
 0x691   :  { %v4406_v8 = vadd.f32 %v1914_v59, %v1913_v53  ;;  %v1902_v23 = vadd.f32 %v3032_v39, %v1901_v27  ;;  %v4415_v53 = vld [vmem:[#allocation3 + $0xe0] sm:$0xff]  ;;  %v4421_v59 = vld [vmem:[#allocation3 + $0xf0] sm:$0xff]  ;;  %v4466_v13 = vld [vmem:[#allocation3 + $0x68] sm:$0xff] }
 0x692   :  { %v4457_v27 = vld [vmem:[#allocation3 + $0x90] sm:$0xff]  ;;  %4886 = vst [vmem:[#allocation41_spill] sm:$0xff] %v4466_v13 }
 0x693   :  { %3035 = vtanh.f32 %v4406_v8  ;;  %v1906_v48 = vsel %vm1905_vm12, %v3032_v39, %v1902_v23  ;;  %v4424_v39 = vld [vmem:[#allocation3 + $0xf8] sm:$0xff] }
 0x694   :  { %v1911_v12 = vsel %vm1908_vm13, %v1910_v30, %v1906_v48  ;;  %v4460_v23 = vld [vmem:[#allocation3 + $0x98] sm:$0xff]  ;;  %v4469_v48 = vld [vmem:[#allocation3 + $0x70] sm:$0xff] }
 0x695   :  { %4887 = vst [vmem:[#allocation42_spill] sm:$0xff] %v4469_v48  ;;  %v4472_v30 = vld [vmem:[#allocation3 + $0x78] sm:$0xff] }
 0x696   :  { %4888 = vst [vmem:[#allocation43_spill] sm:$0xff] %v4472_v30 }
 0x699   :  { %v3036_v1 = vpop.eup %3035 }
 0x69a   :  { %v1917_v3 = vmul.f32 %v3036_v1, %v1911_v12  ;;  %v4475_v1 = vld [vmem:[#allocation3 + $0x40] sm:$0xff]  ;;  %v4478_v12 = vld [vmem:[#allocation3 + $0x48] sm:$0xff] }
 0x69b   :  { %v1919_v49 = vpop.permute.xlu2 %1918  ;;  %4889 = vst [vmem:[#allocation44_spill] sm:$0xff] %v4475_v1 }
 0x69c   :  { %v1921_v34 = vsel %vm184_vm2, %v1917_v3, %v1919_v49  ;;  %2081 = vrot.lane.b32.xlu0 %v1917_v3, %s3407_s3  ;;  %4890 = vst [vmem:[#allocation53_spill] sm:$0xff] %v4478_v12  ;;  %v4481_v3 = vld [vmem:[#allocation3 + $0x50] sm:$0xff]  ;;  %v4484_v49 = vld [vmem:[#allocation3 + $0x58] sm:$0xff] }
 0x69d   :  { %2814 = vmatmul.msk.f32.vlgmr.msrb.gmra.mxu0 %vm195_vm3, %v1921_v34  ;;  %2815 = vmatmul.msk.f32.vlgmr.msrb.gmra.mxu1 %vm195_vm3, %v1921_v34  ;;  %4891 = vst [vmem:[#allocation54_spill] sm:$0xff] %v4481_v3 }
 0x69e   :  { %2816 = vmatmul.msk.f32.vlgmr.msrb.gmra.mxu2 %vm195_vm3, %v1921_v34  ;;  %2817 = vmatmul.msk.f32.vlgmr.msrb.gmra.mxu3 %vm195_vm3, %v1921_v34  ;;  %4892 = vst [vmem:[#allocation55_spill] sm:$0xff] %v4484_v49  ;;  %v4487_v34 = vld [vmem:[#allocation3 + $0x20] sm:$0xff] }
 0x69f   :  { %2246 = vmatpush.msrb.mxu0 %v4415_v53  ;;  %2266 = vmatpush.msrb.mxu1 %v4418_v62  ;;  %4893 = vst [vmem:[#allocation56_spill] sm:$0xff] %v4487_v34 }
 0x6a0   :  { %2286 = vmatpush.msrb.mxu2 %v4421_v59  ;;  %2306 = vmatpush.msrb.mxu3 %v4424_v39 }
 0x6a1   :  { %2247 = vmatpush.msrb.mxu0 %v4427_v58  ;;  %2267 = vmatpush.msrb.mxu1 %v4430_v10 }
 0x6a2   :  { %2287 = vmatpush.msrb.mxu2 %v4433_v22  ;;  %2307 = vmatpush.msrb.mxu3 %v4436_v16 }
 0x6a3   :  { %2248 = vmatpush.msrb.mxu0 %v4439_v63  ;;  %2268 = vmatpush.msrb.mxu1 %v4442_v33 }
 0x6a4   :  { %2288 = vmatpush.msrb.mxu2 %v4445_v43  ;;  %2308 = vmatpush.msrb.mxu3 %v4448_v40 }
 0x6a5   :  { %2249 = vmatpush.msrb.mxu0 %v4451_v28  ;;  %2269 = vmatpush.msrb.mxu1 %v4454_v52 }
 0x6a6   :  { %2289 = vmatpush.msrb.mxu2 %v4457_v27  ;;  %2309 = vmatpush.msrb.mxu3 %v4460_v23 }
 0x6a7   :  { %2250 = vmatpush.msrb.mxu0 %v4463_v0  ;;  %2270 = vmatpush.msrb.mxu1 %v4466_v13  ;;  %v2073_v13 = vld [vmem:[#allocation9 + $0x6] sm:$0x1] }
 0x6a8   :  { %2290 = vmatpush.msrb.mxu2 %v4469_v48  ;;  %2310 = vmatpush.msrb.mxu3 %v4472_v30  ;;  %v4490_v30 = vld [vmem:[#allocation3 + $0x28] sm:$0xff] }
 0x6a9   :  { %2251 = vmatpush.msrb.mxu0 %v4475_v1  ;;  %2271 = vmatpush.msrb.mxu1 %v4478_v12  ;;  %4894 = vst [vmem:[#allocation57_spill] sm:$0xff] %v4490_v30  ;;  %v4493_v1 = vld [vmem:[#allocation3 + $0x30] sm:$0xff]  ;;  %v4496_v12 = vld [vmem:[#allocation3 + $0x38] sm:$0xff] }
 0x6aa   :  { %2291 = vmatpush.msrb.mxu2 %v4481_v3  ;;  %2311 = vmatpush.msrb.mxu3 %v4484_v49  ;;  %4895 = vst [vmem:[#allocation58_spill] sm:$0xff] %v4493_v1  ;;  %v4499_v3 = vld [vmem:[#allocation3] sm:$0xff]  ;;  %v4502_v49 = vld [vmem:[#allocation3 + $0x8] sm:$0xff] }
 0x6ab   :  { %2252 = vmatpush.msrb.mxu0 %v4487_v34  ;;  %2272 = vmatpush.msrb.mxu1 %v4490_v30  ;;  %4896 = vst [vmem:[#allocation59_spill] sm:$0xff] %v4496_v12  ;;  %v4505_v34 = vld [vmem:[#allocation3 + $0x10] sm:$0xff]  ;;  %v4508_v30 = vld [vmem:[#allocation3 + $0x18] sm:$0xff] }
 0x6ac   :  { %2292 = vmatpush.msrb.mxu2 %v4493_v1  ;;  %2312 = vmatpush.msrb.mxu3 %v4496_v12  ;;  %4897 = vst [vmem:[#allocation60_spill] sm:$0xff] %v4499_v3  ;;  %v2074_v1 = vld [vmem:[#allocation9 + $0xe] sm:$0x1] }
 0x6ad   :  { %2253 = vmatpush.msrb.mxu0 %v4499_v3  ;;  %2273 = vmatpush.msrb.mxu1 %v4502_v49  ;;  %v2077_v48 = vrot.slane %v2074_v1, 7 }
 0x6ae   :  { %2293 = vmatpush.msrb.mxu2 %v4505_v34  ;;  %2313 = vmatpush.msrb.mxu3 %v4508_v30 }
 0x6af   :  { %v2078_v12 = vsel %vm177_vm1, %v2077_v48, %v2073_v13 }
 0x70e   :  { %v2082_v0 = vpop.permute.xlu0 %2081 }
 0x70f   :  { %v2084_v3 = vsel %vm184_vm2, %v2078_v12, %v2082_v0 }
 0x710   :  { %2821 = vmatmul.msk.f32.vlgmr.msra.gmra.mxu0 %vm195_vm3, %v2084_v3  ;;  %2822 = vmatmul.msk.f32.vlgmr.msra.gmra.mxu1 %vm195_vm3, %v2084_v3 }
 0x711   :  { %2823 = vmatmul.msk.f32.vlgmr.msra.gmra.mxu2 %vm195_vm3, %v2084_v3  ;;  %2824 = vmatmul.msk.f32.vlgmr.msra.gmra.mxu3 %vm195_vm3, %v2084_v3 }
 0x712   :  { %2409 = vmatpush.msra.mxu0 %v4296_v25  ;;  %2429 = vmatpush.msra.mxu1 %v4299_v24 }
 0x713   :  { %2449 = vmatpush.msra.mxu2 %v4302_v44  ;;  %2469 = vmatpush.msra.mxu3 %v4305_v46 }
 0x714   :  { %2410 = vmatpush.msra.mxu0 %v4308_v32  ;;  %2430 = vmatpush.msra.mxu1 %v4311_v50 }
 0x715   :  { %2450 = vmatpush.msra.mxu2 %v4314_v51  ;;  %2470 = vmatpush.msra.mxu3 %v4317_v5  ;;  %v3244_v5 = vld [vmem:[#allocation2 + $0x18] sm:$0xff] }
 0x716   :  { %2411 = vmatpush.msra.mxu0 %v4320_v19  ;;  %2431 = vmatpush.msra.mxu1 %v4323_v7 }
 0x717   :  { %2451 = vmatpush.msra.mxu2 %v4326_v41  ;;  %2471 = vmatpush.msra.mxu3 %v4329_v15 }
 0x718   :  { %2412 = vmatpush.msra.mxu0 %v4332_v35  ;;  %2432 = vmatpush.msra.mxu1 %v4335_v47 }
 0x719   :  { %2452 = vmatpush.msra.mxu2 %v4338_v31  ;;  %2472 = vmatpush.msra.mxu3 %v4341_v18 }
 0x71a   :  { %v1942_v25 = vpop.f32.mrf.mxu0  ;;  %v1962_v24 = vpop.f32.mrf.mxu1  ;;  %2413 = vmatpush.msra.mxu0 %v4344_v6  ;;  %2433 = vmatpush.msra.mxu1 %v4347_v29 }
 0x71b   :  { %v1943_v44 = vadd.f32 %v1942_v25, %v4875_v17  ;;  %v1963_v46 = vadd.f32 %v1962_v24, %v4876_v26  ;;  %2453 = vmatpush.msra.mxu2 %v4350_v37  ;;  %2473 = vmatpush.msra.mxu3 %v4353_v45 }
 0x71c   :  { %2414 = vmatpush.msra.mxu0 %v4356_v11  ;;  %2434 = vmatpush.msra.mxu1 %v4359_v9 }
 0x71d   :  { %v2818_v32 = vmul.f32 -1.442695, %v1943_v44  ;;  %v2819_v50 = vmul.f32 -1.442695, %v1963_v46  ;;  %2454 = vmatpush.msra.mxu2 %v4362_v21  ;;  %2474 = vmatpush.msra.mxu3 %v4365_v38 }
 0x71e   :  { %2415 = vmatpush.msra.mxu0 %v4368_v2  ;;  %2435 = vmatpush.msra.mxu1 %v4371_v4 }
 0x71f   :  { %3037 = vpow2.f32 %v2818_v32  ;;  %2455 = vmatpush.msra.mxu2 %v4374_v55  ;;  %2475 = vmatpush.msra.mxu3 %v4377_v61 }
 0x720   :  { %3039 = vpow2.f32 %v2819_v50  ;;  %2416 = vmatpush.msra.mxu0 %v4380_v42  ;;  %2436 = vmatpush.msra.mxu1 %v4383_v56 }
 0x721   :  { %v2002_v51 = vpop.f32.mrf.mxu3  ;;  %2456 = vmatpush.msra.mxu2 %v4386_v57  ;;  %2476 = vmatpush.msra.mxu3 %v3244_v5  ;;  %v1982_v31 = vpop.f32.mrf.mxu2 }
 0x722   :  { %v2003_v19 = vadd.f32 %v2002_v51, %v4881_v60  ;;  %v1983_v37 = vadd.f32 %v1982_v31, %v4882_v36 }
 0x724   :  { %v2820_v7 = vmul.f32 -1.442695, %v2003_v19 }
 0x725   :  { %v3038_v41 = vpop.eup %3037 }
 0x726   :  { %v3040_v15 = vpop.eup %3039  ;;  %v2008_v35 = vadd.f32 1.0, %v3038_v41  ;;  %3041 = vpow2.f32 %v2820_v7 }
 0x727   :  { %v2027_v47 = vadd.f32 1.0, %v3040_v15 }
 0x728   :  { %3043 = vrcp.f32 %v2008_v35  ;;  %v2020_v2 = vand.u32 2147483648, %v2008_v35  ;;  %v2018_v61 = vand.u32 2147483647, %v2008_v35  ;;  %vm2014_vm5 = vweird.f32 %v2008_v35 }
 0x729   :  { %3045 = vrcp.f32 %v2027_v47  ;;  %v2039_v4 = vand.u32 2147483648, %v2027_v47  ;;  %v2037_v56 = vand.u32 2147483647, %v2027_v47  ;;  %vm2033_vm6 = vweird.f32 %v2027_v47 }
 0x72a   :  { %v2021_v13 = vor.u32 1.1754944e-38, %v2020_v2  ;;  %vm2019_vm9 = vcmp.eq.f32.partialorder %v2018_v61, 8.507059e+37  ;;  %v4898_v2 = vld [vmem:[#allocation45_spill] sm:$0xff] }
 0x72b   :  { %v2040_v12 = vor.u32 1.1754944e-38, %v2039_v4  ;;  %vm2038_vm10 = vcmp.eq.f32.partialorder %v2037_v56, 8.507059e+37 }
 0x72c   :  { %v3042_v18 = vpop.eup %3041 }
 0x72d   :  { %v2047_v6 = vadd.f32 1.0, %v3042_v18 }
 0x72e   :  { %v3044_v29 = vpop.eup %3043 }
 0x72f   :  { %v3046_v45 = vpop.eup %3045  ;;  %v2010_v11 = vmul.f32 %v3044_v29, %v2008_v35  ;;  %3047 = vrcp.f32 %v2047_v6  ;;  %vm2015_vm14 = vweird.f32 %v3044_v29  ;;  %v2059_v41 = vand.u32 2147483648, %v2047_v6 }
 0x730   :  { %v2029_v9 = vmul.f32 %v3046_v45, %v2027_v47  ;;  %3049 = vtanh.f32 %v1983_v37  ;;  %vm2034_vm15 = vweird.f32 %v3046_v45  ;;  %vm2016_vm7 = vmor %vm2014_vm5, %vm2015_vm14  ;;  %vm2053_vm12 = vweird.f32 %v2047_v6 }
 0x731   :  { %v2011_v21 = vsub.f32 1.0, %v2010_v11  ;;  %vm2035_vm8 = vmor %vm2033_vm6, %vm2034_vm15  ;;  %v2057_v15 = vand.u32 2147483647, %v2047_v6  ;;  %v2060_v47 = vor.u32 1.1754944e-38, %v2059_v41 }
 0x732   :  { %v2030_v38 = vsub.f32 1.0, %v2029_v9 }
 0x733   :  { %v2012_v55 = vmul.f32 %v3044_v29, %v2011_v21  ;;  %vm2058_vm14 = vcmp.eq.f32.partialorder %v2057_v15, 8.507059e+37 }
 0x734   :  { %v2031_v42 = vmul.f32 %v3046_v45, %v2030_v38 }
 0x735   :  { %v3048_v57 = vpop.eup %3047  ;;  %v2013_v0 = vadd.f32 %v3044_v29, %v2012_v55 }
 0x736   :  { %v2032_v48 = vadd.f32 %v3046_v45, %v2031_v42  ;;  %v2049_v1 = vmul.f32 %v3048_v57, %v2047_v6  ;;  %v3050_v25 = vpop.eup %3049  ;;  %vm2054_vm11 = vweird.f32 %v3048_v57 }
 0x737   :  { %v2017_v3 = vsel %vm2016_vm7, %v3044_v29, %v2013_v0  ;;  %vm2055_vm13 = vmor %vm2053_vm12, %vm2054_vm11 }
 0x738   :  { %v2022_v24 = vsel %vm2019_vm9, %v2021_v13, %v2017_v3  ;;  %v2036_v44 = vsel %vm2035_vm8, %v3046_v45, %v2032_v48  ;;  %v2050_v46 = vsub.f32 1.0, %v2049_v1 }
 0x739   :  { %v2041_v32 = vsel %vm2038_vm10, %v2040_v12, %v2036_v44  ;;  %v2064_v50 = vmul.f32 %v3050_v25, %v2022_v24  ;;  %v4899_v12 = vld [vmem:[#allocation52_spill] sm:$0xff] }
 0x73a   :  { %v2063_v51 = vmul.f32 %v2041_v32, %v4395_v14  ;;  %v2051_v5 = vmul.f32 %v3048_v57, %v2050_v46 }
 0x73c   :  { %v4553_v19 = vadd.f32 %v2064_v50, %v2063_v51  ;;  %v2052_v7 = vadd.f32 %v3048_v57, %v2051_v5 }
 0x73e   :  { %3051 = vtanh.f32 %v4553_v19  ;;  %v2056_v35 = vsel %vm2055_vm13, %v3048_v57, %v2052_v7 }
 0x73f   :  { %v2061_v18 = vsel %vm2058_vm14, %v2060_v47, %v2056_v35 }
 0x744   :  { %v3052_v31 = vpop.eup %3051 }
 0x745   :  { %v2067_v29 = vmul.f32 %v3052_v31, %v2061_v18 }
 0x747   :  { %2231 = vrot.lane.b32.xlu1 %v2067_v29, %s3407_s3  ;;  %v2069_v14 = vrot.slane %v2067_v29, 1  ;;  %2071 = vst.msk [vmem:[#allocation15 + $0x5] sm:$0x1] %vm505_vm4, %v2067_v29 }
 0x749   :  { %2072 = vst.msk [vmem:[#allocation15 + $0xd] sm:$0x1] %vm505_vm4, %v2069_v14 }
 0x78d   :  { %v2105_v37 = vpop.f32.mrf.mxu0  ;;  %v2125_v45 = vpop.f32.mrf.mxu1 }
 0x78e   :  { %v2106_v11 = vadd.f32 %v2105_v37, %v4826_v54  ;;  %v2126_v6 = vadd.f32 %v2125_v45, %v4827_v20 }
 0x790   :  { %v2825_v9 = vmul.f32 -1.442695, %v2106_v11  ;;  %v2826_v21 = vmul.f32 -1.442695, %v2126_v6 }
 0x792   :  { %3053 = vpow2.f32 %v2825_v9 }
 0x793   :  { %3055 = vpow2.f32 %v2826_v21 }
 0x794   :  { %v2165_v38 = vpop.f32.mrf.mxu3  ;;  %v2145_v0 = vpop.f32.mrf.mxu2 }
 0x795   :  { %v2166_v4 = vadd.f32 %v2165_v38, %v4898_v2  ;;  %v2146_v3 = vadd.f32 %v2145_v0, %v4899_v12 }
 0x797   :  { %v2827_v55 = vmul.f32 -1.442695, %v2166_v4 }
 0x798   :  { %v3054_v61 = vpop.eup %3053 }
 0x799   :  { %v3056_v42 = vpop.eup %3055  ;;  %v2171_v56 = vadd.f32 1.0, %v3054_v61  ;;  %3057 = vpow2.f32 %v2827_v55 }
 0x79a   :  { %v2190_v57 = vadd.f32 1.0, %v3056_v42 }
 0x79b   :  { %3059 = vrcp.f32 %v2171_v56  ;;  %v2183_v50 = vand.u32 2147483648, %v2171_v56  ;;  %v2181_v7 = vand.u32 2147483647, %v2171_v56  ;;  %vm2177_vm6 = vweird.f32 %v2171_v56 }
 0x79c   :  { %3061 = vrcp.f32 %v2190_v57  ;;  %v2202_v51 = vand.u32 2147483648, %v2190_v57  ;;  %v2200_v15 = vand.u32 2147483647, %v2190_v57  ;;  %vm2196_vm7 = vweird.f32 %v2190_v57 }
 0x79d   :  { %v2184_v31 = vor.u32 1.1754944e-38, %v2183_v50  ;;  %vm2182_vm10 = vcmp.eq.f32.partialorder %v2181_v7, 8.507059e+37 }
 0x79e   :  { %v2203_v14 = vor.u32 1.1754944e-38, %v2202_v51  ;;  %vm2201_vm11 = vcmp.eq.f32.partialorder %v2200_v15, 8.507059e+37 }
 0x79f   :  { %v3058_v13 = vpop.eup %3057 }
 0x7a0   :  { %v2210_v48 = vadd.f32 1.0, %v3058_v13 }
 0x7a1   :  { %v3060_v1 = vpop.eup %3059 }
 0x7a2   :  { %v3062_v25 = vpop.eup %3061  ;;  %v2173_v24 = vmul.f32 %v3060_v1, %v2171_v56  ;;  %3063 = vrcp.f32 %v2210_v48  ;;  %vm2178_vm15 = vweird.f32 %v3060_v1  ;;  %v2222_v56 = vand.u32 2147483648, %v2210_v48 }
 0x7a3   :  { %v2192_v44 = vmul.f32 %v3062_v25, %v2190_v57  ;;  %3065 = vtanh.f32 %v2146_v3  ;;  %vm2197_vm5 = vweird.f32 %v3062_v25  ;;  %vm2179_vm8 = vmor %vm2177_vm6, %vm2178_vm15  ;;  %vm2216_vm13 = vweird.f32 %v2210_v48 }
 0x7a4   :  { %v2174_v46 = vsub.f32 1.0, %v2173_v24  ;;  %vm2198_vm9 = vmor %vm2196_vm7, %vm2197_vm5  ;;  %v2220_v57 = vand.u32 2147483647, %v2210_v48  ;;  %v2223_v13 = vor.u32 1.1754944e-38, %v2222_v56 }
 0x7a5   :  { %v2193_v32 = vsub.f32 1.0, %v2192_v44 }
 0x7a6   :  { %v2175_v5 = vmul.f32 %v3060_v1, %v2174_v46  ;;  %vm2221_vm15 = vcmp.eq.f32.partialorder %v2220_v57, 8.507059e+37 }
 0x7a7   :  { %v2194_v41 = vmul.f32 %v3062_v25, %v2193_v32 }
 0x7a8   :  { %v3064_v35 = vpop.eup %3063  ;;  %v2176_v47 = vadd.f32 %v3060_v1, %v2175_v5 }
 0x7a9   :  { %v2195_v18 = vadd.f32 %v3062_v25, %v2194_v41  ;;  %v2212_v29 = vmul.f32 %v3064_v35, %v2210_v48  ;;  %v3066_v45 = vpop.eup %3065  ;;  %vm2217_vm12 = vweird.f32 %v3064_v35 }
 0x7aa   :  { %v2180_v37 = vsel %vm2179_vm8, %v3060_v1, %v2176_v47  ;;  %vm2218_vm14 = vmor %vm2216_vm13, %vm2217_vm12 }
 0x7ab   :  { %v2185_v11 = vsel %vm2182_vm10, %v2184_v31, %v2180_v37  ;;  %v2199_v6 = vsel %vm2198_vm9, %v3062_v25, %v2195_v18  ;;  %v2213_v9 = vsub.f32 1.0, %v2212_v29 }
 0x7ac   :  { %v2204_v21 = vsel %vm2201_vm11, %v2203_v14, %v2199_v6  ;;  %v2227_v38 = vmul.f32 %v3066_v45, %v2185_v11 }
 0x7ad   :  { %v2226_v4 = vmul.f32 %v2204_v21, %v4406_v8  ;;  %v2214_v55 = vmul.f32 %v3064_v35, %v2213_v9 }
 0x7af   :  { %v4564_v61 = vadd.f32 %v2227_v38, %v2226_v4  ;;  %v2215_v42 = vadd.f32 %v3064_v35, %v2214_v55 }
 0x7b1   :  { %3067 = vtanh.f32 %v4564_v61  ;;  %v2219_v0 = vsel %vm2218_vm14, %v3064_v35, %v2215_v42 }
 0x7b2   :  { %v2224_v3 = vsel %vm2221_vm15, %v2223_v13, %v2219_v0 }
 0x7b7   :  { %v3068_v1 = vpop.eup %3067 }
 0x7b8   :  { %v2230_v25 = vmul.f32 %v3068_v1, %v2224_v3 }
 0x7b9   :  { %v2232_v24 = vpop.permute.xlu1 %2231 }
 0x7ba   :  { %v2234_v8 = vsel %vm184_vm2, %v2230_v25, %v2232_v24  ;;  %2394 = vrot.lane.b32.xlu2 %v2230_v25, %s3407_s3 }
 0x7bb   :  { %2828 = vmatmul.msk.f32.vlgmr.msrb.gmra.mxu0 %vm195_vm3, %v2234_v8  ;;  %2829 = vmatmul.msk.f32.vlgmr.msrb.gmra.mxu1 %vm195_vm3, %v2234_v8 }
 0x7bc   :  { %2830 = vmatmul.msk.f32.vlgmr.msrb.gmra.mxu2 %vm195_vm3, %v2234_v8  ;;  %2831 = vmatmul.msk.f32.vlgmr.msrb.gmra.mxu3 %vm195_vm3, %v2234_v8 }
 0x7bd   :  { %2559 = vmatpush.msrb.mxu0 %v4415_v53  ;;  %2579 = vmatpush.msrb.mxu1 %v4418_v62  ;;  %v4900_v53 = vld [vmem:[#allocation40_spill] sm:$0xff]  ;;  %v4901_v62 = vld [vmem:[#allocation41_spill] sm:$0xff] }
 0x7be   :  { %2599 = vmatpush.msrb.mxu2 %v4421_v59  ;;  %2619 = vmatpush.msrb.mxu3 %v4424_v39  ;;  %v4902_v59 = vld [vmem:[#allocation42_spill] sm:$0xff]  ;;  %v4903_v39 = vld [vmem:[#allocation43_spill] sm:$0xff] }
 0x7bf   :  { %2560 = vmatpush.msrb.mxu0 %v4427_v58  ;;  %2580 = vmatpush.msrb.mxu1 %v4430_v10  ;;  %v4904_v58 = vld [vmem:[#allocation44_spill] sm:$0xff]  ;;  %v4905_v10 = vld [vmem:[#allocation53_spill] sm:$0xff] }
 0x7c0   :  { %2600 = vmatpush.msrb.mxu2 %v4433_v22  ;;  %2620 = vmatpush.msrb.mxu3 %v4436_v16  ;;  %v4906_v22 = vld [vmem:[#allocation54_spill] sm:$0xff]  ;;  %v4907_v16 = vld [vmem:[#allocation55_spill] sm:$0xff] }
 0x7c1   :  { %2561 = vmatpush.msrb.mxu0 %v4439_v63  ;;  %2581 = vmatpush.msrb.mxu1 %v4442_v33  ;;  %v4908_v63 = vld [vmem:[#allocation56_spill] sm:$0xff]  ;;  %v4909_v33 = vld [vmem:[#allocation57_spill] sm:$0xff] }
 0x7c2   :  { %2601 = vmatpush.msrb.mxu2 %v4445_v43  ;;  %2621 = vmatpush.msrb.mxu3 %v4448_v40  ;;  %v4910_v43 = vld [vmem:[#allocation58_spill] sm:$0xff]  ;;  %v4911_v40 = vld [vmem:[#allocation59_spill] sm:$0xff] }
 0x7c3   :  { %2562 = vmatpush.msrb.mxu0 %v4451_v28  ;;  %2582 = vmatpush.msrb.mxu1 %v4454_v52  ;;  %v4912_v28 = vld [vmem:[#allocation60_spill] sm:$0xff]  ;;  %v2387_v52 = vld [vmem:[#allocation9 + $0xf] sm:$0x1] }
 0x7c4   :  { %2602 = vmatpush.msrb.mxu2 %v4457_v27  ;;  %2622 = vmatpush.msrb.mxu3 %v4460_v23  ;;  %v2390_v27 = vrot.slane %v2387_v52, 7  ;;  %v2386_v23 = vld [vmem:[#allocation9 + $0x7] sm:$0x1] }
 0x7c5   :  { %2563 = vmatpush.msrb.mxu0 %v4900_v53  ;;  %2583 = vmatpush.msrb.mxu1 %v4901_v62 }
 0x7c6   :  { %2603 = vmatpush.msrb.mxu2 %v4902_v59  ;;  %2623 = vmatpush.msrb.mxu3 %v4903_v39  ;;  %v2391_v48 = vsel %vm177_vm1, %v2390_v27, %v2386_v23 }
 0x7c7   :  { %2564 = vmatpush.msrb.mxu0 %v4904_v58  ;;  %2584 = vmatpush.msrb.mxu1 %v4905_v10 }
 0x7c8   :  { %2604 = vmatpush.msrb.mxu2 %v4906_v22  ;;  %2624 = vmatpush.msrb.mxu3 %v4907_v16 }
 0x7c9   :  { %2565 = vmatpush.msrb.mxu0 %v4908_v63  ;;  %2585 = vmatpush.msrb.mxu1 %v4909_v33 }
 0x7ca   :  { %2605 = vmatpush.msrb.mxu2 %v4910_v43  ;;  %2625 = vmatpush.msrb.mxu3 %v4911_v40 }
 0x7cb   :  { %2566 = vmatpush.msrb.mxu0 %v4912_v28  ;;  %2586 = vmatpush.msrb.mxu1 %v4502_v49 }
 0x7cc   :  { %2606 = vmatpush.msrb.mxu2 %v4505_v34  ;;  %2626 = vmatpush.msrb.mxu3 %v4508_v30 }
 0x814   :  { %v2395_v44 = vpop.permute.xlu2 %2394 }
 0x815   :  { %v2397_v46 = vsel %vm184_vm2, %v2391_v48, %v2395_v44 }
 0x816   :  { %2835 = vmatmul.msk.f32.vlgmr.msra.gmra.mxu0 %vm195_vm3, %v2397_v46  ;;  %2836 = vmatmul.msk.f32.vlgmr.msra.gmra.mxu1 %vm195_vm3, %v2397_v46 }
 0x817   :  { %2837 = vmatmul.msk.f32.vlgmr.msra.gmra.mxu2 %vm195_vm3, %v2397_v46  ;;  %2838 = vmatmul.msk.f32.vlgmr.msra.gmra.mxu3 %vm195_vm3, %v2397_v46 }
 0x838   :  { %v2255_v49 = vpop.f32.mrf.mxu0  ;;  %v2275_v34 = vpop.f32.mrf.mxu1 }
 0x839   :  { %v2256_v30 = vadd.f32 %v2255_v49, %v4875_v17  ;;  %v2276_v32 = vadd.f32 %v2275_v34, %v4876_v26 }
 0x83b   :  { %v2832_v50 = vmul.f32 -1.442695, %v2256_v30  ;;  %v2833_v51 = vmul.f32 -1.442695, %v2276_v32 }
 0x83d   :  { %3069 = vpow2.f32 %v2832_v50 }
 0x83e   :  { %3071 = vpow2.f32 %v2833_v51 }
 0x83f   :  { %v2315_v5 = vpop.f32.mrf.mxu3  ;;  %v2295_v18 = vpop.f32.mrf.mxu2 }
 0x840   :  { %v2316_v7 = vadd.f32 %v2315_v5, %v4881_v60  ;;  %v2296_v45 = vadd.f32 %v2295_v18, %v4882_v36 }
 0x842   :  { %v2834_v41 = vmul.f32 -1.442695, %v2316_v7 }
 0x843   :  { %v3070_v15 = vpop.eup %3069 }
 0x844   :  { %v3072_v35 = vpop.eup %3071  ;;  %v2321_v47 = vadd.f32 1.0, %v3070_v15  ;;  %3073 = vpow2.f32 %v2834_v41 }
 0x845   :  { %v2340_v31 = vadd.f32 1.0, %v3072_v35 }
 0x846   :  { %3075 = vrcp.f32 %v2321_v47  ;;  %v2333_v4 = vand.u32 2147483648, %v2321_v47  ;;  %v2331_v56 = vand.u32 2147483647, %v2321_v47  ;;  %vm2327_vm6 = vweird.f32 %v2321_v47 }
 0x847   :  { %3077 = vrcp.f32 %v2340_v31  ;;  %v2352_v55 = vand.u32 2147483648, %v2340_v31  ;;  %v2350_v0 = vand.u32 2147483647, %v2340_v31  ;;  %vm2346_vm7 = vweird.f32 %v2340_v31 }
 0x848   :  { %v2334_v3 = vor.u32 1.1754944e-38, %v2333_v4  ;;  %vm2332_vm10 = vcmp.eq.f32.partialorder %v2331_v56, 8.507059e+37 }
 0x849   :  { %v2353_v8 = vor.u32 1.1754944e-38, %v2352_v55  ;;  %vm2351_vm11 = vcmp.eq.f32.partialorder %v2350_v0, 8.507059e+37 }
 0x84a   :  { %v3074_v29 = vpop.eup %3073 }
 0x84b   :  { %v2360_v14 = vadd.f32 1.0, %v3074_v29 }
 0x84c   :  { %v3076_v37 = vpop.eup %3075 }
 0x84d   :  { %v3078_v11 = vpop.eup %3077  ;;  %v2323_v6 = vmul.f32 %v3076_v37, %v2321_v47  ;;  %3079 = vrcp.f32 %v2360_v14  ;;  %vm2328_vm1 = vweird.f32 %v3076_v37  ;;  %v2372_v40 = vand.u32 2147483648, %v2360_v14 }
 0x84e   :  { %v2342_v9 = vmul.f32 %v3078_v11, %v2340_v31  ;;  %3081 = vtanh.f32 %v2296_v45  ;;  %vm2347_vm5 = vweird.f32 %v3078_v11  ;;  %vm2329_vm8 = vmor %vm2327_vm6, %vm2328_vm1  ;;  %vm2366_vm13 = vweird.f32 %v2360_v14 }
 0x84f   :  { %v2324_v21 = vsub.f32 1.0, %v2323_v6  ;;  %vm2348_vm9 = vmor %vm2346_vm7, %vm2347_vm5  ;;  %v2370_v28 = vand.u32 2147483647, %v2360_v14  ;;  %v2373_v27 = vor.u32 1.1754944e-38, %v2372_v40 }
 0x850   :  { %v2343_v38 = vsub.f32 1.0, %v2342_v9 }
 0x851   :  { %v2325_v42 = vmul.f32 %v3076_v37, %v2324_v21  ;;  %vm2371_vm15 = vcmp.eq.f32.partialorder %v2370_v28, 8.507059e+37 }
 0x852   :  { %v2344_v57 = vmul.f32 %v3078_v11, %v2343_v38 }
 0x853   :  { %v3080_v13 = vpop.eup %3079  ;;  %v2326_v1 = vadd.f32 %v3076_v37, %v2325_v42 }
 0x854   :  { %v2345_v25 = vadd.f32 %v3078_v11, %v2344_v57  ;;  %v2362_v24 = vmul.f32 %v3080_v13, %v2360_v14  ;;  %v3082_v62 = vpop.eup %3081  ;;  %vm2367_vm12 = vweird.f32 %v3080_v13 }
 0x855   :  { %v2330_v53 = vsel %vm2329_vm8, %v3076_v37, %v2326_v1  ;;  %vm2368_vm14 = vmor %vm2366_vm13, %vm2367_vm12 }
 0x856   :  { %v2335_v59 = vsel %vm2332_vm10, %v2334_v3, %v2330_v53  ;;  %v2349_v39 = vsel %vm2348_vm9, %v3078_v11, %v2345_v25  ;;  %v2363_v58 = vsub.f32 1.0, %v2362_v24 }
 0x857   :  { %v2354_v10 = vsel %vm2351_vm11, %v2353_v8, %v2349_v39  ;;  %v2377_v22 = vmul.f32 %v3082_v62, %v2335_v59 }
 0x858   :  { %v2376_v16 = vmul.f32 %v2354_v10, %v4553_v19  ;;  %v2364_v63 = vmul.f32 %v3080_v13, %v2363_v58 }
 0x85a   :  { %v4616_v33 = vadd.f32 %v2377_v22, %v2376_v16  ;;  %v2365_v43 = vadd.f32 %v3080_v13, %v2364_v63 }
 0x85c   :  { %3083 = vtanh.f32 %v4616_v33  ;;  %v2369_v52 = vsel %vm2368_vm14, %v3080_v13, %v2365_v43 }
 0x85d   :  { %v2374_v48 = vsel %vm2371_vm15, %v2373_v27, %v2369_v52 }
 0x862   :  { %v3084_v23 = vpop.eup %3083 }
 0x863   :  { %v2380_v44 = vmul.f32 %v3084_v23, %v2374_v48 }
 0x865   :  { %2544 = vrot.lane.b32.xlu0 %v2380_v44, %s3407_s3  ;;  %v2382_v19 = vrot.slane %v2380_v44, 1  ;;  %2384 = vst.msk [vmem:[#allocation15 + $0x6] sm:$0x1] %vm505_vm4, %v2380_v44 }
 0x867   :  { %2385 = vst.msk [vmem:[#allocation15 + $0xe] sm:$0x1] %vm505_vm4, %v2382_v19 }
 0x893   :  { %v2418_v46 = vpop.f32.mrf.mxu0  ;;  %v2438_v49 = vpop.f32.mrf.mxu1 }
 0x894   :  { %v2419_v34 = vadd.f32 %v2418_v46, %v4826_v54  ;;  %v2439_v30 = vadd.f32 %v2438_v49, %v4827_v20 }
 0x896   :  { %v2839_v32 = vmul.f32 -1.442695, %v2419_v34  ;;  %v2840_v50 = vmul.f32 -1.442695, %v2439_v30 }
 0x898   :  { %3085 = vpow2.f32 %v2839_v32 }
 0x899   :  { %3087 = vpow2.f32 %v2840_v50 }
 0x89a   :  { %v2478_v51 = vpop.f32.mrf.mxu3  ;;  %v2458_v31 = vpop.f32.mrf.mxu2 }
 0x89b   :  { %v2479_v5 = vadd.f32 %v2478_v51, %v4898_v2  ;;  %v2459_v20 = vadd.f32 %v2458_v31, %v4899_v12 }
 0x89d   :  { %v2841_v7 = vmul.f32 -1.442695, %v2479_v5 }
 0x89e   :  { %v3086_v41 = vpop.eup %3085 }
 0x89f   :  { %v3088_v15 = vpop.eup %3087  ;;  %v2484_v35 = vadd.f32 1.0, %v3086_v41  ;;  %3089 = vpow2.f32 %v2841_v7 }
 0x8a0   :  { %v2503_v47 = vadd.f32 1.0, %v3088_v15 }
 0x8a1   :  { %3091 = vrcp.f32 %v2484_v35  ;;  %v2496_v6 = vand.u32 2147483648, %v2484_v35  ;;  %v2494_v38 = vand.u32 2147483647, %v2484_v35  ;;  %vm2490_vm6 = vweird.f32 %v2484_v35 }
 0x8a2   :  { %3093 = vrcp.f32 %v2503_v47  ;;  %v2515_v9 = vand.u32 2147483648, %v2503_v47  ;;  %v2513_v55 = vand.u32 2147483647, %v2503_v47  ;;  %vm2509_vm7 = vweird.f32 %v2503_v47 }
 0x8a3   :  { %v2497_v12 = vor.u32 1.1754944e-38, %v2496_v6  ;;  %vm2495_vm10 = vcmp.eq.f32.partialorder %v2494_v38, 8.507059e+37 }
 0x8a4   :  { %v2516_v13 = vor.u32 1.1754944e-38, %v2515_v9  ;;  %vm2514_vm11 = vcmp.eq.f32.partialorder %v2513_v55, 8.507059e+37 }
 0x8a5   :  { %v3090_v18 = vpop.eup %3089 }
 0x8a6   :  { %v2523_v54 = vadd.f32 1.0, %v3090_v18 }
 0x8a7   :  { %v3092_v29 = vpop.eup %3091 }
 0x8a8   :  { %v3094_v14 = vpop.eup %3093  ;;  %v2486_v37 = vmul.f32 %v3092_v29, %v2484_v35  ;;  %3095 = vrcp.f32 %v2523_v54  ;;  %vm2491_vm1 = vweird.f32 %v3092_v29  ;;  %v2535_v22 = vand.u32 2147483648, %v2523_v54 }
 0x8a9   :  { %v2505_v45 = vmul.f32 %v3094_v14, %v2503_v47  ;;  %3097 = vtanh.f32 %v2459_v20  ;;  %vm2510_vm5 = vweird.f32 %v3094_v14  ;;  %vm2492_vm8 = vmor %vm2490_vm6, %vm2491_vm1  ;;  %vm2529_vm13 = vweird.f32 %v2523_v54 }
 0x8aa   :  { %v2487_v11 = vsub.f32 1.0, %v2486_v37  ;;  %vm2511_vm9 = vmor %vm2509_vm7, %vm2510_vm5  ;;  %v2533_v16 = vand.u32 2147483647, %v2523_v54  ;;  %v2536_v43 = vor.u32 1.1754944e-38, %v2535_v22 }
 0x8ab   :  { %v2506_v2 = vsub.f32 1.0, %v2505_v45 }
 0x8ac   :  { %v2488_v21 = vmul.f32 %v3092_v29, %v2487_v11  ;;  %vm2534_vm15 = vcmp.eq.f32.partialorder %v2533_v16, 8.507059e+37 }
 0x8ad   :  { %v2507_v4 = vmul.f32 %v3094_v14, %v2506_v2 }
 0x8ae   :  { %v3096_v42 = vpop.eup %3095  ;;  %v2489_v56 = vadd.f32 %v3092_v29, %v2488_v21 }
 0x8af   :  { %v2508_v57 = vadd.f32 %v3094_v14, %v2507_v4  ;;  %v2525_v0 = vmul.f32 %v3096_v42, %v2523_v54  ;;  %v3098_v3 = vpop.eup %3097  ;;  %vm2530_vm12 = vweird.f32 %v3096_v42 }
 0x8b0   :  { %v2493_v1 = vsel %vm2492_vm8, %v3092_v29, %v2489_v56  ;;  %vm2531_vm14 = vmor %vm2529_vm13, %vm2530_vm12 }
 0x8b1   :  { %v2498_v25 = vsel %vm2495_vm10, %v2497_v12, %v2493_v1  ;;  %v2512_v24 = vsel %vm2511_vm9, %v3094_v14, %v2508_v57  ;;  %v2526_v8 = vsub.f32 1.0, %v2525_v0 }
 0x8b2   :  { %v2517_v53 = vsel %vm2514_vm11, %v2516_v13, %v2512_v24  ;;  %v2540_v62 = vmul.f32 %v3098_v3, %v2498_v25 }
 0x8b3   :  { %v2539_v59 = vmul.f32 %v2517_v53, %v4564_v61  ;;  %v2527_v39 = vmul.f32 %v3096_v42, %v2526_v8 }
 0x8b5   :  { %v2541_v58 = vadd.f32 %v2540_v62, %v2539_v59  ;;  %v2528_v10 = vadd.f32 %v3096_v42, %v2527_v39 }
 0x8b7   :  { %3099 = vtanh.f32 %v2541_v58  ;;  %2701 = vst.msk [vmem:[#allocation5] sm:$0x3] %vm91_vm0, %v2541_v58  ;;  %v2532_v63 = vsel %vm2531_vm14, %v3096_v42, %v2528_v10 }
 0x8b8   :  { %v2537_v28 = vsel %vm2534_vm15, %v2536_v43, %v2532_v63 }
 0x8bd   :  { %v3100_v40 = vpop.eup %3099 }
 0x8be   :  { %v2543_v52 = vmul.f32 %v3100_v40, %v2537_v28 }
 0x8c0   :  { %2700 = vst.msk [vmem:[#allocation4] sm:$0x3] %vm91_vm0, %v2543_v52 }
 0x8d7   :  { %v2545_v61 = vpop.permute.xlu0 %2544 }
 0x8d8   :  { %v2547_v27 = vsel %vm184_vm2, %v2543_v52, %v2545_v61 }
 0x8d9   :  { %2842 = vmatmul.msk.f32.vlgmr.msrb.gmra.mxu0 %vm195_vm3, %v2547_v27  ;;  %2843 = vmatmul.msk.f32.vlgmr.msrb.gmra.mxu1 %vm195_vm3, %v2547_v27 }
 0x8da   :  { %2844 = vmatmul.msk.f32.vlgmr.msrb.gmra.mxu2 %vm195_vm3, %v2547_v27  ;;  %2845 = vmatmul.msk.f32.vlgmr.msrb.gmra.mxu3 %vm195_vm3, %v2547_v27 }
 0x956   :  { %v2568_v23 = vpop.f32.mrf.mxu0  ;;  %v2588_v48 = vpop.f32.mrf.mxu1 }
 0x957   :  { %v2569_v44 = vadd.f32 %v2568_v23, %v4875_v17  ;;  %v2589_v19 = vadd.f32 %v2588_v48, %v4876_v26 }
 0x959   :  { %v2846_v46 = vmul.f32 -1.442695, %v2569_v44  ;;  %v2847_v49 = vmul.f32 -1.442695, %v2589_v19 }
 0x95b   :  { %3101 = vpow2.f32 %v2846_v46 }
 0x95c   :  { %3103 = vpow2.f32 %v2847_v49 }
 0x95d   :  { %v2628_v34 = vpop.f32.mrf.mxu3  ;;  %v2608_v41 = vpop.f32.mrf.mxu2 }
 0x95e   :  { %v2629_v30 = vadd.f32 %v2628_v34, %v4881_v60  ;;  %v2609_v26 = vadd.f32 %v2608_v41, %v4882_v36 }
 0x960   :  { %v2848_v32 = vmul.f32 -1.442695, %v2629_v30 }
 0x961   :  { %v3102_v50 = vpop.eup %3101 }
 0x962   :  { %v3104_v51 = vpop.eup %3103  ;;  %v2634_v5 = vadd.f32 1.0, %v3102_v50  ;;  %3105 = vpow2.f32 %v2848_v32 }
 0x963   :  { %v2653_v7 = vadd.f32 1.0, %v3104_v51 }
 0x964   :  { %3107 = vrcp.f32 %v2634_v5  ;;  %v2646_v29 = vand.u32 2147483648, %v2634_v5  ;;  %v2644_v37 = vand.u32 2147483647, %v2634_v5  ;;  %vm2640_vm1 = vweird.f32 %v2634_v5 }
 0x965   :  { %3109 = vrcp.f32 %v2653_v7  ;;  %v2665_v20 = vand.u32 2147483648, %v2653_v7  ;;  %v2663_v11 = vand.u32 2147483647, %v2653_v7  ;;  %vm2659_vm5 = vweird.f32 %v2653_v7 }
 0x966   :  { %v2647_v36 = vor.u32 1.1754944e-38, %v2646_v29  ;;  %vm2645_vm8 = vcmp.eq.f32.partialorder %v2644_v37, 8.507059e+37 }
 0x967   :  { %v2666_v38 = vor.u32 1.1754944e-38, %v2665_v20  ;;  %vm2664_vm9 = vcmp.eq.f32.partialorder %v2663_v11, 8.507059e+37 }
 0x968   :  { %v3106_v15 = vpop.eup %3105 }
 0x969   :  { %v2673_v17 = vadd.f32 1.0, %v3106_v15 }
 0x96a   :  { %v3108_v35 = vpop.eup %3107 }
 0x96b   :  { %v3110_v47 = vpop.eup %3109  ;;  %v2636_v31 = vmul.f32 %v3108_v35, %v2634_v5  ;;  %3111 = vrcp.f32 %v2673_v17  ;;  %vm2641_vm2 = vweird.f32 %v3108_v35  ;;  %v2685_v24 = vand.u32 2147483648, %v2673_v17 }
 0x96c   :  { %v2655_v18 = vmul.f32 %v3110_v47, %v2653_v7  ;;  %3113 = vtanh.f32 %v2609_v26  ;;  %vm2660_vm3 = vweird.f32 %v3110_v47  ;;  %vm2642_vm6 = vmor %vm2640_vm1, %vm2641_vm2  ;;  %vm2679_vm11 = vweird.f32 %v2673_v17 }
 0x96d   :  { %v2637_v54 = vsub.f32 1.0, %v2636_v31  ;;  %vm2661_vm7 = vmor %vm2659_vm5, %vm2660_vm3  ;;  %v2683_v8 = vand.u32 2147483647, %v2673_v17  ;;  %v2686_v62 = vor.u32 1.1754944e-38, %v2685_v24 }
 0x96e   :  { %v2656_v60 = vsub.f32 1.0, %v2655_v18 }
 0x96f   :  { %v2638_v14 = vmul.f32 %v3108_v35, %v2637_v54  ;;  %vm2684_vm13 = vcmp.eq.f32.partialorder %v2683_v8, 8.507059e+37 }
 0x970   :  { %v2657_v45 = vmul.f32 %v3110_v47, %v2656_v60 }
 0x971   :  { %v3112_v2 = vpop.eup %3111  ;;  %v2639_v6 = vadd.f32 %v3108_v35, %v2638_v14 }
 0x972   :  { %v2658_v9 = vadd.f32 %v3110_v47, %v2657_v45  ;;  %v2675_v21 = vmul.f32 %v3112_v2, %v2673_v17  ;;  %v3114_v55 = vpop.eup %3113  ;;  %vm2680_vm10 = vweird.f32 %v3112_v2 }
 0x973   :  { %v2643_v4 = vsel %vm2642_vm6, %v3108_v35, %v2639_v6  ;;  %vm2681_vm12 = vmor %vm2679_vm11, %vm2680_vm10 }
 0x974   :  { %v2648_v42 = vsel %vm2645_vm8, %v2647_v36, %v2643_v4  ;;  %v2662_v56 = vsel %vm2661_vm7, %v3110_v47, %v2658_v9  ;;  %v2676_v12 = vsub.f32 1.0, %v2675_v21 }
 0x975   :  { %v2667_v57 = vsel %vm2664_vm9, %v2666_v38, %v2662_v56  ;;  %v2690_v0 = vmul.f32 %v3114_v55, %v2648_v42 }
 0x976   :  { %v2689_v13 = vmul.f32 %v2667_v57, %v4616_v33  ;;  %v2677_v1 = vmul.f32 %v3112_v2, %v2676_v12 }
 0x978   :  { %v2691_v3 = vadd.f32 %v2690_v0, %v2689_v13  ;;  %v2678_v25 = vadd.f32 %v3112_v2, %v2677_v1 }
 0x97a   :  { %3115 = vtanh.f32 %v2691_v3  ;;  %2703 = vst.msk [vmem:[#allocation7] sm:$0x3] %vm91_vm0, %v2691_v3  ;;  %v2682_v53 = vsel %vm2681_vm12, %v3112_v2, %v2678_v25 }
 0x97b   :  { %v2687_v39 = vsel %vm2684_vm13, %v2686_v62, %v2682_v53 }
 0x980   :  { %v3116_v59 = vpop.eup %3115 }
 0x981   :  { %v2693_v33 = vmul.f32 %v3116_v59, %v2687_v39 }
 0x983   :  { %v2695_v58 = vrot.slane %v2693_v33, 1  ;;  %2697 = vst.msk [vmem:[#allocation15 + $0x7] sm:$0x1] %vm505_vm4, %v2693_v33 }
 0x984   :  { %2702 = vst.msk [vmem:[#allocation6] sm:$0x3] %vm91_vm0, %v2693_v33 }
 0x985   :  { %2698 = vst.msk [vmem:[#allocation15 + $0xf] sm:$0x1] %vm505_vm4, %v2695_v58 }
 0x986   :  { %2716 = dma.vmem_to_hbm [thread:$0]  %s2709_s17, 256, %s2711_s20, [#allocation11], %s3401_s28, %s3401_s28, %s3402_s29  }
 0x987   :  { %3397 = dma.done.wait [#allocation11], 256  }
 0x988   :  { %3398 = vsyncadd [#allocation11], 4294967040 }
 0x989   :  { %2721 = vsyncpa [#allocation10], 1 }
 0x98a   :  { %2722 = vsyncpa [#allocation13], 1 }
 0x98b   :  { %2723 = vsyncpa [#allocation11], 1 }
 0x98c   :  { %2724 = vsyncmov [#allocation8] }
 0x98f   :  { %s2725_s5 = vpop.sfrf %2724 }
 0x990   :  { %p2849_p0 = scmp.ne.s32.totalorder %s2725_s5, 0 }
 0x992   :  { %2729 = shalt.err (%p2849_p0)  }
 0x993   :  { %2731 = vsyncmov [#allocation8 + $0x1] }
 0x996   :  { %s2732_s21 = vpop.sfrf %2731 }
 0x997   :  { %p2850_p1 = scmp.ne.s32.totalorder %s2732_s21, 0 }
 0x999   :  { %2736 = shalt.err (%p2850_p1)  }

</bundles_post_ra>
